<compile_context>
chip_gen: v5e
topology: v5e:2x2
jax: 0.10.0
libtpu: 0.0.40
codegen_flags: <defaults>
</compile_context>

<pallas_src>
import functools

import jax
import jax.numpy as jnp
from jax.experimental import pallas as pl
from jax.experimental.pallas import tpu as pltpu


def _round_up(n, m):
    return ((n + m - 1) // m) * m


def actor_kernel(x_ref, w1_ref, w2_ref, w3_ref, b_ref, u_ref, out_ref, *,
                 n_actions):
    H = w1_ref.shape[1]          # hidden width (64)
    PAD = w3_ref.shape[1]        # padded action width (>= 128)
    TB = x_ref.shape[0]          # batch tile

    b1 = b_ref[0:1, 0:H]         # (1, H)   f32
    b2 = b_ref[1:2, 0:H]         # (1, H)   f32
    b3 = b_ref[2:3, :]           # (1, PAD) f32

    # ---- MLP hot path: bf16 MXU matmuls, f32 accumulate, f32 elementwise ----
    h1 = jnp.dot(x_ref[...], w1_ref[...],
                 preferred_element_type=jnp.float32) + b1
    h1 = jnp.maximum(h1, 0.0)
    h2 = jnp.dot(h1.astype(w2_ref.dtype), w2_ref[...],
                 preferred_element_type=jnp.float32) + b2
    h2 = jnp.maximum(h2, 0.0)
    z = jnp.dot(h2.astype(w3_ref.dtype), w3_ref[...],
                preferred_element_type=jnp.float32) + b3          # (TB, PAD)

    # ---- torch.nan_to_num: NaN -> 0, +/-inf -> +/-finite max ----
    fmax = jnp.float32(jnp.finfo(jnp.float32).max)
    z = jnp.where(jnp.isnan(z), 0.0, z)
    z = jnp.clip(z, -fmax, fmax)

    # ---- Categorical(logits=z[:, :n_actions]): masked log-softmax ----
    lane = jax.lax.broadcasted_iota(jnp.int32, (TB, PAD), 1)
    valid = lane < n_actions
    zm = jnp.where(valid, z, -jnp.inf)         # padded lanes never contribute
    m = jnp.max(zm, axis=-1, keepdims=True)
    e = jnp.exp(zm - m)                        # exp(-inf) = 0 on pad lanes
    s = jnp.sum(e, axis=-1, keepdims=True)
    logp = (z - m) - jnp.log(s)                # pad lanes: garbage, discarded

    # ---- dist.sample() via Gumbel-max trick (equivalent in distribution) ----
    eps = jnp.float32(1e-7)
    u = jnp.clip(u_ref[...], eps, 1.0 - eps)   # guard u == 0 / 1
    g = -jnp.log(-jnp.log(u))
    zg = jnp.where(valid, logp + g, -jnp.inf)
    mg = jnp.max(zg, axis=-1, keepdims=True)
    cand = jnp.where(zg >= mg, lane, jnp.int32(PAD))
    act = jnp.min(cand, axis=-1, keepdims=True).astype(jnp.float32)  # (TB, 1)

    # ---- single lane-dense output slab: lanes [0,A)=logp, lane A=action ----
    out_ref[...] = jnp.where(lane == n_actions, act, logp)


@functools.partial(jax.jit, static_argnames=("n_actions", "block_b"))
def actor_forward(x, packed_params, uniform_noise, *, n_actions, block_b=256):
    """Fused ActorNet forward.  Returns (log_probs (B, A) f32, action (B,) i32)."""
    w1, w2, w3p, b_all = packed_params
    B, obs = x.shape
    PAD = w3p.shape[1]

    TB = min(block_b, _round_up(B, 8))
    Bp = _round_up(B, TB)

    xp = jnp.pad(x, ((0, Bp - B), (0, 0))).astype(jnp.bfloat16)
    up = jnp.pad(uniform_noise.astype(jnp.float32),
                 ((0, Bp - B), (0, PAD - n_actions)), constant_values=0.5)

    kernel = functools.partial(actor_kernel, n_actions=n_actions)

    slab = pl.pallas_call(
        kernel,
        out_shape=jax.ShapeDtypeStruct((Bp, PAD), jnp.float32),
        grid=(Bp // TB,),
        in_specs=[
            pl.BlockSpec((TB, obs), lambda i: (i, 0)),      # x tile (pipelined)
            pl.BlockSpec(w1.shape, lambda i: (0, 0)),       # resident weights
            pl.BlockSpec(w2.shape, lambda i: (0, 0)),
            pl.BlockSpec(w3p.shape, lambda i: (0, 0)),
            pl.BlockSpec(b_all.shape, lambda i: (0, 0)),    # packed biases
            pl.BlockSpec((TB, PAD), lambda i: (i, 0)),      # gumbel noise tile
        ],
        out_specs=pl.BlockSpec((TB, PAD), lambda i: (i, 0)),
        compiler_params=pltpu.CompilerParams(
            dimension_semantics=("parallel",)),
    )(xp, w1, w2, w3p, b_all, up)

    log_probs = slab[:B, :n_actions]
    action = slab[:B, n_actions].astype(jnp.int32)
    return log_probs, action


def pack_params(params, n_actions):
    """Repack (in,out)-layout weights for the kernel: bf16 weights, W3/b3
    zero-padded to a 128-lane action axis, the 3 biases in one f32 slab."""
    w1, b1, w2, b2, w3, b3 = params
    H = w1.shape[1]
    PAD = _round_up(max(H, n_actions + 1), 128)
    w3p = jnp.zeros((H, PAD), jnp.float32).at[:, :n_actions].set(w3)
    b_all = jnp.zeros((3, PAD), jnp.float32)
    b_all = b_all.at[0, :H].set(jnp.reshape(b1, (-1,)))
    b_all = b_all.at[1, :H].set(jnp.reshape(b2, (-1,)))
    b_all = b_all.at[2, :n_actions].set(jnp.reshape(b3, (-1,)))
    return (w1.astype(jnp.bfloat16), w2.astype(jnp.bfloat16),
            w3p.astype(jnp.bfloat16), b_all)


def init_params(key, obs_size, n_actions, hidden_size=64):
    """Deterministic synthetic init (PyTorch-style uniform fan-in bounds)."""
    ks = jax.random.split(key, 6)

    def linear(kw, kb, fan_in, fan_out):
        bound = 1.0 / jnp.sqrt(jnp.float32(fan_in))
        w = jax.random.uniform(kw, (fan_in, fan_out), jnp.float32, -bound, bound)
        b = jax.random.uniform(kb, (1, fan_out), jnp.float32, -bound, bound)
        return w, b

    w1, b1 = linear(ks[0], ks[1], obs_size, hidden_size)
    w2, b2 = linear(ks[2], ks[3], hidden_size, hidden_size)
    w3, b3 = linear(ks[4], ks[5], hidden_size, n_actions)
    return (w1, b1, w2, b2, w3, b3)


def ref_forward(x, params, uniform_noise):
    """Pure-JAX reference using the same bf16-matmul / f32-accumulate recipe."""
    w1, b1, w2, b2, w3, b3 = params
    bf = jnp.bfloat16
    h1 = jnp.maximum(jnp.dot(x.astype(bf), w1.astype(bf),
                             preferred_element_type=jnp.float32) + b1, 0.0)
    h2 = jnp.maximum(jnp.dot(h1.astype(bf), w2.astype(bf),
                             preferred_element_type=jnp.float32) + b2, 0.0)
    z = jnp.nan_to_num(jnp.dot(h2.astype(bf), w3.astype(bf),
                               preferred_element_type=jnp.float32) + b3)
    logp = jax.nn.log_softmax(z, axis=-1)
    u = jnp.clip(uniform_noise, 1e-7, 1.0 - 1e-7)
    g = -jnp.log(-jnp.log(u))
    act = jnp.argmax(logp + g, axis=-1).astype(jnp.int32)
    return logp, act


if __name__ == "__main__":
    # depth == 2 branch of ActorNet; batch large enough to exercise the grid.
    B, OBS, ACTIONS, HIDDEN = 1024, 16, 6, 64

    key = jax.random.PRNGKey(0)
    k_x, k_p, k_u = jax.random.split(key, 3)

    x = jax.random.normal(k_x, (B, OBS), jnp.float32)
    params = init_params(k_p, OBS, ACTIONS, HIDDEN)
    # Uniform noise in (0, 1) for Gumbel-max sampling (deterministic, seeded).
    u = jax.random.uniform(k_u, (B, ACTIONS), jnp.float32,
                           minval=1e-6, maxval=1.0 - 1e-6)

    packed = pack_params(params, ACTIONS)
    log_probs, action = actor_forward(x, packed, u, n_actions=ACTIONS)
    jax.block_until_ready((log_probs, action))

    # Validation: distribution sanity + pure-JAX reference.
    ref_logp, ref_act = ref_forward(x, params, u)
    assert log_probs.shape == (B, ACTIONS)
    assert action.shape == (B,)
    assert bool(jnp.all(jnp.isfinite(log_probs)))
    assert bool(jnp.all(jnp.abs(jnp.sum(jnp.exp(log_probs), axis=-1) - 1.0) < 1e-3))
    assert bool(jnp.all((action >= 0) & (action < ACTIONS)))
    assert bool(jnp.allclose(log_probs, ref_logp, atol=5e-3, rtol=5e-3))
    assert float(jnp.mean((action == ref_act).astype(jnp.float32))) > 0.99

    print("KERNEL_OK")
</pallas_src>

<mosaic_0001>
module attributes {stable_mosaic.version = 11 : i64} {
  func.func @actor_kernel(%arg0: i32, %arg1: memref<256x16xbf16, #tpu.memory_space<vmem>>, %arg2: memref<16x64xbf16, #tpu.memory_space<vmem>>, %arg3: memref<64x64xbf16, #tpu.memory_space<vmem>>, %arg4: memref<64x128xbf16, #tpu.memory_space<vmem>>, %arg5: memref<3x128xf32, #tpu.memory_space<vmem>>, %arg6: memref<256x128xf32, #tpu.memory_space<vmem>>, %arg7: memref<256x128xf32, #tpu.memory_space<vmem>>) attributes {dimension_semantics = [#tpu.dimension_semantics<parallel>], iteration_bounds = array<i64: 4>, scalar_prefetch = 0 : i64, scratch_operands = 0 : i64, tpu.core_type = #tpu.core_type<tc>, window_params = [{transform_indices = @transform_0, window_bounds = array<i64: 256, 16>}, {pipeline_mode = #tpu.pipeline_mode<synchronous>, transform_indices = @transform_1, window_bounds = array<i64: 16, 64>}, {pipeline_mode = #tpu.pipeline_mode<synchronous>, transform_indices = @transform_2, window_bounds = array<i64: 64, 64>}, {pipeline_mode = #tpu.pipeline_mode<synchronous>, transform_indices = @transform_3, window_bounds = array<i64: 64, 128>}, {pipeline_mode = #tpu.pipeline_mode<synchronous>, transform_indices = @transform_4, window_bounds = array<i64: 3, 128>}, {transform_indices = @transform_5, window_bounds = array<i64: 256, 128>}, {transform_indices = @transform_6, window_bounds = array<i64: 256, 128>}]} {
    %c0 = arith.constant 0 : index
    %c0_0 = arith.constant 0 : index
    %0 = vector.load %arg5[%c0, %c0_0] : memref<3x128xf32, #tpu.memory_space<vmem>>, vector<1x64xf32>
    %c1 = arith.constant 1 : index
    %c0_1 = arith.constant 0 : index
    %1 = vector.load %arg5[%c1, %c0_1] : memref<3x128xf32, #tpu.memory_space<vmem>>, vector<1x64xf32>
    %c2 = arith.constant 2 : index
    %c0_2 = arith.constant 0 : index
    %2 = vector.load %arg5[%c2, %c0_2] : memref<3x128xf32, #tpu.memory_space<vmem>>, vector<1x128xf32>
    %c0_3 = arith.constant 0 : index
    %c0_4 = arith.constant 0 : index
    %3 = vector.load %arg1[%c0_3, %c0_4] : memref<256x16xbf16, #tpu.memory_space<vmem>>, vector<256x16xbf16>
    %c0_5 = arith.constant 0 : index
    %c0_6 = arith.constant 0 : index
    %4 = vector.load %arg2[%c0_5, %c0_6] : memref<16x64xbf16, #tpu.memory_space<vmem>>, vector<16x64xbf16>
    %cst = arith.constant dense<0.000000e+00> : vector<256x64xf32>
    %5 = tpu.matmul %3, %4, %cst {dimension_numbers = #tpu.dot_dimension_numbers<[1], [0], [0], [1], [0, 0, 1, 1], [], []>} : vector<256x16xbf16>, vector<16x64xbf16>, vector<256x64xf32> -> vector<256x64xf32>
    %6 = vector.broadcast %0 : vector<1x64xf32> to vector<256x64xf32>
    %7 = arith.addf %5, %6 : vector<256x64xf32>
    %cst_7 = arith.constant 0.000000e+00 : f32
    %8 = vector.broadcast %cst_7 : f32 to vector<256x64xf32>
    %9 = arith.maximumf %7, %8 : vector<256x64xf32>
    %10 = arith.truncf %9 : vector<256x64xf32> to vector<256x64xbf16>
    %c0_8 = arith.constant 0 : index
    %c0_9 = arith.constant 0 : index
    %11 = vector.load %arg3[%c0_8, %c0_9] : memref<64x64xbf16, #tpu.memory_space<vmem>>, vector<64x64xbf16>
    %cst_10 = arith.constant dense<0.000000e+00> : vector<256x64xf32>
    %12 = tpu.matmul %10, %11, %cst_10 {dimension_numbers = #tpu.dot_dimension_numbers<[1], [0], [0], [1], [0, 0, 1, 1], [], []>} : vector<256x64xbf16>, vector<64x64xbf16>, vector<256x64xf32> -> vector<256x64xf32>
    %13 = vector.broadcast %1 : vector<1x64xf32> to vector<256x64xf32>
    %14 = arith.addf %12, %13 : vector<256x64xf32>
    %cst_11 = arith.constant 0.000000e+00 : f32
    %15 = vector.broadcast %cst_11 : f32 to vector<256x64xf32>
    %16 = arith.maximumf %14, %15 : vector<256x64xf32>
    %17 = arith.truncf %16 : vector<256x64xf32> to vector<256x64xbf16>
    %c0_12 = arith.constant 0 : index
    %c0_13 = arith.constant 0 : index
    %18 = vector.load %arg4[%c0_12, %c0_13] : memref<64x128xbf16, #tpu.memory_space<vmem>>, vector<64x128xbf16>
    %cst_14 = arith.constant dense<0.000000e+00> : vector<256x128xf32>
    %19 = tpu.matmul %17, %18, %cst_14 {dimension_numbers = #tpu.dot_dimension_numbers<[1], [0], [0], [1], [0, 0, 1, 1], [], []>} : vector<256x64xbf16>, vector<64x128xbf16>, vector<256x128xf32> -> vector<256x128xf32>
    %20 = vector.broadcast %2 : vector<1x128xf32> to vector<256x128xf32>
    %21 = arith.addf %19, %20 : vector<256x128xf32>
    %22 = arith.cmpf one, %21, %21 : vector<256x128xf32>
    %cst_15 = arith.constant 0.000000e+00 : f32
    %23 = vector.broadcast %cst_15 : f32 to vector<256x128xf32>
    %24 = arith.select %22, %23, %21 : vector<256x128xi1>, vector<256x128xf32>
    %cst_16 = arith.constant 0.000000e+00 : f32
    %cst_17 = arith.constant 3.40282347E+38 : f32
    %25 = arith.subf %cst_16, %cst_17 : f32
    %cst_18 = arith.constant 3.40282347E+38 : f32
    %26 = vector.broadcast %25 : f32 to vector<256x128xf32>
    %27 = arith.maximumf %26, %24 : vector<256x128xf32>
    %28 = vector.broadcast %cst_18 : f32 to vector<256x128xf32>
    %29 = arith.minimumf %28, %27 : vector<256x128xf32>
    %30 = tpu.iota {dimensions = array<i32: 1>} : vector<256x128xi32>
    %c6_i32 = arith.constant 6 : i32
    %31 = vector.broadcast %c6_i32 : i32 to vector<256x128xi32>
    %32 = arith.cmpi slt, %30, %31 : vector<256x128xi32>
    %cst_19 = arith.constant 0xFF800000 : f32
    %33 = vector.broadcast %cst_19 : f32 to vector<256x128xf32>
    %34 = arith.select %32, %29, %33 : vector<256x128xi1>, vector<256x128xf32>
    %cst_20 = arith.constant dense<0xFF800000> : vector<256xf32>
    %35 = vector.multi_reduction <maximumf>, %34, %cst_20 [1] : vector<256x128xf32> to vector<256xf32>
    %36 = vector.shape_cast %35 : vector<256xf32> to vector<256x1xf32>
    %37 = vector.broadcast %36 : vector<256x1xf32> to vector<256x128xf32>
    %38 = arith.subf %34, %37 : vector<256x128xf32>
    %39 = math.exp %38 : vector<256x128xf32>
    %cst_21 = arith.constant dense<0.000000e+00> : vector<256xf32>
    %40 = vector.multi_reduction <add>, %39, %cst_21 [1] : vector<256x128xf32> to vector<256xf32>
    %41 = vector.shape_cast %40 : vector<256xf32> to vector<256x1xf32>
    %42 = vector.broadcast %36 : vector<256x1xf32> to vector<256x128xf32>
    %43 = arith.subf %29, %42 : vector<256x128xf32>
    %44 = math.log %41 : vector<256x1xf32>
    %45 = vector.broadcast %44 : vector<256x1xf32> to vector<256x128xf32>
    %46 = arith.subf %43, %45 : vector<256x128xf32>
    %c0_22 = arith.constant 0 : index
    %c0_23 = arith.constant 0 : index
    %47 = vector.load %arg6[%c0_22, %c0_23] : memref<256x128xf32, #tpu.memory_space<vmem>>, vector<256x128xf32>
    %cst_24 = arith.constant 1.000000e+00 : f32
    %cst_25 = arith.constant 1.000000e-07 : f32
    %48 = arith.subf %cst_24, %cst_25 : f32
    %cst_26 = arith.constant 1.000000e-07 : f32
    %49 = vector.broadcast %cst_26 : f32 to vector<256x128xf32>
    %50 = arith.maximumf %49, %47 : vector<256x128xf32>
    %51 = vector.broadcast %48 : f32 to vector<256x128xf32>
    %52 = arith.minimumf %51, %50 : vector<256x128xf32>
    %53 = math.log %52 : vector<256x128xf32>
    %cst_27 = arith.constant 0.000000e+00 : f32
    %54 = vector.broadcast %cst_27 : f32 to vector<256x128xf32>
    %55 = arith.subf %54, %53 : vector<256x128xf32>
    %56 = math.log %55 : vector<256x128xf32>
    %cst_28 = arith.constant 0.000000e+00 : f32
    %57 = vector.broadcast %cst_28 : f32 to vector<256x128xf32>
    %58 = arith.subf %57, %56 : vector<256x128xf32>
    %59 = arith.addf %46, %58 : vector<256x128xf32>
    %cst_29 = arith.constant 0xFF800000 : f32
    %60 = vector.broadcast %cst_29 : f32 to vector<256x128xf32>
    %61 = arith.select %32, %59, %60 : vector<256x128xi1>, vector<256x128xf32>
    %cst_30 = arith.constant dense<0xFF800000> : vector<256xf32>
    %62 = vector.multi_reduction <maximumf>, %61, %cst_30 [1] : vector<256x128xf32> to vector<256xf32>
    %63 = vector.shape_cast %62 : vector<256xf32> to vector<256x1xf32>
    %64 = vector.broadcast %63 : vector<256x1xf32> to vector<256x128xf32>
    %65 = arith.cmpf oge, %61, %64 : vector<256x128xf32>
    %c128_i32 = arith.constant 128 : i32
    %66 = vector.broadcast %c128_i32 : i32 to vector<256x128xi32>
    %67 = arith.select %65, %30, %66 : vector<256x128xi1>, vector<256x128xi32>
    %cst_31 = arith.constant dense<2147483647> : vector<256xi32>
    %68 = vector.multi_reduction <minsi>, %67, %cst_31 [1] : vector<256x128xi32> to vector<256xi32>
    %69 = vector.shape_cast %68 : vector<256xi32> to vector<256x1xi32>
    %70 = arith.sitofp %69 : vector<256x1xi32> to vector<256x1xf32>
    %c6_i32_32 = arith.constant 6 : i32
    %71 = vector.broadcast %c6_i32_32 : i32 to vector<256x128xi32>
    %72 = arith.cmpi eq, %30, %71 : vector<256x128xi32>
    %73 = vector.shape_cast %70 : vector<256x1xf32> to vector<256x1xf32>
    %74 = vector.broadcast %73 : vector<256x1xf32> to vector<256x128xf32>
    %75 = arith.select %72, %74, %46 : vector<256x128xi1>, vector<256x128xf32>
    %c0_33 = arith.constant 0 : index
    %c0_34 = arith.constant 0 : index
    %76 = vector.load %arg7[%c0_33, %c0_34] : memref<256x128xf32, #tpu.memory_space<vmem>>, vector<256x128xf32>
    tpu.vector_store %arg7[%c0_33, %c0_34], %75 {strides = array<i32>} : memref<256x128xf32, #tpu.memory_space<vmem>>, vector<256x128xf32>,
    return
  }
  func.func @transform_0(%arg0: i32) -> (i32, i32) {
    %c0_i32 = arith.constant 0 : i32
    %c0_i32_0 = arith.constant 0 : i32
    return %arg0, %c0_i32 : i32, i32
  }
  func.func @transform_1(%arg0: i32) -> (i32, i32) {
    %c0_i32 = arith.constant 0 : i32
    %c0_i32_0 = arith.constant 0 : i32
    %c0_i32_1 = arith.constant 0 : i32
    return %c0_i32, %c0_i32_0 : i32, i32
  }
  func.func @transform_2(%arg0: i32) -> (i32, i32) {
    %c0_i32 = arith.constant 0 : i32
    %c0_i32_0 = arith.constant 0 : i32
    %c0_i32_1 = arith.constant 0 : i32
    return %c0_i32, %c0_i32_0 : i32, i32
  }
  func.func @transform_3(%arg0: i32) -> (i32, i32) {
    %c0_i32 = arith.constant 0 : i32
    %c0_i32_0 = arith.constant 0 : i32
    %c0_i32_1 = arith.constant 0 : i32
    return %c0_i32, %c0_i32_0 : i32, i32
  }
  func.func @transform_4(%arg0: i32) -> (i32, i32) {
    %c0_i32 = arith.constant 0 : i32
    %c0_i32_0 = arith.constant 0 : i32
    %c0_i32_1 = arith.constant 0 : i32
    return %c0_i32, %c0_i32_0 : i32, i32
  }
  func.func @transform_5(%arg0: i32) -> (i32, i32) {
    %c0_i32 = arith.constant 0 : i32
    %c0_i32_0 = arith.constant 0 : i32
    return %arg0, %c0_i32 : i32, i32
  }
  func.func @transform_6(%arg0: i32) -> (i32, i32) {
    %c0_i32 = arith.constant 0 : i32
    %c0_i32_0 = arith.constant 0 : i32
    return %arg0, %c0_i32 : i32, i32
  }
}

</mosaic_0001>

<bundles_post_ra>
// kernel: actor_forward.1
= control target key start
LH: loop header
LB: loop body
LE: loop exit
PB: predicated region body
PF: predicated region fallthrough
CT: control target
= control target key end

     0   :  { %s3122_s21 = smov 0   ;;  %s4770_s0 = inlined_call_operand.vmem [shape: bf16[1024,16], index: 0, kind: input, shape index: {}]   ;;  %s4771_s1 = inlined_call_operand.vmem [shape: bf16[16,64], index: 1, kind: input, shape index: {}]   ;;  %s4772_s2 = inlined_call_operand.vmem [shape: bf16[64,64], index: 2, kind: input, shape index: {}]   ;;  %s4773_s3 = inlined_call_operand.vmem [shape: bf16[64,128], index: 3, kind: input, shape index: {}]   ;;  %s4774_s4 = inlined_call_operand.vmem [shape: f32[3,128], index: 4, kind: input, shape index: {}]   ;;  %s4775_s5 = inlined_call_operand.vmem [shape: f32[1024,128], index: 5, kind: input, shape index: {}]   ;;  %s4776_s6 = inlined_call_operand.vmem [shape: f32[1024,128], index: 6, kind: output, shape index: {}]  }
   0x1 LB: > { %s2585_s22 = sadd.s32 4294967295, %s3085_s21   ;;  %p2589_p0 = scmp.ge.s32.totalorder %s3085_s21, 1  ;;  %s3085_s21 = sphi %s3122_s21, %s16_s21  }
   0x2   : > { %p224_p1 = scmp.lt.s32.totalorder %s3085_s21, 5 }
   0x4   : > { %p225_p2 = pnand %p2589_p0, %p224_p1 }
   0x6   : > { %228 = sbr.rel (%p225_p2) target bundleno = 1323 (0x52b), region = 44 }
   0xb   : > { %v2794_v0 = vld [vmem:[%s4771_s1] sm:$0xff]  ;;  %s2590_s25 = sshll.u32 %s2585_s22, 5  ;;  %vm402_vm0 = vcmask 130048   ;;  %v2798_v7 = vld [vmem:[%s4772_s2 + $0x18] sm:$0xff]  ;;  %v2797_v9 = vld [vmem:[%s4772_s2 + $0x10] sm:$0xff]  ;;  %vm621_vm1 = vcmask 523264  }
   0xc   : > { %p260_p3 = scmp.lt.s32.totalorder %s2590_s25, 127  ;;  %458 = vmatpush.bf16.msra.mxu0 %v2794_v0  ;;  %2803 = vmatpush.bf16.msra.mxu3 %v2794_v0  ;;  %v2796_v10 = vld [vmem:[%s4772_s2 + $0x8] sm:$0xff]  ;;  %v2795_v11 = vld [vmem:[%s4772_s2] sm:$0xff] }
   0xd   : > { %674 = vmatpush.bf16.msra.mxu1 %v2798_v7  ;;  %v3173_v15 = vld [vmem:[%s4774_s4] ss:$0 sm:$0xff] }
   0xe   : > { %s4995_s25 = smov (!%p260_p3, %s2590_s25), 127 }
   0xf   : > { %s2591_s26 = sshll.u32 %s4995_s25, 2  ;;  %s2593_s30 = sshll.u32 %s4995_s25, 3 }
  0x10   : > { %s3139_s29 = scalar_lea.vmem %s4770_s0, %s2591_s26  ;;  %2804 = vmatpush.bf16.msrb.mxu3 %v2798_v7  ;;  %s3652_s9 = scalar_lea.vmem %s4775_s5, %s2593_s30 }
  0x11   : > { %v2778_v1 = vld [vmem:[%s3139_s29] sm:$0xff]  ;;  %v2779_v2 = vld [vmem:[%s3139_s29 + $0x8] sm:$0xff]  ;;  %v2780_v3 = vld [vmem:[%s3139_s29 + $0x10] sm:$0xff]  ;;  %675 = vmatpush.bf16.msra.mxu1 %v2797_v9  ;;  %s4507_s12 = scalar_lea.vmem %s4776_s6, %s2593_s30 }
  0x12   : > { %2664 = vmatmul.msk.bf16.vlgmr.msra.gmra.mxu0 %vm402_vm0, %v2778_v1  ;;  %v2781_v4 = vld [vmem:[%s3139_s29 + $0x18] sm:$0xff]  ;;  %v2782_v5 = vld [vmem:[%s3139_s29 + $0x20] sm:$0xff]  ;;  %v2783_v6 = vld [vmem:[%s3139_s29 + $0x28] sm:$0xff] }
  0x13   : > { %v2784_v8 = vld [vmem:[%s3139_s29 + $0x30] sm:$0xff]  ;;  %v2785_v12 = vld [vmem:[%s3139_s29 + $0x38] sm:$0xff]  ;;  %v2786_v13 = vld [vmem:[%s3139_s29 + $0x40] sm:$0xff] }
  0x14   : > { %2805 = vmatpush.bf16.msrb.mxu3 %v2797_v9  ;;  %v2787_v22 = vld [vmem:[%s3139_s29 + $0x48] sm:$0xff]  ;;  %v2788_v30 = vld [vmem:[%s3139_s29 + $0x50] sm:$0xff]  ;;  %v2789_v39 = vld [vmem:[%s3139_s29 + $0x58] sm:$0xff] }
  0x15   : > { %676 = vmatpush.bf16.msra.mxu1 %v2796_v10  ;;  %v2791_v32 = vld [vmem:[%s3139_s29 + $0x68] sm:$0xff]  ;;  %v2792_v41 = vld [vmem:[%s3139_s29 + $0x70] sm:$0xff]  ;;  %v2790_v48 = vld [vmem:[%s3139_s29 + $0x60] sm:$0xff] }
  0x16   : > { %2677 = vmatmul.msk.bf16.vlgmr.msra.gmra.mxu3 %vm402_vm0, %v2791_v32  ;;  %v2793_v50 = vld [vmem:[%s3139_s29 + $0x78] sm:$0xff] }
  0x18   : > { %2806 = vmatpush.bf16.msrb.mxu3 %v2796_v10  ;;  %v2800_v10 = vld [vmem:[%s4773_s3 + $0x8] sm:$0xff] }
  0x19   : > { %677 = vmatpush.bf16.msra.mxu1 %v2795_v11 }
  0x1c   : > { %2807 = vmatpush.bf16.msrb.mxu3 %v2795_v11  ;;  %v2799_v11 = vld [vmem:[%s4773_s3] sm:$0xff] }
  0x22   : > { %2665 = vmatmul.msk.bf16.gmra.mxu0 %vm402_vm0, %v2779_v2 }
  0x26   : > { %2678 = vmatmul.msk.bf16.gmra.mxu3 %vm402_vm0, %v2792_v41 }
  0x32   : > { %2666 = vmatmul.msk.bf16.gmra.mxu0 %vm402_vm0, %v2780_v3 }
  0x36   : > { %2679 = vmatmul.msk.bf16.gmra.mxu3 %vm402_vm0, %v2793_v50 }
  0x42   : > { %2667 = vmatmul.msk.bf16.gmra.mxu0 %vm402_vm0, %v2781_v4  ;;  %v2802_v4 = vld [vmem:[%s4773_s3 + $0x18] sm:$0xff] }
  0x43   : > { %892 = vmatpush.bf16.msra.mxu2 %v2802_v4  ;;  %2808 = vmatpush.bf16.msra.mxu3 %v2802_v4 }
  0x52   : > { %2668 = vmatmul.msk.bf16.gmra.mxu0 %vm402_vm0, %v2782_v5 }
  0x62   : > { %2669 = vmatmul.msk.bf16.gmra.mxu0 %vm402_vm0, %v2783_v6 }
  0x72   : > { %2670 = vmatmul.msk.bf16.gmra.mxu0 %vm402_vm0, %v2784_v8  ;;  %v2801_v8 = vld [vmem:[%s4773_s3 + $0x10] sm:$0xff] }
  0x73   : > { %893 = vmatpush.bf16.msra.mxu2 %v2801_v8  ;;  %2809 = vmatpush.bf16.msra.mxu3 %v2801_v8 }
  0x77   : > { %894 = vmatpush.bf16.msra.mxu2 %v2800_v10  ;;  %2810 = vmatpush.bf16.msra.mxu3 %v2800_v10 }
  0x7b   : > { %895 = vmatpush.bf16.msra.mxu2 %v2799_v11  ;;  %2811 = vmatpush.bf16.msra.mxu3 %v2799_v11 }
  0x82   : > { %2671 = vmatmul.msk.bf16.gmra.mxu0 %vm402_vm0, %v2785_v12 }
  0x8f   : > { %v460_v14 = vpop.f32.mrf.mxu0 }
  0x90   : > { %v461_v16 = vadd.f32 %v3173_v15, %v460_v14 }
  0x92   : > { %2672 = vmatmul.msk.bf16.gmra.mxu0 %vm402_vm0, %v2786_v13  ;;  %v540_v19 = vmax.f32 %v461_v16, 0.0 }
  0x97   : > { %v462_v17 = vpop.f32.mrf.mxu0 }
  0x98   : > { %v463_v18 = vadd.f32 %v3173_v15, %v462_v17 }
  0x9a   : > { %v541_v20 = vmax.f32 %v463_v18, 0.0 }
  0x9c   : > { %v572_v21 = vpack.c.bf16 %v541_v20, %v540_v19 }
  0x9e   : > { %2696 = vmatmul.msk.bf16.vlgmr.msra.gmra.mxu1 %vm621_vm1, %v572_v21 }
  0x9f   : > { %v465_v23 = vpop.f32.mrf.mxu0 }
  0xa0   : > { %v466_v24 = vadd.f32 %v3173_v15, %v465_v23 }
  0xa2   : > { %2673 = vmatmul.msk.bf16.gmra.mxu0 %vm402_vm0, %v2787_v22  ;;  %v542_v27 = vmax.f32 %v466_v24, 0.0 }
  0xa7   : > { %v467_v25 = vpop.f32.mrf.mxu0 }
  0xa8   : > { %v468_v26 = vadd.f32 %v3173_v15, %v467_v25 }
  0xaa   : > { %v543_v28 = vmax.f32 %v468_v26, 0.0 }
  0xac   : > { %v573_v29 = vpack.c.bf16 %v543_v28, %v542_v27  ;;  %v3231_v27 = vld [vmem:[%s4774_s4 + $0x1] ss:$0 sm:$0xff] }
  0xae   : > { %2697 = vmatmul.msk.bf16.gmra.mxu1 %vm621_vm1, %v573_v29 }
  0xaf   : > { %v470_v31 = vpop.f32.mrf.mxu0 }
  0xb0   : > { %v471_v33 = vadd.f32 %v3173_v15, %v470_v31 }
  0xb2   : > { %2674 = vmatmul.msk.bf16.gmra.mxu0 %vm402_vm0, %v2788_v30  ;;  %v544_v36 = vmax.f32 %v471_v33, 0.0 }
  0xb7   : > { %v472_v34 = vpop.f32.mrf.mxu0 }
  0xb8   : > { %v473_v35 = vadd.f32 %v3173_v15, %v472_v34 }
  0xba   : > { %v545_v37 = vmax.f32 %v473_v35, 0.0 }
  0xbc   : > { %v574_v38 = vpack.c.bf16 %v545_v37, %v544_v36 }
  0xbe   : > { %2698 = vmatmul.msk.bf16.gmra.mxu1 %vm621_vm1, %v574_v38 }
  0xbf   : > { %v475_v40 = vpop.f32.mrf.mxu0 }
  0xc0   : > { %v476_v42 = vadd.f32 %v3173_v15, %v475_v40 }
  0xc2   : > { %2675 = vmatmul.msk.bf16.gmra.mxu0 %vm402_vm0, %v2789_v39  ;;  %v546_v45 = vmax.f32 %v476_v42, 0.0 }
  0xc7   : > { %v477_v43 = vpop.f32.mrf.mxu0 }
  0xc8   : > { %v478_v44 = vadd.f32 %v3173_v15, %v477_v43 }
  0xca   : > { %v547_v46 = vmax.f32 %v478_v44, 0.0 }
  0xcc   : > { %v575_v47 = vpack.c.bf16 %v547_v46, %v546_v45 }
  0xce   : > { %2699 = vmatmul.msk.bf16.gmra.mxu1 %vm621_vm1, %v575_v47 }
  0xcf   : > { %v480_v49 = vpop.f32.mrf.mxu0 }
  0xd0   : > { %v481_v51 = vadd.f32 %v3173_v15, %v480_v49 }
  0xd2   : > { %2676 = vmatmul.msk.bf16.gmra.mxu0 %vm402_vm0, %v2790_v48  ;;  %v548_v54 = vmax.f32 %v481_v51, 0.0 }
  0xd7   : > { %v482_v52 = vpop.f32.mrf.mxu0 }
  0xd8   : > { %v483_v53 = vadd.f32 %v3173_v15, %v482_v52 }
  0xda   : > { %v549_v55 = vmax.f32 %v483_v53, 0.0 }
  0xdc   : > { %v576_v56 = vpack.c.bf16 %v549_v55, %v548_v54 }
  0xde   : > { %2700 = vmatmul.msk.bf16.gmra.mxu1 %vm621_vm1, %v576_v56 }
  0xdf   : > { %v485_v57 = vpop.f32.mrf.mxu0 }
  0xe0   : > { %v486_v58 = vadd.f32 %v3173_v15, %v485_v57 }
  0xe2   : > { %v550_v61 = vmax.f32 %v486_v58, 0.0 }
  0xe7   : > { %v487_v59 = vpop.f32.mrf.mxu0 }
  0xe8   : > { %v488_v60 = vadd.f32 %v3173_v15, %v487_v59 }
  0xea   : > { %v551_v62 = vmax.f32 %v488_v60, 0.0 }
  0xec   : > { %v577_v63 = vpack.c.bf16 %v551_v62, %v550_v61 }
  0xee   : > { %2701 = vmatmul.msk.bf16.gmra.mxu1 %vm621_vm1, %v577_v63 }
  0xef   : > { %v490_v0 = vpop.f32.mrf.mxu0 }
  0xf0   : > { %v491_v1 = vadd.f32 %v3173_v15, %v490_v0 }
  0xf2   : > { %v552_v5 = vmax.f32 %v491_v1, 0.0 }
  0xf7   : > { %v492_v2 = vpop.f32.mrf.mxu0 }
  0xf8   : > { %v493_v3 = vadd.f32 %v3173_v15, %v492_v2 }
  0xfa   : > { %v553_v6 = vmax.f32 %v493_v3, 0.0 }
  0xfc   : > { %v578_v7 = vpack.c.bf16 %v553_v6, %v552_v5 }
  0xfe   : > { %2702 = vmatmul.msk.bf16.gmra.mxu1 %vm621_vm1, %v578_v7  ;;  %v525_v7 = vpop.f32.mrf.mxu3 }
  0xff   : > { %v495_v9 = vpop.f32.mrf.mxu0 }
 0x100   : > { %v496_v12 = vadd.f32 %v3173_v15, %v495_v9 }
 0x102   : > { %v554_v16 = vmax.f32 %v496_v12, 0.0 }
 0x107   : > { %v497_v13 = vpop.f32.mrf.mxu0 }
 0x108   : > { %v498_v14 = vadd.f32 %v3173_v15, %v497_v13 }
 0x10a   : > { %v555_v17 = vmax.f32 %v498_v14, 0.0 }
 0x10c   : > { %v579_v18 = vpack.c.bf16 %v555_v17, %v554_v16 }
 0x10e   : > { %2703 = vmatmul.msk.bf16.gmra.mxu1 %vm621_vm1, %v579_v18  ;;  %v527_v18 = vpop.f32.mrf.mxu3 }
 0x10f   : > { %v500_v19 = vpop.f32.mrf.mxu0 }
 0x110   : > { %v501_v20 = vadd.f32 %v3173_v15, %v500_v19 }
 0x112   : > { %v556_v23 = vmax.f32 %v501_v20, 0.0 }
 0x117   : > { %v502_v21 = vpop.f32.mrf.mxu0 }
 0x118   : > { %v503_v22 = vadd.f32 %v3173_v15, %v502_v21 }
 0x11a   : > { %v557_v24 = vmax.f32 %v503_v22, 0.0 }
 0x11b   : > { %v679_v25 = vpop.f32.mrf.mxu1 }
 0x11c   : > { %v580_v26 = vpack.c.bf16 %v557_v24, %v556_v23  ;;  %v680_v29 = vadd.f32 %v3231_v27, %v679_v25  ;;  %v530_v25 = vpop.f32.mrf.mxu3 }
 0x11e   : > { %2704 = vmatmul.msk.bf16.gmra.mxu1 %vm621_vm1, %v580_v26  ;;  %v759_v32 = vmax.f32 %v680_v29, 0.0  ;;  %v526_v26 = vadd.f32 %v3173_v15, %v525_v7 }
 0x11f   : > { %v505_v28 = vpop.f32.mrf.mxu0 }
 0x120   : > { %v506_v33 = vadd.f32 %v3173_v15, %v505_v28  ;;  %v528_v28 = vadd.f32 %v3173_v15, %v527_v18 }
 0x122   : > { %v558_v38 = vmax.f32 %v506_v33, 0.0  ;;  %v567_v33 = vmax.f32 %v528_v28, 0.0 }
 0x123   : > { %v681_v30 = vpop.f32.mrf.mxu1 }
 0x124   : > { %v682_v31 = vadd.f32 %v3231_v27, %v681_v30 }
 0x126   : > { %v760_v34 = vmax.f32 %v682_v31, 0.0 }
 0x127   : > { %v507_v35 = vpop.f32.mrf.mxu0 }
 0x128   : > { %v791_v36 = vpack.c.bf16 %v760_v34, %v759_v32  ;;  %v508_v37 = vadd.f32 %v3173_v15, %v507_v35  ;;  %v566_v32 = vmax.f32 %v526_v26, 0.0 }
 0x12a   : > { %v559_v39 = vmax.f32 %v508_v37, 0.0  ;;  %2728 = vmatmul.msk.bf16.vlgmr.msra.gmra.mxu2 %vm621_vm1, %v791_v36  ;;  %v585_v36 = vpack.c.bf16 %v567_v33, %v566_v32  ;;  %v532_v37 = vpop.f32.mrf.mxu3 }
 0x12b   : > { %v684_v40 = vpop.f32.mrf.mxu1 }
 0x12c   : > { %v581_v41 = vpack.c.bf16 %v559_v39, %v558_v38  ;;  %v685_v43 = vadd.f32 %v3231_v27, %v684_v40  ;;  %v531_v40 = vadd.f32 %v3173_v15, %v530_v25 }
 0x12e   : > { %2705 = vmatmul.msk.bf16.gmra.mxu1 %vm621_vm1, %v581_v41  ;;  %v761_v46 = vmax.f32 %v685_v43, 0.0  ;;  %v533_v41 = vadd.f32 %v3173_v15, %v532_v37 }
 0x12f   : > { %v510_v42 = vpop.f32.mrf.mxu0 }
 0x130   : > { %v511_v47 = vadd.f32 %v3173_v15, %v510_v42 }
 0x132   : > { %v560_v52 = vmax.f32 %v511_v47, 0.0  ;;  %v569_v47 = vmax.f32 %v533_v41, 0.0 }
 0x133   : > { %v686_v44 = vpop.f32.mrf.mxu1 }
 0x134   : > { %v687_v45 = vadd.f32 %v3231_v27, %v686_v44 }
 0x136   : > { %v762_v48 = vmax.f32 %v687_v45, 0.0  ;;  %v535_v45 = vpop.f32.mrf.mxu3 }
 0x137   : > { %v512_v49 = vpop.f32.mrf.mxu0 }
 0x138   : > { %v792_v50 = vpack.c.bf16 %v762_v48, %v761_v46  ;;  %v513_v51 = vadd.f32 %v3173_v15, %v512_v49  ;;  %v568_v46 = vmax.f32 %v531_v40, 0.0 }
 0x13a   : > { %v561_v53 = vmax.f32 %v513_v51, 0.0  ;;  %2729 = vmatmul.msk.bf16.gmra.mxu2 %vm621_vm1, %v792_v50  ;;  %v586_v50 = vpack.c.bf16 %v569_v47, %v568_v46 }
 0x13b   : > { %v689_v54 = vpop.f32.mrf.mxu1 }
 0x13c   : > { %v582_v55 = vpack.c.bf16 %v561_v53, %v560_v52  ;;  %v690_v57 = vadd.f32 %v3231_v27, %v689_v54  ;;  %v536_v54 = vadd.f32 %v3173_v15, %v535_v45 }
 0x13e   : > { %2706 = vmatmul.msk.bf16.gmra.mxu1 %vm621_vm1, %v582_v55  ;;  %v763_v60 = vmax.f32 %v690_v57, 0.0  ;;  %v537_v51 = vpop.f32.mrf.mxu3 }
 0x13f   : > { %v515_v56 = vpop.f32.mrf.mxu0  ;;  %v538_v55 = vadd.f32 %v3173_v15, %v537_v51 }
 0x140   : > { %v516_v61 = vadd.f32 %v3173_v15, %v515_v56 }
 0x142   : > { %v562_v2 = vmax.f32 %v516_v61, 0.0 }
 0x143   : > { %v691_v58 = vpop.f32.mrf.mxu1 }
 0x144   : > { %v692_v59 = vadd.f32 %v3231_v27, %v691_v58 }
 0x146   : > { %v764_v62 = vmax.f32 %v692_v59, 0.0  ;;  %v570_v59 = vmax.f32 %v536_v54, 0.0 }
 0x147   : > { %v517_v63 = vpop.f32.mrf.mxu0 }
 0x148   : > { %v793_v0 = vpack.c.bf16 %v764_v62, %v763_v60  ;;  %v518_v1 = vadd.f32 %v3173_v15, %v517_v63  ;;  %v571_v60 = vmax.f32 %v538_v55, 0.0 }
 0x14a   : > { %v563_v3 = vmax.f32 %v518_v1, 0.0  ;;  %2730 = vmatmul.msk.bf16.gmra.mxu2 %vm621_vm1, %v793_v0  ;;  %v587_v63 = vpack.c.bf16 %v571_v60, %v570_v59 }
 0x14b   : > { %v694_v4 = vpop.f32.mrf.mxu1 }
 0x14c   : > { %v583_v5 = vpack.c.bf16 %v563_v3, %v562_v2  ;;  %v695_v8 = vadd.f32 %v3231_v27, %v694_v4 }
 0x14e   : > { %2707 = vmatmul.msk.bf16.gmra.mxu1 %vm621_vm1, %v583_v5  ;;  %v765_v11 = vmax.f32 %v695_v8, 0.0 }
 0x14f   : > { %v520_v6 = vpop.f32.mrf.mxu0 }
 0x150   : > { %v521_v12 = vadd.f32 %v3173_v15, %v520_v6 }
 0x152   : > { %v564_v19 = vmax.f32 %v521_v12, 0.0  ;;  %v1105_v12 = vlaneseq }
 0x153   : > { %v696_v9 = vpop.f32.mrf.mxu1 }
 0x154   : > { %v697_v10 = vadd.f32 %v3231_v27, %v696_v9 }
 0x156   : > { %v766_v13 = vmax.f32 %v697_v10, 0.0 }
 0x157   : > { %v522_v14 = vpop.f32.mrf.mxu0 }
 0x158   : > { %v794_v16 = vpack.c.bf16 %v766_v13, %v765_v11  ;;  %v523_v17 = vadd.f32 %v3173_v15, %v522_v14  ;;  %v3285_v13 = vld [vmem:[%s4774_s4 + $0x2] ss:$0 sm:$0xff] }
 0x15a   : > { %v565_v20 = vmax.f32 %v523_v17, 0.0  ;;  %2731 = vmatmul.msk.bf16.gmra.mxu2 %vm621_vm1, %v794_v16  ;;  %v3287_v17 = vand.u32 127, %v1105_v12 }
 0x15b   : > { %v699_v21 = vpop.f32.mrf.mxu1 }
 0x15c   : > { %v584_v22 = vpack.c.bf16 %v565_v20, %v564_v19  ;;  %v700_v23 = vadd.f32 %v3231_v27, %v699_v21  ;;  %vm1107_vm3 = vcmp.lt.s32.totalorder %v3287_v17, 6 }
 0x15e   : > { %2708 = vmatmul.msk.bf16.vlgmr.msrb.gmra.mxu3 %vm621_vm1, %v584_v22  ;;  %v767_v30 = vmax.f32 %v700_v23, 0.0 }
 0x163   : > { %v701_v24 = vpop.f32.mrf.mxu1 }
 0x164   : > { %v702_v29 = vadd.f32 %v3231_v27, %v701_v24 }
 0x166   : > { %v768_v31 = vmax.f32 %v702_v29, 0.0 }
 0x168   : > { %v795_v34 = vpack.c.bf16 %v768_v31, %v767_v30 }
 0x16a   : > { %2732 = vmatmul.msk.bf16.gmra.mxu2 %vm621_vm1, %v795_v34 }
 0x16b   : > { %v704_v35 = vpop.f32.mrf.mxu1 }
 0x16c   : > { %v705_v38 = vadd.f32 %v3231_v27, %v704_v35 }
 0x16e   : > { %2709 = vmatmul.msk.bf16.gmra.mxu3 %vm621_vm1, %v585_v36  ;;  %v769_v43 = vmax.f32 %v705_v38, 0.0 }
 0x173   : > { %v706_v39 = vpop.f32.mrf.mxu1 }
 0x174   : > { %v707_v42 = vadd.f32 %v3231_v27, %v706_v39 }
 0x176   : > { %v770_v44 = vmax.f32 %v707_v42, 0.0 }
 0x178   : > { %v796_v48 = vpack.c.bf16 %v770_v44, %v769_v43 }
 0x17a   : > { %2733 = vmatmul.msk.bf16.gmra.mxu2 %vm621_vm1, %v796_v48 }
 0x17b   : > { %v709_v49 = vpop.f32.mrf.mxu1 }
 0x17c   : > { %v710_v52 = vadd.f32 %v3231_v27, %v709_v49 }
 0x17e   : > { %2710 = vmatmul.msk.bf16.gmra.mxu3 %vm621_vm1, %v586_v50  ;;  %v771_v57 = vmax.f32 %v710_v52, 0.0 }
 0x183   : > { %v711_v53 = vpop.f32.mrf.mxu1 }
 0x184   : > { %v712_v56 = vadd.f32 %v3231_v27, %v711_v53 }
 0x186   : > { %v772_v58 = vmax.f32 %v712_v56, 0.0 }
 0x188   : > { %v797_v61 = vpack.c.bf16 %v772_v58, %v771_v57 }
 0x18a   : > { %2734 = vmatmul.msk.bf16.gmra.mxu2 %vm621_vm1, %v797_v61 }
 0x18b   : > { %v714_v62 = vpop.f32.mrf.mxu1 }
 0x18c   : > { %v715_v0 = vadd.f32 %v3231_v27, %v714_v62 }
 0x18e   : > { %2711 = vmatmul.msk.bf16.gmra.mxu3 %vm621_vm1, %v587_v63  ;;  %v773_v3 = vmax.f32 %v715_v0, 0.0 }
 0x193   : > { %v716_v1 = vpop.f32.mrf.mxu1 }
 0x194   : > { %v717_v2 = vadd.f32 %v3231_v27, %v716_v1 }
 0x196   : > { %v774_v15 = vmax.f32 %v717_v2, 0.0 }
 0x198   : > { %v798_v4 = vpack.c.bf16 %v774_v15, %v773_v3 }
 0x19a   : > { %2735 = vmatmul.msk.bf16.gmra.mxu2 %vm621_vm1, %v798_v4 }
 0x19b   : > { %v719_v5 = vpop.f32.mrf.mxu1 }
 0x19c   : > { %v720_v6 = vadd.f32 %v3231_v27, %v719_v5 }
 0x19e   : > { %v775_v9 = vmax.f32 %v720_v6, 0.0 }
 0x1a3   : > { %v721_v7 = vpop.f32.mrf.mxu1 }
 0x1a4   : > { %v722_v8 = vadd.f32 %v3231_v27, %v721_v7 }
 0x1a6   : > { %v776_v10 = vmax.f32 %v722_v8, 0.0 }
 0x1a8   : > { %v799_v11 = vpack.c.bf16 %v776_v10, %v775_v9 }
 0x1aa   : > { %2736 = vmatmul.msk.bf16.gmra.mxu2 %vm621_vm1, %v799_v11 }
 0x1ab   : > { %v724_v14 = vpop.f32.mrf.mxu1 }
 0x1ac   : > { %v725_v20 = vadd.f32 %v3231_v27, %v724_v14 }
 0x1ad   : > { %v897_v16 = vpop.f32.mrf.mxu2 }
 0x1ae   : > { %v898_v18 = vadd.f32 %v3285_v13, %v897_v16  ;;  %v777_v26 = vmax.f32 %v725_v20, 0.0 }
 0x1b0   : > { %vm977_vm2 = vcmp.ne.f32.partialorder %v898_v18, %v898_v18 }
 0x1b1   : > { %v3290_v19 = vsel %vm977_vm2, 0.0, %v898_v18 }
 0x1b2   : > { %v4802_v21 = vclamps-f32 %v3290_v19, 3.4028235e+38 }
 0x1b3   : > { %v726_v22 = vpop.f32.mrf.mxu1 }
 0x1b4   : > { %v727_v23 = vadd.f32 %v3231_v27, %v726_v22  ;;  %v3300_v24 = vsel %vm1107_vm3, %v4802_v21, -inf }
 0x1b5   : > { %v899_v25 = vpop.f32.mrf.mxu2  ;;  %1140 = vmax.xlane.f32.xlu0 %v3300_v24 }
 0x1b6   : > { %v778_v28 = vmax.f32 %v727_v23, 0.0  ;;  %v900_v29 = vadd.f32 %v3285_v13, %v899_v25 }
 0x1b8   : > { %v800_v30 = vpack.c.bf16 %v778_v28, %v777_v26  ;;  %vm978_vm4 = vcmp.ne.f32.partialorder %v900_v29, %v900_v29 }
 0x1b9   : > { %v3304_v31 = vsel %vm978_vm4, 0.0, %v900_v29 }
 0x1ba   : > { %2737 = vmatmul.msk.bf16.gmra.mxu2 %vm621_vm1, %v800_v30  ;;  %v4801_v32 = vclamps-f32 %v3304_v31, 3.4028235e+38 }
 0x1bb   : > { %v729_v33 = vpop.f32.mrf.mxu1 }
 0x1bc   : > { %v3312_v34 = vsel %vm1107_vm3, %v4801_v32, -inf  ;;  %v730_v38 = vadd.f32 %v3231_v27, %v729_v33 }
 0x1bd   : > { %v902_v35 = vpop.f32.mrf.mxu2  ;;  %1142 = vmax.xlane.f32.xlu0 %v3312_v34 }
 0x1be   : > { %v903_v36 = vadd.f32 %v3285_v13, %v902_v35  ;;  %v779_v44 = vmax.f32 %v730_v38, 0.0 }
 0x1c0   : > { %vm979_vm5 = vcmp.ne.f32.partialorder %v903_v36, %v903_v36 }
 0x1c1   : > { %v3316_v37 = vsel %vm979_vm5, 0.0, %v903_v36 }
 0x1c2   : > { %v4800_v39 = vclamps-f32 %v3316_v37, 3.4028235e+38 }
 0x1c3   : > { %v731_v40 = vpop.f32.mrf.mxu1 }
 0x1c4   : > { %v732_v41 = vadd.f32 %v3231_v27, %v731_v40  ;;  %v3325_v42 = vsel %vm1107_vm3, %v4800_v39, -inf  ;;  %v1492_v39 = vld [vmem:[%s3652_s9] sm:$0xff] }
 0x1c5   : > { %v904_v43 = vpop.f32.mrf.mxu2  ;;  %1144 = vmax.xlane.f32.xlu1 %v3325_v42 }
 0x1c6   : > { %v780_v45 = vmax.f32 %v732_v41, 0.0  ;;  %v905_v46 = vadd.f32 %v3285_v13, %v904_v43 }
 0x1c8   : > { %v801_v47 = vpack.c.bf16 %v780_v45, %v779_v44  ;;  %vm980_vm6 = vcmp.ne.f32.partialorder %v905_v46, %v905_v46 }
 0x1c9   : > { %v3329_v48 = vsel %vm980_vm6, 0.0, %v905_v46 }
 0x1ca   : > { %2738 = vmatmul.msk.bf16.gmra.mxu2 %vm621_vm1, %v801_v47  ;;  %v4797_v49 = vclamps-f32 %v3329_v48, 3.4028235e+38 }
 0x1cb   : > { %v734_v50 = vpop.f32.mrf.mxu1 }
 0x1cc   : > { %v3337_v51 = vsel %vm1107_vm3, %v4797_v49, -inf  ;;  %v735_v55 = vadd.f32 %v3231_v27, %v734_v50 }
 0x1cd   : > { %v907_v52 = vpop.f32.mrf.mxu2  ;;  %1146 = vmax.xlane.f32.xlu1 %v3337_v51 }
 0x1ce   : > { %v908_v53 = vadd.f32 %v3285_v13, %v907_v52  ;;  %v781_v61 = vmax.f32 %v735_v55, 0.0 }
 0x1d0   : > { %vm981_vm7 = vcmp.ne.f32.partialorder %v908_v53, %v908_v53 }
 0x1d1   : > { %v3341_v54 = vsel %vm981_vm7, 0.0, %v908_v53 }
 0x1d2   : > { %v4796_v56 = vclamps-f32 %v3341_v54, 3.4028235e+38 }
 0x1d3   : > { %v736_v57 = vpop.f32.mrf.mxu1 }
 0x1d4   : > { %v737_v58 = vadd.f32 %v3231_v27, %v736_v57  ;;  %v3350_v59 = vsel %vm1107_vm3, %v4796_v56, -inf }
 0x1d5   : > { %v909_v60 = vpop.f32.mrf.mxu2  ;;  %1148 = vmax.xlane.f32.xlu2 %v3350_v59 }
 0x1d6   : > { %v782_v62 = vmax.f32 %v737_v58, 0.0  ;;  %v910_v63 = vadd.f32 %v3285_v13, %v909_v60 }
 0x1d8   : > { %v802_v0 = vpack.c.bf16 %v782_v62, %v781_v61  ;;  %vm982_vm8 = vcmp.ne.f32.partialorder %v910_v63, %v910_v63 }
 0x1d9   : > { %v3354_v1 = vsel %vm982_vm8, 0.0, %v910_v63 }
 0x1da   : > { %2739 = vmatmul.msk.bf16.gmra.mxu2 %vm621_vm1, %v802_v0  ;;  %v4794_v2 = vclamps-f32 %v3354_v1, 3.4028235e+38 }
 0x1dc   : > { %v3362_v3 = vsel %vm1107_vm3, %v4794_v2, -inf }
 0x1dd   : > { %v912_v15 = vpop.f32.mrf.mxu2  ;;  %1150 = vmax.xlane.f32.xlu2 %v3362_v3 }
 0x1de   : > { %v913_v4 = vadd.f32 %v3285_v13, %v912_v15 }
 0x1e0   : > { %vm983_vm9 = vcmp.ne.f32.partialorder %v913_v4, %v913_v4 }
 0x1e1   : > { %v3366_v5 = vsel %vm983_vm9, 0.0, %v913_v4  ;;  %v739_v6 = vpop.f32.mrf.mxu3 }
 0x1e2   : > { %v4792_v7 = vclamps-f32 %v3366_v5, 3.4028235e+38  ;;  %v740_v11 = vadd.f32 %v3231_v27, %v739_v6 }
 0x1e4   : > { %v3373_v8 = vsel %vm1107_vm3, %v4792_v7, -inf  ;;  %v783_v20 = vmax.f32 %v740_v11, 0.0 }
 0x1e5   : > { %v914_v9 = vpop.f32.mrf.mxu2  ;;  %1152 = vmax.xlane.f32.xlu0 %v3373_v8 }
 0x1e6   : > { %v915_v10 = vadd.f32 %v3285_v13, %v914_v9 }
 0x1e8   : > { %vm984_vm10 = vcmp.ne.f32.partialorder %v915_v10, %v915_v10 }
 0x1e9   : > { %v3378_v12 = vsel %vm984_vm10, 0.0, %v915_v10  ;;  %v741_v14 = vpop.f32.mrf.mxu3 }
 0x1ea   : > { %v742_v16 = vadd.f32 %v3231_v27, %v741_v14  ;;  %v4791_v18 = vclamps-f32 %v3378_v12, 3.4028235e+38 }
 0x1ec   : > { %v784_v22 = vmax.f32 %v742_v16, 0.0  ;;  %v3386_v23 = vsel %vm1107_vm3, %v4791_v18, -inf }
 0x1ed   : > { %v917_v25 = vpop.f32.mrf.mxu2  ;;  %1154 = vmax.xlane.f32.xlu1 %v3386_v23 }
 0x1ee   : > { %v803_v26 = vpack.c.bf16 %v784_v22, %v783_v20  ;;  %v918_v28 = vadd.f32 %v3285_v13, %v917_v25 }
 0x1f0   : > { %vm985_vm11 = vcmp.ne.f32.partialorder %v918_v28, %v918_v28  ;;  %2740 = vmatmul.msk.bf16.vlgmr.msra.gmra.mxu3 %vm621_vm1, %v803_v26 }
 0x1f1   : > { %v3391_v29 = vsel %vm985_vm11, 0.0, %v918_v28  ;;  %v744_v30 = vpop.f32.mrf.mxu3 }
 0x1f2   : > { %v4789_v33 = vclamps-f32 %v3391_v29, 3.4028235e+38  ;;  %v745_v40 = vadd.f32 %v3231_v27, %v744_v30 }
 0x1f4   : > { %v3398_v35 = vsel %vm1107_vm3, %v4789_v33, -inf  ;;  %v785_v46 = vmax.f32 %v745_v40, 0.0 }
 0x1f5   : > { %v919_v36 = vpop.f32.mrf.mxu2  ;;  %1156 = vmax.xlane.f32.xlu2 %v3398_v35 }
 0x1f6   : > { %v920_v38 = vadd.f32 %v3285_v13, %v919_v36 }
 0x1f8   : > { %vm986_vm12 = vcmp.ne.f32.partialorder %v920_v38, %v920_v38 }
 0x1f9   : > { %v3403_v41 = vsel %vm986_vm12, 0.0, %v920_v38  ;;  %v746_v43 = vpop.f32.mrf.mxu3 }
 0x1fa   : > { %v747_v44 = vadd.f32 %v3231_v27, %v746_v43  ;;  %v4788_v45 = vclamps-f32 %v3403_v41, 3.4028235e+38 }
 0x1fc   : > { %v786_v47 = vmax.f32 %v747_v44, 0.0  ;;  %v3411_v50 = vsel %vm1107_vm3, %v4788_v45, -inf }
 0x1fd   : > { %v922_v52 = vpop.f32.mrf.mxu2  ;;  %1158 = vmax.xlane.f32.xlu0 %v3411_v50 }
 0x1fe   : > { %v804_v53 = vpack.c.bf16 %v786_v47, %v785_v46  ;;  %v923_v55 = vadd.f32 %v3285_v13, %v922_v52 }
 0x200   : > { %vm987_vm13 = vcmp.ne.f32.partialorder %v923_v55, %v923_v55  ;;  %2741 = vmatmul.msk.bf16.gmra.mxu3 %vm621_vm1, %v804_v53 }
 0x201   : > { %v3416_v57 = vsel %vm987_vm13, 0.0, %v923_v55  ;;  %v749_v58 = vpop.f32.mrf.mxu3 }
 0x202   : > { %v4786_v60 = vclamps-f32 %v3416_v57, 3.4028235e+38  ;;  %v750_v0 = vadd.f32 %v3231_v27, %v749_v58 }
 0x204   : > { %v3423_v61 = vsel %vm1107_vm3, %v4786_v60, -inf  ;;  %v787_v10 = vmax.f32 %v750_v0, 0.0 }
 0x205   : > { %v924_v62 = vpop.f32.mrf.mxu2  ;;  %1160 = vmax.xlane.f32.xlu1 %v3423_v61 }
 0x206   : > { %v925_v63 = vadd.f32 %v3285_v13, %v924_v62 }
 0x208   : > { %vm988_vm14 = vcmp.ne.f32.partialorder %v925_v63, %v925_v63 }
 0x209   : > { %v3428_v15 = vsel %vm988_vm14, 0.0, %v925_v63  ;;  %v751_v4 = vpop.f32.mrf.mxu3 }
 0x20a   : > { %v752_v6 = vadd.f32 %v3231_v27, %v751_v4  ;;  %v4785_v9 = vclamps-f32 %v3428_v15, 3.4028235e+38 }
 0x20c   : > { %v788_v11 = vmax.f32 %v752_v6, 0.0  ;;  %v3436_v14 = vsel %vm1107_vm3, %v4785_v9, -inf }
 0x20d   : > { %v927_v16 = vpop.f32.mrf.mxu2  ;;  %1162 = vmax.xlane.f32.xlu2 %v3436_v14 }
 0x20e   : > { %v805_v20 = vpack.c.bf16 %v788_v11, %v787_v10  ;;  %v928_v22 = vadd.f32 %v3285_v13, %v927_v16 }
 0x210   : > { %vm989_vm15 = vcmp.ne.f32.partialorder %v928_v22, %v928_v22  ;;  %2742 = vmatmul.msk.bf16.gmra.mxu3 %vm621_vm1, %v805_v20 }
 0x211   : > { %v3441_v25 = vsel %vm989_vm15, 0.0, %v928_v22  ;;  %v754_v26 = vpop.f32.mrf.mxu3 }
 0x212   : > { %v4783_v28 = vclamps-f32 %v3441_v25, 3.4028235e+38  ;;  %v755_v40 = vadd.f32 %v3231_v27, %v754_v26 }
 0x214   : > { %v3448_v30 = vsel %vm1107_vm3, %v4783_v28, -inf  ;;  %v789_v52 = vmax.f32 %v755_v40, 0.0 }
 0x215   : > { %v929_v36 = vpop.f32.mrf.mxu2  ;;  %1164 = vmax.xlane.f32.xlu0 %v3448_v30 }
 0x216   : > { %v930_v38 = vadd.f32 %v3285_v13, %v929_v36 }
 0x218   : > { %vm990_vm0 = vcmp.ne.f32.partialorder %v930_v38, %v930_v38 }
 0x219   : > { %v3453_v43 = vsel %vm990_vm0, 0.0, %v930_v38  ;;  %v756_v44 = vpop.f32.mrf.mxu3 }
 0x21a   : > { %v757_v46 = vadd.f32 %v3231_v27, %v756_v44  ;;  %v4782_v47 = vclamps-f32 %v3453_v43, 3.4028235e+38 }
 0x21c   : > { %v790_v53 = vmax.f32 %v757_v46, 0.0  ;;  %v3461_v55 = vsel %vm1107_vm3, %v4782_v47, -inf }
 0x21d   : > { %v932_v58 = vpop.f32.mrf.mxu2  ;;  %1166 = vmax.xlane.f32.xlu1 %v3461_v55 }
 0x21e   : > { %v806_v62 = vpack.c.bf16 %v790_v53, %v789_v52  ;;  %v933_v63 = vadd.f32 %v3285_v13, %v932_v58 }
 0x220   : > { %vm991_vm2 = vcmp.ne.f32.partialorder %v933_v63, %v933_v63  ;;  %2743 = vmatmul.msk.bf16.gmra.mxu3 %vm621_vm1, %v806_v62 }
 0x221   : > { %v3466_v27 = vsel %vm991_vm2, 0.0, %v933_v63 }
 0x222   : > { %v4780_v0 = vclamps-f32 %v3466_v27, 3.4028235e+38 }
 0x224   : > { %v3473_v4 = vsel %vm1107_vm3, %v4780_v0, -inf }
 0x225   : > { %v934_v6 = vpop.f32.mrf.mxu2  ;;  %1168 = vmax.xlane.f32.xlu2 %v3473_v4 }
 0x226   : > { %v935_v10 = vadd.f32 %v3285_v13, %v934_v6 }
 0x228   : > { %vm992_vm4 = vcmp.ne.f32.partialorder %v935_v10, %v935_v10  ;;  %v3477_v11 = vpop.xlane.xlu0 %1140 }
 0x229   : > { %v3479_v16 = vsel %vm992_vm4, 0.0, %v935_v10  ;;  %v1204_v20 = vsub.f32 %v3300_v24, %v3477_v11 }
 0x22a   : > { %4860 = vst [vmem:[#allocation2_spill] sm:$0xff] %v3479_v16  ;;  %v4779_v22 = vclamps-f32 %v3479_v16, 3.4028235e+38 }
 0x22b   : > { %v1236_v26 = vmul.f32 1.442695, %v1204_v20 }
 0x22c   : > { %v3488_v36 = vsel %vm1107_vm3, %v4779_v22, -inf }
 0x22d   : > { %2823 = vpow2.f32 %v1236_v26  ;;  %v937_v38 = vpop.f32.mrf.mxu2  ;;  %1170 = vmax.xlane.f32.xlu0 %v3488_v36 }
 0x22e   : > { %v938_v40 = vadd.f32 %v3285_v13, %v937_v38 }
 0x230   : > { %vm993_vm1 = vcmp.ne.f32.partialorder %v938_v40, %v938_v40  ;;  %v3492_v44 = vpop.xlane.xlu0 %1142 }
 0x231   : > { %v3494_v46 = vsel %vm993_vm1, 0.0, %v938_v40  ;;  %v1205_v24 = vsub.f32 %v3312_v34, %v3492_v44 }
 0x232   : > { %4861 = vst [vmem:[#allocation3_spill] sm:$0xff] %v3494_v46  ;;  %v4777_v52 = vclamps-f32 %v3494_v46, 3.4028235e+38 }
 0x233   : > { %v2824_v53 = vpop.eup %2823  ;;  %v1238_v58 = vmul.f32 1.442695, %v1205_v24 }
 0x234   : > { %1300 = vadd.xlane.f32.xlu2 %v2824_v53  ;;  %v3503_v62 = vsel %vm1107_vm3, %v4777_v52, -inf }
 0x235   : > { %2825 = vpow2.f32 %v1238_v58  ;;  %v939_v63 = vpop.f32.mrf.mxu2  ;;  %1172 = vmax.xlane.f32.xlu1 %v3503_v62 }
 0x236   : > { %v940_v6 = vadd.f32 %v3285_v13, %v939_v63 }
 0x238   : > { %vm994_vm5 = vcmp.ne.f32.partialorder %v940_v6, %v940_v6  ;;  %v3507_v10 = vpop.xlane.xlu1 %1144 }
 0x239   : > { %v3509_v34 = vsel %vm994_vm5, 0.0, %v940_v6  ;;  %v1206_v20 = vsub.f32 %v3325_v42, %v3507_v10 }
 0x23a   : > { %4862 = vst [vmem:[#allocation4_spill] sm:$0xff] %v3509_v34  ;;  %v4778_v26 = vclamps-f32 %v3509_v34, 3.4028235e+38 }
 0x23b   : > { %v2826_v38 = vpop.eup %2825  ;;  %v1240_v40 = vmul.f32 1.442695, %v1206_v20 }
 0x23c   : > { %1302 = vadd.xlane.f32.xlu0 %v2826_v38  ;;  %v3518_v24 = vsel %vm1107_vm3, %v4778_v26, -inf }
 0x23d   : > { %2827 = vpow2.f32 %v1240_v40  ;;  %v942_v53 = vpop.f32.mrf.mxu2  ;;  %1174 = vmax.xlane.f32.xlu2 %v3518_v24 }
 0x23e   : > { %v943_v58 = vadd.f32 %v3285_v13, %v942_v53 }
 0x240   : > { %vm995_vm6 = vcmp.ne.f32.partialorder %v943_v58, %v943_v58  ;;  %v3522_v63 = vpop.xlane.xlu1 %1146 }
 0x241   : > { %v3524_v42 = vsel %vm995_vm6, 0.0, %v943_v58  ;;  %v1207_v6 = vsub.f32 %v3337_v51, %v3522_v63 }
 0x242   : > { %4863 = vst [vmem:[#allocation5_spill] sm:$0xff] %v3524_v42  ;;  %v4781_v20 = vclamps-f32 %v3524_v42, 3.4028235e+38 }
 0x243   : > { %v2828_v38 = vpop.eup %2827  ;;  %v1242_v52 = vmul.f32 1.442695, %v1207_v6 }
 0x244   : > { %1304 = vadd.xlane.f32.xlu1 %v2828_v38  ;;  %v3533_v40 = vsel %vm1107_vm3, %v4781_v20, -inf }
 0x245   : > { %2829 = vpow2.f32 %v1242_v52  ;;  %v944_v53 = vpop.f32.mrf.mxu2  ;;  %1176 = vmax.xlane.f32.xlu0 %v3533_v40 }
 0x246   : > { %v945_v58 = vadd.f32 %v3285_v13, %v944_v53 }
 0x248   : > { %vm996_vm7 = vcmp.ne.f32.partialorder %v945_v58, %v945_v58  ;;  %v3537_v26 = vpop.xlane.xlu2 %1148 }
 0x249   : > { %v3539_v51 = vsel %vm996_vm7, 0.0, %v945_v58  ;;  %v1208_v6 = vsub.f32 %v3350_v59, %v3537_v26 }
 0x24a   : > { %4864 = vst [vmem:[#allocation6_spill] sm:$0xff] %v3539_v51  ;;  %v4784_v38 = vclamps-f32 %v3539_v51, 3.4028235e+38 }
 0x24b   : > { %v2830_v22 = vpop.eup %2829  ;;  %v1244_v0 = vmul.f32 1.442695, %v1208_v6 }
 0x24c   : > { %1306 = vadd.xlane.f32.xlu2 %v2830_v22  ;;  %v3548_v52 = vsel %vm1107_vm3, %v4784_v38, -inf }
 0x24d   : > { %2831 = vpow2.f32 %v1244_v0  ;;  %v947_v53 = vpop.f32.mrf.mxu2  ;;  %1178 = vmax.xlane.f32.xlu1 %v3548_v52 }
 0x24e   : > { %v948_v58 = vadd.f32 %v3285_v13, %v947_v53 }
 0x250   : > { %vm997_vm8 = vcmp.ne.f32.partialorder %v948_v58, %v948_v58  ;;  %v3552_v20 = vpop.xlane.xlu2 %1150 }
 0x251   : > { %v3554_v59 = vsel %vm997_vm8, 0.0, %v948_v58  ;;  %v1209_v22 = vsub.f32 %v3362_v3, %v3552_v20 }
 0x252   : > { %4865 = vst [vmem:[#allocation7_spill] sm:$0xff] %v3554_v59  ;;  %v4787_v6 = vclamps-f32 %v3554_v59, 3.4028235e+38 }
 0x253   : > { %v2832_v47 = vpop.eup %2831  ;;  %v1246_v28 = vmul.f32 1.442695, %v1209_v22 }
 0x254   : > { %1308 = vadd.xlane.f32.xlu0 %v2832_v47  ;;  %v3563_v0 = vsel %vm1107_vm3, %v4787_v6, -inf }
 0x255   : > { %2833 = vpow2.f32 %v1246_v28  ;;  %v949_v53 = vpop.f32.mrf.mxu2  ;;  %1180 = vmax.xlane.f32.xlu2 %v3563_v0 }
 0x256   : > { %v950_v58 = vadd.f32 %v3285_v13, %v949_v53 }
 0x258   : > { %vm998_vm9 = vcmp.ne.f32.partialorder %v950_v58, %v950_v58  ;;  %v3567_v38 = vpop.xlane.xlu0 %1152 }
 0x259   : > { %v3569_v3 = vsel %vm998_vm9, 0.0, %v950_v58  ;;  %v1210_v47 = vsub.f32 %v3373_v8, %v3567_v38 }
 0x25a   : > { %4866 = vst [vmem:[#allocation8_spill] sm:$0xff] %v3569_v3  ;;  %v4790_v22 = vclamps-f32 %v3569_v3, 3.4028235e+38 }
 0x25b   : > { %v2834_v9 = vpop.eup %2833  ;;  %v1248_v60 = vmul.f32 1.442695, %v1210_v47 }
 0x25c   : > { %1310 = vadd.xlane.f32.xlu1 %v2834_v9  ;;  %v3578_v28 = vsel %vm1107_vm3, %v4790_v22, -inf }
 0x25d   : > { %2835 = vpow2.f32 %v1248_v60  ;;  %v952_v53 = vpop.f32.mrf.mxu2  ;;  %1182 = vmax.xlane.f32.xlu0 %v3578_v28 }
 0x25e   : > { %v953_v58 = vadd.f32 %v3285_v13, %v952_v53 }
 0x260   : > { %vm999_vm10 = vcmp.ne.f32.partialorder %v953_v58, %v953_v58  ;;  %v3582_v6 = vpop.xlane.xlu1 %1154 }
 0x261   : > { %v3584_v8 = vsel %vm999_vm10, 0.0, %v953_v58  ;;  %v1211_v9 = vsub.f32 %v3386_v23, %v3582_v6 }
 0x262   : > { %4867 = vst [vmem:[#allocation9_spill] sm:$0xff] %v3584_v8  ;;  %v4793_v47 = vclamps-f32 %v3584_v8, 3.4028235e+38 }
 0x263   : > { %v2836_v45 = vpop.eup %2835  ;;  %v1250_v33 = vmul.f32 1.442695, %v1211_v9 }
 0x264   : > { %1312 = vadd.xlane.f32.xlu2 %v2836_v45  ;;  %v3593_v60 = vsel %vm1107_vm3, %v4793_v47, -inf }
 0x265   : > { %2837 = vpow2.f32 %v1250_v33  ;;  %v954_v53 = vpop.f32.mrf.mxu2  ;;  %1184 = vmax.xlane.f32.xlu1 %v3593_v60 }
 0x266   : > { %v955_v58 = vadd.f32 %v3285_v13, %v954_v53 }
 0x268   : > { %vm1000_vm11 = vcmp.ne.f32.partialorder %v955_v58, %v955_v58  ;;  %v3597_v22 = vpop.xlane.xlu2 %1156 }
 0x269   : > { %v3599_v23 = vsel %vm1000_vm11, 0.0, %v955_v58  ;;  %v1212_v45 = vsub.f32 %v3398_v35, %v3597_v22 }
 0x26a   : > { %4868 = vst [vmem:[#allocation10_spill] sm:$0xff] %v3599_v23  ;;  %v4795_v9 = vclamps-f32 %v3599_v23, 3.4028235e+38 }
 0x26b   : > { %v2838_v18 = vpop.eup %2837  ;;  %v1252_v7 = vmul.f32 1.442695, %v1212_v45 }
 0x26c   : > { %1314 = vadd.xlane.f32.xlu0 %v2838_v18  ;;  %v3608_v33 = vsel %vm1107_vm3, %v4795_v9, -inf }
 0x26d   : > { %2839 = vpow2.f32 %v1252_v7  ;;  %1186 = vmax.xlane.f32.xlu2 %v3608_v33 }
 0x270   : > { %v3611_v53 = vpop.xlane.xlu0 %1158 }
 0x271   : > { %v1213_v58 = vsub.f32 %v3411_v50, %v3611_v53 }
 0x273   : > { %v2840_v35 = vpop.eup %2839  ;;  %v1254_v47 = vmul.f32 1.442695, %v1213_v58  ;;  %v957_v2 = vpop.f32.mrf.mxu3 }
 0x274   : > { %v958_v45 = vadd.f32 %v3285_v13, %v957_v2  ;;  %1316 = vadd.xlane.f32.xlu1 %v2840_v35 }
 0x275   : > { %2841 = vpow2.f32 %v1254_v47 }
 0x276   : > { %vm1001_vm12 = vcmp.ne.f32.partialorder %v958_v45, %v958_v45 }
 0x277   : > { %v3616_v18 = vsel %vm1001_vm12, 0.0, %v958_v45 }
 0x278   : > { %4869 = vst [vmem:[#allocation11_spill] sm:$0xff] %v3616_v18  ;;  %v3618_v9 = vpop.xlane.xlu1 %1160  ;;  %v4798_v7 = vclamps-f32 %v3616_v18, 3.4028235e+38  ;;  %v1493_v18 = vld [vmem:[%s3652_s9 + $0x8] sm:$0xff] }
 0x279   : > { %v1214_v56 = vsub.f32 %v3423_v61, %v3618_v9  ;;  %v1525_v8 = vmax.f32 %v1493_v18, 1e-07 }
 0x27a   : > { %v3627_v50 = vsel %vm1107_vm3, %v4798_v7, -inf }
 0x27b   : > { %v2842_v2 = vpop.eup %2841  ;;  %v1256_v58 = vmul.f32 1.442695, %v1214_v56  ;;  %v959_v47 = vpop.f32.mrf.mxu3  ;;  %1188 = vmax.xlane.f32.xlu0 %v3627_v50 }
 0x27c   : > { %v960_v35 = vadd.f32 %v3285_v13, %v959_v47  ;;  %1318 = vadd.xlane.f32.xlu2 %v2842_v2 }
 0x27d   : > { %2843 = vpow2.f32 %v1256_v58 }
 0x27e   : > { %vm1002_vm13 = vcmp.ne.f32.partialorder %v960_v35, %v960_v35 }
 0x27f   : > { %v3631_v45 = vsel %vm1002_vm13, 0.0, %v960_v35 }
 0x280   : > { %4870 = vst [vmem:[#allocation12_spill] sm:$0xff] %v3631_v45  ;;  %v3633_v61 = vpop.xlane.xlu2 %1162  ;;  %v4799_v49 = vclamps-f32 %v3631_v45, 3.4028235e+38 }
 0x281   : > { %v1215_v7 = vsub.f32 %v3436_v14, %v3633_v61 }
 0x282   : > { %v3643_v56 = vsel %vm1107_vm3, %v4799_v49, -inf }
 0x283   : > { %v2844_v47 = vpop.eup %2843  ;;  %v1258_v2 = vmul.f32 1.442695, %v1215_v7  ;;  %v962_v58 = vpop.f32.mrf.mxu3  ;;  %1190 = vmax.xlane.f32.xlu1 %v3643_v56 }
 0x284   : > { %v963_v35 = vadd.f32 %v3285_v13, %v962_v58  ;;  %1320 = vadd.xlane.f32.xlu0 %v2844_v47 }
 0x285   : > { %2845 = vpow2.f32 %v1258_v2 }
 0x286   : > { %vm1003_vm14 = vcmp.ne.f32.partialorder %v963_v35, %v963_v35 }
 0x287   : > { %v3654_v14 = vsel %vm1003_vm14, 0.0, %v963_v35  ;;  %v1524_v35 = vmax.f32 %v1492_v39, 1e-07 }
 0x288   : > { %4871 = vst [vmem:[#allocation13_spill] sm:$0xff] %v3654_v14  ;;  %v3656_v49 = vpop.xlane.xlu0 %1164  ;;  %v4807_v7 = vclamps-f32 %v3654_v14, 3.4028235e+38 }
 0x289   : > { %v1216_v47 = vsub.f32 %v3448_v30, %v3656_v49  ;;  %v1556_v30 = vmin.f32 %v1524_v35, 0.9999999  ;;  %v1557_v35 = vmin.f32 %v1525_v8, 0.9999999 }
 0x28a   : > { %v3666_v58 = vsel %vm1107_vm3, %v4807_v7, -inf }
 0x28b   : > { %v2846_v32 = vpop.eup %2845  ;;  %v1260_v2 = vmul.f32 1.442695, %v1216_v47  ;;  %v964_v21 = vpop.f32.mrf.mxu3  ;;  %1192 = vmax.xlane.f32.xlu2 %v3666_v58 }
 0x28c   : > { %v965_v45 = vadd.f32 %v3285_v13, %v964_v21  ;;  %1322 = vadd.xlane.f32.xlu1 %v2846_v32 }
 0x28d   : > { %2847 = vpow2.f32 %v1260_v2 }
 0x28e   : > { %vm1004_vm15 = vcmp.ne.f32.partialorder %v965_v45, %v965_v45  ;;  %2849 = vlog2.f32 %v1556_v30 }
 0x28f   : > { %v3671_v23 = vsel %vm1004_vm15, 0.0, %v965_v45 }
 0x290   : > { %4872 = vst [vmem:[#allocation14_spill] sm:$0xff] %v3671_v23  ;;  %v3673_v14 = vpop.xlane.xlu1 %1166  ;;  %v4810_v7 = vclamps-f32 %v3671_v23, 3.4028235e+38 }
 0x291   : > { %v1217_v47 = vsub.f32 %v3461_v55, %v3673_v14  ;;  %v1494_v55 = vld [vmem:[%s3652_s9 + $0x10] sm:$0xff] }
 0x292   : > { %v3682_v21 = vsel %vm1107_vm3, %v4810_v7, -inf  ;;  %v1526_v30 = vmax.f32 %v1494_v55, 1e-07 }
 0x293   : > { %v2848_v32 = vpop.eup %2847  ;;  %v1262_v39 = vmul.f32 1.442695, %v1217_v47  ;;  %v967_v45 = vpop.f32.mrf.mxu3  ;;  %1194 = vmax.xlane.f32.xlu0 %v3682_v21 }
 0x294   : > { %v968_v2 = vadd.f32 %v3285_v13, %v967_v45  ;;  %1324 = vadd.xlane.f32.xlu2 %v2848_v32  ;;  %v2850_v3 = vpop.eup %2849  ;;  %v1558_v51 = vmin.f32 %v1526_v30, 0.9999999 }
 0x295   : > { %2851 = vpow2.f32 %v1262_v39  ;;  %v1589_v59 = vmul.f32 0.6931472, %v2850_v3 }
 0x296   : > { %vm1005_vm0 = vcmp.ne.f32.partialorder %v968_v2, %v968_v2  ;;  %2853 = vlog2.f32 %v1557_v35 }
 0x297   : > { %v3687_v18 = vsel %vm1005_vm0, 0.0, %v968_v2  ;;  %v1652_v42 = vsub.f32 0.0, %v1589_v59 }
 0x298   : > { %4873 = vst [vmem:[#allocation15_spill] sm:$0xff] %v3687_v18  ;;  %v3689_v23 = vpop.xlane.xlu2 %1168  ;;  %v4815_v7 = vclamps-f32 %v3687_v18, 3.4028235e+38 }
 0x299   : > { %v1218_v47 = vsub.f32 %v3473_v4, %v3689_v23  ;;  %v1495_v4 = vld [vmem:[%s3652_s9 + $0x18] sm:$0xff] }
 0x29a   : > { %v3698_v8 = vsel %vm1107_vm3, %v4815_v7, -inf }
 0x29b   : > { %v2852_v32 = vpop.eup %2851  ;;  %v1264_v39 = vmul.f32 1.442695, %v1218_v47  ;;  %v969_v45 = vpop.f32.mrf.mxu3  ;;  %1196 = vmax.xlane.f32.xlu1 %v3698_v8 }
 0x29c   : > { %v970_v2 = vadd.f32 %v3285_v13, %v969_v45  ;;  %1326 = vadd.xlane.f32.xlu0 %v2852_v32  ;;  %v2854_v35 = vpop.eup %2853  ;;  %v1527_v45 = vmax.f32 %v1495_v4, 1e-07  ;;  %v1496_v4 = vld [vmem:[%s3652_s9 + $0x20] sm:$0xff] }
 0x29d   : > { %2855 = vpow2.f32 %v1264_v39  ;;  %v1591_v30 = vmul.f32 0.6931472, %v2854_v35 }
 0x29e   : > { %vm1006_vm2 = vcmp.ne.f32.partialorder %v970_v2, %v970_v2  ;;  %2857 = vlog2.f32 %v1558_v51 }
 0x29f   : > { %v3703_v55 = vsel %vm1006_vm2, 0.0, %v970_v2  ;;  %2859 = vlog2.f32 %v1652_v42  ;;  %v1653_v51 = vsub.f32 0.0, %v1591_v30 }
 0x2a0   : > { %4874 = vst [vmem:[#allocation16_spill] sm:$0xff] %v3703_v55  ;;  %v3705_v18 = vpop.xlane.xlu0 %1170  ;;  %v4819_v7 = vclamps-f32 %v3703_v55, 3.4028235e+38 }
 0x2a1   : > { %4875 = vst [vmem:[#allocation17_spill] sm:$0xff] %v3705_v18  ;;  %v1219_v47 = vsub.f32 %v3488_v36, %v3705_v18  ;;  %v1559_v36 = vmin.f32 %v1527_v45, 0.9999999 }
 0x2a2   : > { %v3714_v3 = vsel %vm1107_vm3, %v4819_v7, -inf }
 0x2a3   : > { %v2856_v32 = vpop.eup %2855  ;;  %v1266_v39 = vmul.f32 1.442695, %v1219_v47  ;;  %v972_v2 = vpop.f32.mrf.mxu3  ;;  %1198 = vmax.xlane.f32.xlu2 %v3714_v3 }
 0x2a4   : > { %v973_v59 = vadd.f32 %v3285_v13, %v972_v2  ;;  %1328 = vadd.xlane.f32.xlu1 %v2856_v32  ;;  %v2858_v55 = vpop.eup %2857  ;;  %v1528_v32 = vmax.f32 %v1496_v4, 1e-07 }
 0x2a5   : > { %2861 = vpow2.f32 %v1266_v39  ;;  %v2860_v42 = vpop.eup %2859  ;;  %v1593_v30 = vmul.f32 0.6931472, %v2858_v55 }
 0x2a6   : > { %vm1007_vm4 = vcmp.ne.f32.partialorder %v973_v59, %v973_v59 }
 0x2a7   : > { %v3719_v34 = vsel %vm1007_vm4, 0.0, %v973_v59  ;;  %v1301_v7 = vpop.xlane.xlu2 %1300 }
 0x2a8   : > { %4876 = vst [vmem:[#allocation18_spill] sm:$0xff] %v3719_v34  ;;  %2863 = vlog2.f32 %v1301_v7  ;;  %v3721_v35 = vpop.xlane.xlu1 %1172  ;;  %v4824_v47 = vclamps-f32 %v3719_v34, 3.4028235e+38  ;;  %v1654_v34 = vsub.f32 0.0, %v1593_v30 }
 0x2a9   : > { %4877 = vst [vmem:[#allocation19_spill] sm:$0xff] %v3721_v35  ;;  %v1220_v46 = vsub.f32 %v3503_v62, %v3721_v35  ;;  %2865 = vlog2.f32 %v1559_v36  ;;  %v1685_v62 = vmul.f32 0.6931472, %v2860_v42  ;;  %v1560_v36 = vmin.f32 %v1528_v32, 0.9999999  ;;  %v1497_v35 = vld [vmem:[%s3652_s9 + $0x28] sm:$0xff] }
 0x2aa   : > { %v3730_v45 = vsel %vm1107_vm3, %v4824_v47, -inf  ;;  %2867 = vlog2.f32 %v1653_v51  ;;  %v1529_v42 = vmax.f32 %v1497_v35, 1e-07 }
 0x2ab   : > { %4878 = vst [vmem:[#allocation20_spill] sm:$0xff] %v3730_v45  ;;  %v2862_v7 = vpop.eup %2861  ;;  %v1268_v39 = vmul.f32 1.442695, %v1220_v46  ;;  %v974_v2 = vpop.f32.mrf.mxu3  ;;  %1200 = vmax.xlane.f32.xlu0 %v3730_v45  ;;  %v4880_v46 = vclamps-f32 %v3290_v19, 3.4028235e+38  ;;  %v1748_v32 = vsub.f32 0.0, %v1685_v62 }
 0x2ac   : > { %v975_v59 = vadd.f32 %v3285_v13, %v974_v2  ;;  %1330 = vadd.xlane.f32.xlu2 %v2862_v7  ;;  %v1561_v62 = vmin.f32 %v1529_v42, 0.9999999 }
 0x2ad   : > { %2869 = vpow2.f32 %v1268_v39  ;;  %v1364_v45 = vsub.f32 %v4880_v46, %v3477_v11 }
 0x2ae   : > { %v2864_v4 = vpop.eup %2863  ;;  %vm1008_vm1 = vcmp.ne.f32.partialorder %v975_v59, %v975_v59 }
 0x2af   : > { %v2866_v16 = vpop.eup %2865  ;;  %v1397_v47 = vmul.f32 0.6931472, %v2864_v4  ;;  %v3735_v18 = vsel %vm1008_vm1, 0.0, %v975_v59  ;;  %v1303_v55 = vpop.xlane.xlu0 %1302 }
 0x2b0   : > { %4879 = vst [vmem:[#allocation21_spill] sm:$0xff] %v3735_v18  ;;  %v2868_v51 = vpop.eup %2867  ;;  %2871 = vlog2.f32 %v1303_v55  ;;  %v4827_v13 = vclamps-f32 %v3735_v18, 3.4028235e+38  ;;  %v3741_v7 = vpop.xlane.xlu2 %1174  ;;  %v1595_v19 = vmul.f32 0.6931472, %v2866_v16 }
 0x2b1   : > { %2873 = vlog2.f32 %v1560_v36  ;;  %v3743_v30 = vsub.f32 %v1364_v45, %v1397_v47  ;;  %v1687_v2 = vmul.f32 0.6931472, %v2868_v51  ;;  %v1221_v59 = vsub.f32 %v3518_v24, %v3741_v7  ;;  %v1498_v36 = vld [vmem:[%s3652_s9 + $0x30] sm:$0xff] }
 0x2b2   : > { %v3749_v39 = vsel %vm1107_vm3, %v4827_v13, -inf  ;;  %2875 = vlog2.f32 %v1654_v34  ;;  %v1655_v45 = vsub.f32 0.0, %v1595_v19  ;;  %v4883_v55 = vclamps-f32 %v3304_v31, 3.4028235e+38 }
 0x2b3   : > { %4881 = vst [vmem:[#allocation22_spill] sm:$0xff] %v3743_v30  ;;  %v2870_v11 = vpop.eup %2869  ;;  %1202 = vmax.xlane.f32.xlu1 %v3749_v39  ;;  %v1780_v47 = vadd.f32 %v1748_v32, %v3743_v30  ;;  %v1749_v13 = vsub.f32 0.0, %v1687_v2  ;;  %v1270_v51 = vmul.f32 1.442695, %v1221_v59  ;;  %v1530_v42 = vmax.f32 %v1498_v36, 1e-07 }
 0x2b4   : > { %4882 = vst [vmem:[#allocation23_spill] sm:$0xff] %v3749_v39  ;;  %1332 = vadd.xlane.f32.xlu0 %v2870_v11  ;;  %v1365_v34 = vsub.f32 %v4883_v55, %v3492_v44 }
 0x2b5   : > { %v3767_v31 = vsel %vm1107_vm3, %v1780_v47, -inf  ;;  %v1499_v47 = vld [vmem:[%s3652_s9 + $0x38] sm:$0xff] }
 0x2b6   : > { %v2872_v35 = vpop.eup %2871 }
 0x2b7   : > { %v2874_v4 = vpop.eup %2873  ;;  %v1399_v16 = vmul.f32 0.6931472, %v2872_v35  ;;  %v1305_v46 = vpop.xlane.xlu1 %1304 }
 0x2b8   : > { %v2876_v18 = vpop.eup %2875  ;;  %2877 = vlog2.f32 %v1305_v46  ;;  %v3759_v39 = vpop.xlane.xlu0 %1176  ;;  %v1597_v44 = vmul.f32 0.6931472, %v2874_v4 }
 0x2b9   : > { %v3761_v24 = vsub.f32 %v1365_v34, %v1399_v16  ;;  %v1222_v32 = vsub.f32 %v3533_v40, %v3759_v39  ;;  %2879 = vlog2.f32 %v1561_v62  ;;  %v1689_v2 = vmul.f32 0.6931472, %v2876_v18 }
 0x2ba   : > { %2881 = vlog2.f32 %v1655_v45  ;;  %v1562_v40 = vmin.f32 %v1530_v42, 0.9999999  ;;  %v1656_v35 = vsub.f32 0.0, %v1597_v44  ;;  %v4885_v45 = vclamps-f32 %v3316_v37, 3.4028235e+38 }
 0x2bb   : > { %4884 = vst [vmem:[#allocation24_spill] sm:$0xff] %v3761_v24  ;;  %v1272_v19 = vmul.f32 1.442695, %v1222_v32  ;;  %1844 = vmax.xlane.f32.xlu1 %v3767_v31  ;;  %v1781_v11 = vadd.f32 %v1749_v13, %v3761_v24  ;;  %2883 = vpow2.f32 %v1270_v51  ;;  %v1750_v18 = vsub.f32 0.0, %v1689_v2 }
 0x2bc   : > { %v1366_v4 = vsub.f32 %v4885_v45, %v3507_v10  ;;  %v1531_v32 = vmax.f32 %v1499_v47, 1e-07 }
 0x2bd   : > { %v3773_v59 = vsel %vm1107_vm3, %v1781_v11, -inf  ;;  %2885 = vpow2.f32 %v1272_v19 }
 0x2be   : > { %v2878_v62 = vpop.eup %2877  ;;  %1846 = vmax.xlane.f32.xlu2 %v3773_v59 }
 0x2bf   : > { %v2880_v36 = vpop.eup %2879  ;;  %v1401_v55 = vmul.f32 0.6931472, %v2878_v62  ;;  %v1307_v13 = vpop.xlane.xlu2 %1306  ;;  %v1563_v62 = vmin.f32 %v1531_v32, 0.9999999 }
 0x2c0   : > { %v2882_v34 = vpop.eup %2881  ;;  %2887 = vlog2.f32 %v1307_v13  ;;  %v3780_v16 = vpop.xlane.xlu1 %1178  ;;  %v1599_v37 = vmul.f32 0.6931472, %v2880_v36 }
 0x2c1   : > { %v3782_v46 = vsub.f32 %v1366_v4, %v1401_v55  ;;  %v1223_v51 = vsub.f32 %v3548_v52, %v3780_v16  ;;  %2889 = vlog2.f32 %v1562_v40  ;;  %v2884_v42 = vpop.eup %2883  ;;  %v1691_v19 = vmul.f32 0.6931472, %v2882_v34  ;;  %v1500_v40 = vld [vmem:[%s3652_s9 + $0x40] sm:$0xff] }
 0x2c2   : > { %2891 = vlog2.f32 %v1656_v35  ;;  %v1657_v52 = vsub.f32 0.0, %v1599_v37  ;;  %v4887_v35 = vclamps-f32 %v3329_v48, 3.4028235e+38 }
 0x2c3   : > { %4886 = vst [vmem:[#allocation25_spill] sm:$0xff] %v3782_v46  ;;  %v1274_v10 = vmul.f32 1.442695, %v1223_v51  ;;  %1334 = vadd.xlane.f32.xlu1 %v2884_v42  ;;  %v1782_v44 = vadd.f32 %v1750_v18, %v3782_v46  ;;  %v2886_v11 = vpop.eup %2885  ;;  %v1751_v13 = vsub.f32 0.0, %v1691_v19  ;;  %v1532_v42 = vmax.f32 %v1500_v40, 1e-07 }
 0x2c4   : > { %v1367_v36 = vsub.f32 %v4887_v35, %v3522_v63 }
 0x2c5   : > { %v3789_v2 = vsel %vm1107_vm3, %v1782_v44, -inf  ;;  %2893 = vpow2.f32 %v1274_v10 }
 0x2c6   : > { %v2888_v45 = vpop.eup %2887  ;;  %1848 = vmax.xlane.f32.xlu0 %v3789_v2  ;;  %1336 = vadd.xlane.f32.xlu2 %v2886_v11  ;;  %v1564_v11 = vmin.f32 %v1532_v42, 0.9999999 }
 0x2c7   : > { %v2890_v47 = vpop.eup %2889  ;;  %v1403_v4 = vmul.f32 0.6931472, %v2888_v45  ;;  %v1309_v55 = vpop.xlane.xlu0 %1308 }
 0x2c8   : > { %v2892_v18 = vpop.eup %2891  ;;  %2895 = vlog2.f32 %v1309_v55  ;;  %v3796_v34 = vpop.xlane.xlu2 %1180  ;;  %v1601_v37 = vmul.f32 0.6931472, %v2890_v47 }
 0x2c9   : > { %v3798_v51 = vsub.f32 %v1367_v36, %v1403_v4  ;;  %v1224_v32 = vsub.f32 %v3563_v0, %v3796_v34  ;;  %2897 = vlog2.f32 %v1563_v62  ;;  %v1693_v10 = vmul.f32 0.6931472, %v2892_v18  ;;  %v1501_v0 = vld [vmem:[%s3652_s9 + $0x48] sm:$0xff] }
 0x2ca   : > { %2899 = vlog2.f32 %v1657_v52  ;;  %v1658_v35 = vsub.f32 0.0, %v1601_v37  ;;  %v4889_v52 = vclamps-f32 %v3341_v54, 3.4028235e+38  ;;  %v1533_v42 = vmax.f32 %v1501_v0, 1e-07 }
 0x2cb   : > { %4888 = vst [vmem:[#allocation26_spill] sm:$0xff] %v3798_v51  ;;  %v1276_v48 = vmul.f32 1.442695, %v1224_v32  ;;  %v1783_v63 = vadd.f32 %v1751_v13, %v3798_v51  ;;  %v2894_v44 = vpop.eup %2893  ;;  %v1752_v4 = vsub.f32 0.0, %v1693_v10 }
 0x2cc   : > { %v1368_v40 = vsub.f32 %v4889_v52, %v3537_v26 }
 0x2cd   : > { %v3805_v19 = vsel %vm1107_vm3, %v1783_v63, -inf  ;;  %2901 = vpow2.f32 %v1276_v48 }
 0x2ce   : > { %v2896_v45 = vpop.eup %2895  ;;  %1850 = vmax.xlane.f32.xlu1 %v3805_v19  ;;  %1338 = vadd.xlane.f32.xlu0 %v2894_v44  ;;  %v1565_v44 = vmin.f32 %v1533_v42, 0.9999999 }
 0x2cf   : > { %v2898_v62 = vpop.eup %2897  ;;  %v1405_v47 = vmul.f32 0.6931472, %v2896_v45  ;;  %v1311_v36 = vpop.xlane.xlu1 %1310 }
 0x2d0   : > { %v2900_v55 = vpop.eup %2899  ;;  %2903 = vlog2.f32 %v1311_v36  ;;  %v3812_v13 = vpop.xlane.xlu0 %1182  ;;  %v1603_v37 = vmul.f32 0.6931472, %v2898_v62 }
 0x2d1   : > { %v3814_v18 = vsub.f32 %v1368_v40, %v1405_v47  ;;  %v1225_v32 = vsub.f32 %v3578_v28, %v3812_v13  ;;  %2905 = vlog2.f32 %v1564_v11  ;;  %v1695_v48 = vmul.f32 0.6931472, %v2900_v55  ;;  %v1502_v28 = vld [vmem:[%s3652_s9 + $0x50] sm:$0xff] }
 0x2d2   : > { %2907 = vlog2.f32 %v1658_v35  ;;  %v1659_v52 = vsub.f32 0.0, %v1603_v37  ;;  %v4891_v35 = vclamps-f32 %v3354_v1, 3.4028235e+38  ;;  %v1534_v42 = vmax.f32 %v1502_v28, 1e-07 }
 0x2d3   : > { %4890 = vst [vmem:[#allocation27_spill] sm:$0xff] %v3814_v18  ;;  %v1278_v54 = vmul.f32 1.442695, %v1225_v32  ;;  %v1784_v26 = vadd.f32 %v1752_v4, %v3814_v18  ;;  %v2902_v63 = vpop.eup %2901  ;;  %v1753_v47 = vsub.f32 0.0, %v1695_v48 }
 0x2d4   : > { %v1369_v0 = vsub.f32 %v4891_v35, %v3552_v20 }
 0x2d5   : > { %v3821_v10 = vsel %vm1107_vm3, %v1784_v26, -inf  ;;  %2909 = vpow2.f32 %v1278_v54 }
 0x2d6   : > { %v2904_v45 = vpop.eup %2903  ;;  %1340 = vadd.xlane.f32.xlu1 %v2902_v63  ;;  %1852 = vmax.xlane.f32.xlu2 %v3821_v10  ;;  %v1566_v63 = vmin.f32 %v1534_v42, 0.9999999 }
 0x2d7   : > { %v2906_v11 = vpop.eup %2905  ;;  %v1407_v62 = vmul.f32 0.6931472, %v2904_v45  ;;  %v1313_v40 = vpop.xlane.xlu2 %1312 }
 0x2d8   : > { %v2908_v36 = vpop.eup %2907  ;;  %2911 = vlog2.f32 %v1313_v40  ;;  %v3828_v4 = vpop.xlane.xlu1 %1184  ;;  %v1605_v37 = vmul.f32 0.6931472, %v2906_v11 }
 0x2d9   : > { %v3830_v55 = vsub.f32 %v1369_v0, %v1407_v62  ;;  %v1226_v32 = vsub.f32 %v3593_v60, %v3828_v4  ;;  %2913 = vlog2.f32 %v1565_v44  ;;  %v1697_v54 = vmul.f32 0.6931472, %v2908_v36  ;;  %v1503_v60 = vld [vmem:[%s3652_s9 + $0x58] sm:$0xff] }
 0x2da   : > { %2915 = vlog2.f32 %v1659_v52  ;;  %v1660_v35 = vsub.f32 0.0, %v1605_v37  ;;  %v4893_v52 = vclamps-f32 %v3366_v5, 3.4028235e+38  ;;  %v1535_v42 = vmax.f32 %v1503_v60, 1e-07 }
 0x2db   : > { %4892 = vst [vmem:[#allocation28_spill] sm:$0xff] %v3830_v55  ;;  %v1280_v1 = vmul.f32 1.442695, %v1226_v32  ;;  %v1785_v20 = vadd.f32 %v1753_v47, %v3830_v55  ;;  %v2910_v26 = vpop.eup %2909  ;;  %v1754_v62 = vsub.f32 0.0, %v1697_v54 }
 0x2dc   : > { %v1370_v28 = vsub.f32 %v4893_v52, %v3567_v38 }
 0x2dd   : > { %v3837_v48 = vsel %vm1107_vm3, %v1785_v20, -inf  ;;  %2917 = vpow2.f32 %v1280_v1 }
 0x2de   : > { %v2912_v45 = vpop.eup %2911  ;;  %1854 = vmax.xlane.f32.xlu0 %v3837_v48  ;;  %1342 = vadd.xlane.f32.xlu2 %v2910_v26  ;;  %v1567_v26 = vmin.f32 %v1535_v42, 0.9999999 }
 0x2df   : > { %v2914_v44 = vpop.eup %2913  ;;  %v1409_v11 = vmul.f32 0.6931472, %v2912_v45  ;;  %v1315_v0 = vpop.xlane.xlu0 %1314 }
 0x2e0   : > { %v2916_v40 = vpop.eup %2915  ;;  %2919 = vlog2.f32 %v1315_v0  ;;  %v3844_v47 = vpop.xlane.xlu2 %1186  ;;  %v1607_v37 = vmul.f32 0.6931472, %v2914_v44 }
 0x2e1   : > { %v3846_v36 = vsub.f32 %v1370_v28, %v1409_v11  ;;  %v1227_v32 = vsub.f32 %v3608_v33, %v3844_v47  ;;  %2921 = vlog2.f32 %v1566_v63  ;;  %v1699_v1 = vmul.f32 0.6931472, %v2916_v40  ;;  %v1504_v33 = vld [vmem:[%s3652_s9 + $0x60] sm:$0xff] }
 0x2e2   : > { %2923 = vlog2.f32 %v1660_v35  ;;  %v1661_v52 = vsub.f32 0.0, %v1607_v37  ;;  %v4895_v35 = vclamps-f32 %v3378_v12, 3.4028235e+38  ;;  %v1536_v40 = vmax.f32 %v1504_v33, 1e-07 }
 0x2e3   : > { %4894 = vst [vmem:[#allocation29_spill] sm:$0xff] %v3846_v36  ;;  %v1282_v5 = vmul.f32 1.442695, %v1227_v32  ;;  %v1786_v38 = vadd.f32 %v1754_v62, %v3846_v36  ;;  %v2918_v20 = vpop.eup %2917  ;;  %v1755_v11 = vsub.f32 0.0, %v1699_v1 }
 0x2e4   : > { %v1371_v60 = vsub.f32 %v4895_v35, %v3582_v6  ;;  %v1568_v6 = vmin.f32 %v1536_v40, 0.9999999 }
 0x2e5   : > { %v3853_v54 = vsel %vm1107_vm3, %v1786_v38, -inf  ;;  %2925 = vpow2.f32 %v1282_v5 }
 0x2e6   : > { %v2920_v45 = vpop.eup %2919  ;;  %1344 = vadd.xlane.f32.xlu0 %v2918_v20  ;;  %1856 = vmax.xlane.f32.xlu1 %v3853_v54 }
 0x2e7   : > { %v2922_v63 = vpop.eup %2921  ;;  %v1411_v44 = vmul.f32 0.6931472, %v2920_v45  ;;  %v1317_v28 = vpop.xlane.xlu1 %1316 }
 0x2e8   : > { %v2924_v0 = vpop.eup %2923  ;;  %2927 = vlog2.f32 %v1317_v28  ;;  %v1609_v32 = vmul.f32 0.6931472, %v2922_v63 }
 0x2e9   : > { %v3860_v62 = vsub.f32 %v1371_v60, %v1411_v44  ;;  %2929 = vlog2.f32 %v1567_v26  ;;  %v1701_v37 = vmul.f32 0.6931472, %v2924_v0  ;;  %v1505_v26 = vld [vmem:[%s3652_s9 + $0x68] sm:$0xff] }
 0x2ea   : > { %2931 = vlog2.f32 %v1661_v52  ;;  %v1662_v20 = vsub.f32 0.0, %v1609_v32  ;;  %v4897_v52 = vclamps-f32 %v3391_v29, 3.4028235e+38  ;;  %v1537_v40 = vmax.f32 %v1505_v26, 1e-07 }
 0x2eb   : > { %4896 = vst [vmem:[#allocation30_spill] sm:$0xff] %v3860_v62  ;;  %v1787_v42 = vadd.f32 %v1755_v11, %v3860_v62  ;;  %v2926_v38 = vpop.eup %2925  ;;  %v1756_v44 = vsub.f32 0.0, %v1701_v37 }
 0x2ec   : > { %v1372_v33 = vsub.f32 %v4897_v52, %v3597_v22  ;;  %v1506_v52 = vld [vmem:[%s3652_s9 + $0x70] sm:$0xff] }
 0x2ed   : > { %v3865_v12 = vsel %vm1107_vm3, %v1787_v42, -inf }
 0x2ee   : > { %v2928_v5 = vpop.eup %2927  ;;  %1346 = vadd.xlane.f32.xlu1 %v2926_v38  ;;  %1858 = vmax.xlane.f32.xlu2 %v3865_v12  ;;  %v3868_v1 = vpop.xlane.xlu0 %1188 }
 0x2ef   : > { %v2930_v45 = vpop.eup %2929  ;;  %v1413_v63 = vmul.f32 0.6931472, %v2928_v5  ;;  %v1228_v35 = vsub.f32 %v3627_v50, %v3868_v1  ;;  %v1319_v60 = vpop.xlane.xlu2 %1318  ;;  %v1569_v50 = vmin.f32 %v1537_v40, 0.9999999  ;;  %v1538_v40 = vmax.f32 %v1506_v52, 1e-07 }
 0x2f0   : > { %v2932_v28 = vpop.eup %2931  ;;  %2933 = vlog2.f32 %v1319_v60  ;;  %v1611_v32 = vmul.f32 0.6931472, %v2930_v45 }
 0x2f1   : > { %v3876_v11 = vsub.f32 %v1372_v33, %v1413_v63  ;;  %v1284_v0 = vmul.f32 1.442695, %v1228_v35  ;;  %2935 = vlog2.f32 %v1568_v6  ;;  %v1703_v22 = vmul.f32 0.6931472, %v2932_v28 }
 0x2f2   : > { %2937 = vlog2.f32 %v1662_v20  ;;  %v1663_v5 = vsub.f32 0.0, %v1611_v32  ;;  %v4899_v20 = vclamps-f32 %v3403_v41, 3.4028235e+38 }
 0x2f3   : > { %4898 = vst [vmem:[#allocation31_spill] sm:$0xff] %v3876_v11  ;;  %2939 = vpow2.f32 %v1284_v0  ;;  %v1788_v29 = vadd.f32 %v1756_v44, %v3876_v11  ;;  %v1757_v35 = vsub.f32 0.0, %v1703_v22 }
 0x2f4   : > { %v1373_v26 = vsub.f32 %v4899_v20, %v3611_v53 }
 0x2f5   : > { %v3881_v42 = vsel %vm1107_vm3, %v1788_v29, -inf  ;;  %v1570_v29 = vmin.f32 %v1538_v40, 0.9999999 }
 0x2f6   : > { %v2934_v37 = vpop.eup %2933  ;;  %v3883_v38 = vpop.xlane.xlu1 %1190  ;;  %1860 = vmax.xlane.f32.xlu0 %v3881_v42 }
 0x2f7   : > { %v2936_v6 = vpop.eup %2935  ;;  %v1415_v45 = vmul.f32 0.6931472, %v2934_v37  ;;  %v1229_v33 = vsub.f32 %v3643_v56, %v3883_v38  ;;  %v1321_v63 = vpop.xlane.xlu0 %1320 }
 0x2f8   : > { %v2938_v60 = vpop.eup %2937  ;;  %2941 = vlog2.f32 %v1321_v63  ;;  %v1613_v32 = vmul.f32 0.6931472, %v2936_v6 }
 0x2f9   : > { %v2940_v44 = vpop.eup %2939  ;;  %v3892_v28 = vsub.f32 %v1373_v26, %v1415_v45  ;;  %v1286_v0 = vmul.f32 1.442695, %v1229_v33  ;;  %2943 = vlog2.f32 %v1569_v50  ;;  %v1705_v53 = vmul.f32 0.6931472, %v2938_v60  ;;  %v1507_v50 = vld [vmem:[%s3652_s9 + $0x78] sm:$0xff] }
 0x2fa   : > { %1348 = vadd.xlane.f32.xlu2 %v2940_v44  ;;  %2945 = vlog2.f32 %v1663_v5  ;;  %v1664_v20 = vsub.f32 0.0, %v1613_v32  ;;  %v4901_v5 = vclamps-f32 %v3416_v57, 3.4028235e+38  ;;  %v1539_v40 = vmax.f32 %v1507_v50, 1e-07 }
 0x2fb   : > { %4900 = vst [vmem:[#allocation32_spill] sm:$0xff] %v3892_v28  ;;  %2947 = vpow2.f32 %v1286_v0  ;;  %v1789_v41 = vadd.f32 %v1757_v35, %v3892_v28  ;;  %v1758_v63 = vsub.f32 0.0, %v1705_v53 }
 0x2fc   : > { %v1374_v6 = vsub.f32 %v4901_v5, %v3618_v9  ;;  %v1571_v53 = vmin.f32 %v1539_v40, 0.9999999  ;;  %v4903_v5 = vclamps-f32 %v3428_v15, 3.4028235e+38 }
 0x2fd   : > { %v3897_v56 = vsel %vm1107_vm3, %v1789_v41, -inf  ;;  %v1508_v41 = vld [vmem:[%s3652_s9 + $0x80] sm:$0xff] }
 0x2fe   : > { %v2942_v22 = vpop.eup %2941  ;;  %1862 = vmax.xlane.f32.xlu1 %v3897_v56  ;;  %v3900_v37 = vpop.xlane.xlu2 %1192 }
 0x2ff   : > { %v2944_v52 = vpop.eup %2943  ;;  %v1417_v26 = vmul.f32 0.6931472, %v2942_v22  ;;  %v1230_v45 = vsub.f32 %v3666_v58, %v3900_v37  ;;  %v1323_v33 = vpop.xlane.xlu1 %1322 }
 0x300   : > { %v2946_v35 = vpop.eup %2945  ;;  %2949 = vlog2.f32 %v1323_v33  ;;  %v1615_v32 = vmul.f32 0.6931472, %v2944_v52 }
 0x301   : > { %v2948_v60 = vpop.eup %2947  ;;  %v3908_v44 = vsub.f32 %v1374_v6, %v1417_v26  ;;  %v1288_v0 = vmul.f32 1.442695, %v1230_v45  ;;  %2951 = vlog2.f32 %v1570_v29  ;;  %v1707_v9 = vmul.f32 0.6931472, %v2946_v35 }
 0x302   : > { %1350 = vadd.xlane.f32.xlu0 %v2948_v60  ;;  %2953 = vlog2.f32 %v1664_v20  ;;  %v1375_v6 = vsub.f32 %v4903_v5, %v3633_v61  ;;  %v1665_v20 = vsub.f32 0.0, %v1615_v32 }
 0x303   : > { %4902 = vst [vmem:[#allocation33_spill] sm:$0xff] %v3908_v44  ;;  %2955 = vpow2.f32 %v1288_v0  ;;  %v1790_v57 = vadd.f32 %v1758_v63, %v3908_v44  ;;  %v1759_v33 = vsub.f32 0.0, %v1707_v9  ;;  %v1540_v63 = vmax.f32 %v1508_v41, 1e-07 }
 0x304   : > { %v4905_v41 = vclamps-f32 %v3441_v25, 3.4028235e+38 }
 0x305   : > { %v3914_v58 = vsel %vm1107_vm3, %v1790_v57, -inf  ;;  %v1572_v57 = vmin.f32 %v1540_v63, 0.9999999 }
 0x306   : > { %v2950_v22 = vpop.eup %2949  ;;  %1864 = vmax.xlane.f32.xlu2 %v3914_v58  ;;  %v3920_v29 = vpop.xlane.xlu0 %1194 }
 0x307   : > { %v2952_v50 = vpop.eup %2951  ;;  %v1419_v52 = vmul.f32 0.6931472, %v2950_v22  ;;  %v1231_v26 = vsub.f32 %v3682_v21, %v3920_v29  ;;  %v1325_v45 = vpop.xlane.xlu2 %1324  ;;  %v1376_v22 = vsub.f32 %v4905_v41, %v3656_v49 }
 0x308   : > { %v2954_v35 = vpop.eup %2953  ;;  %2957 = vlog2.f32 %v1325_v45  ;;  %v1617_v61 = vmul.f32 0.6931472, %v2952_v50 }
 0x309   : > { %v2956_v60 = vpop.eup %2955  ;;  %v3924_v0 = vsub.f32 %v1375_v6, %v1419_v52  ;;  %v1290_v15 = vmul.f32 1.442695, %v1231_v26  ;;  %2959 = vlog2.f32 %v1571_v53  ;;  %v1709_v32 = vmul.f32 0.6931472, %v2954_v35 }
 0x30a   : > { %1352 = vadd.xlane.f32.xlu1 %v2956_v60  ;;  %2961 = vlog2.f32 %v1665_v20  ;;  %v1666_v53 = vsub.f32 0.0, %v1617_v61 }
 0x30b   : > { %4904 = vst [vmem:[#allocation34_spill] sm:$0xff] %v3924_v0  ;;  %2963 = vpow2.f32 %v1290_v15  ;;  %v1791_v40 = vadd.f32 %v1759_v33, %v3924_v0  ;;  %v1760_v26 = vsub.f32 0.0, %v1709_v32  ;;  %v1509_v15 = vld [vmem:[%s3652_s9 + $0x88] sm:$0xff]  ;;  %v4907_v32 = vclamps-f32 %v3453_v43, 3.4028235e+38 }
 0x30c   : > { %2965 = vlog2.f32 %v1572_v57 }
 0x30d   : > { %v3929_v21 = vsel %vm1107_vm3, %v1791_v40, -inf  ;;  %v1377_v57 = vsub.f32 %v4907_v32, %v3673_v14  ;;  %v4909_v32 = vclamps-f32 %v3466_v27, 3.4028235e+38 }
 0x30e   : > { %v2958_v9 = vpop.eup %2957  ;;  %v3934_v5 = vpop.xlane.xlu1 %1196  ;;  %1866 = vmax.xlane.f32.xlu0 %v3929_v21 }
 0x30f   : > { %v2960_v6 = vpop.eup %2959  ;;  %v1421_v20 = vmul.f32 0.6931472, %v2958_v9  ;;  %v1232_v50 = vsub.f32 %v3698_v8, %v3934_v5  ;;  %v1327_v52 = vpop.xlane.xlu0 %1326 }
 0x310   : > { %v2962_v45 = vpop.eup %2961  ;;  %2967 = vlog2.f32 %v1327_v52  ;;  %v1619_v25 = vmul.f32 0.6931472, %v2960_v6  ;;  %v1510_v52 = vld [vmem:[%s3652_s9 + $0x90] sm:$0xff] }
 0x311   : > { %v2964_v33 = vpop.eup %2963  ;;  %v3939_v63 = vsub.f32 %v1376_v22, %v1421_v20  ;;  %v1292_v49 = vmul.f32 1.442695, %v1232_v50  ;;  %2969 = vlog2.f32 %v1666_v53  ;;  %v1711_v60 = vmul.f32 0.6931472, %v2962_v45 }
 0x312   : > { %1354 = vadd.xlane.f32.xlu2 %v2964_v33  ;;  %v2966_v61 = vpop.eup %2965  ;;  %v1667_v41 = vsub.f32 0.0, %v1619_v25  ;;  %v1541_v50 = vmax.f32 %v1509_v15, 1e-07 }
 0x313   : > { %4906 = vst [vmem:[#allocation35_spill] sm:$0xff] %v3939_v63  ;;  %2971 = vpow2.f32 %v1292_v49  ;;  %v1792_v35 = vadd.f32 %v1760_v26, %v3939_v63  ;;  %v1761_v20 = vsub.f32 0.0, %v1711_v60  ;;  %v1621_v14 = vmul.f32 0.6931472, %v2966_v61 }
 0x314   : > { %v1542_v49 = vmax.f32 %v1510_v52, 1e-07 }
 0x315   : > { %v3945_v8 = vsel %vm1107_vm3, %v1792_v35, -inf  ;;  %v1668_v15 = vsub.f32 0.0, %v1621_v14 }
 0x316   : > { %v2968_v40 = vpop.eup %2967  ;;  %1868 = vmax.xlane.f32.xlu1 %v3945_v8  ;;  %v3951_v9 = vpop.xlane.xlu2 %1198 }
 0x317   : > { %v1423_v22 = vmul.f32 0.6931472, %v2968_v40  ;;  %v1233_v53 = vsub.f32 %v3714_v3, %v3951_v9  ;;  %v1329_v6 = vpop.xlane.xlu1 %1328  ;;  %v2970_v26 = vpop.eup %2969  ;;  %v1573_v3 = vmin.f32 %v1541_v50, 0.9999999 }
 0x318   : > { %2973 = vlog2.f32 %v1329_v6  ;;  %v1713_v35 = vmul.f32 0.6931472, %v2970_v26  ;;  %v1511_v26 = vld [vmem:[%s3652_s9 + $0x98] sm:$0xff] }
 0x319   : > { %v2972_v45 = vpop.eup %2971  ;;  %v3956_v33 = vsub.f32 %v1377_v57, %v1423_v22  ;;  %v1294_v43 = vmul.f32 1.442695, %v1233_v53  ;;  %2975 = vlog2.f32 %v1667_v41  ;;  %v1378_v57 = vsub.f32 %v4909_v32, %v3689_v23  ;;  %v4910_v53 = vld [vmem:[#allocation20_spill] sm:$0xff] }
 0x31a   : > { %1356 = vadd.xlane.f32.xlu0 %v2972_v45  ;;  %v1574_v41 = vmin.f32 %v1542_v49, 0.9999999  ;;  %v1762_v50 = vsub.f32 0.0, %v1713_v35  ;;  %v1543_v49 = vmax.f32 %v1511_v26, 1e-07  ;;  %v1512_v26 = vld [vmem:[%s3652_s9 + $0xa0] sm:$0xff] }
 0x31b   : > { %4908 = vst [vmem:[#allocation36_spill] sm:$0xff] %v3956_v33  ;;  %2977 = vpow2.f32 %v1294_v43  ;;  %v1793_v25 = vadd.f32 %v1761_v20, %v3956_v33  ;;  %v1544_v63 = vmax.f32 %v1512_v26, 1e-07  ;;  %v1513_v26 = vld [vmem:[%s3652_s9 + $0xa8] sm:$0xff] }
 0x31c   : > { %2979 = vlog2.f32 %v1573_v3 }
 0x31d   : > { %v3961_v60 = vsel %vm1107_vm3, %v1793_v25, -inf }
 0x31e   : > { %v2974_v40 = vpop.eup %2973  ;;  %1870 = vmax.xlane.f32.xlu2 %v3961_v60  ;;  %v3967_v61 = vpop.xlane.xlu0 %1200 }
 0x31f   : > { %v1425_v22 = vmul.f32 0.6931472, %v2974_v40  ;;  %v1234_v6 = vsub.f32 %v4910_v53, %v3967_v61  ;;  %v1331_v20 = vpop.xlane.xlu2 %1330  ;;  %v2976_v52 = vpop.eup %2975 }
 0x320   : > { %2981 = vlog2.f32 %v1331_v20  ;;  %v1715_v14 = vmul.f32 0.6931472, %v2976_v52 }
 0x321   : > { %v2978_v45 = vpop.eup %2977  ;;  %v3972_v43 = vsub.f32 %v1378_v57, %v1425_v22  ;;  %v1296_v27 = vmul.f32 1.442695, %v1234_v6  ;;  %2983 = vlog2.f32 %v1668_v15  ;;  %v4912_v15 = vld [vmem:[#allocation17_spill] sm:$0xff]  ;;  %v4913_v57 = vld [vmem:[#allocation2_spill] sm:$0xff] }
 0x322   : > { %1358 = vadd.xlane.f32.xlu1 %v2978_v45  ;;  %2985 = vlog2.f32 %v1574_v41  ;;  %v2980_v25 = vpop.eup %2979  ;;  %v4914_v41 = vclamps-f32 %v4913_v57, 3.4028235e+38  ;;  %v1763_v20 = vsub.f32 0.0, %v1715_v14 }
 0x323   : > { %4911 = vst [vmem:[#allocation20_spill] sm:$0xff] %v3972_v43  ;;  %2987 = vpow2.f32 %v1296_v27  ;;  %v1794_v23 = vadd.f32 %v1762_v50, %v3972_v43  ;;  %v1575_v50 = vmin.f32 %v1543_v49, 0.9999999 }
 0x324   : > { %v1379_v22 = vsub.f32 %v4914_v41, %v4912_v15  ;;  %v4916_v15 = vld [vmem:[#allocation19_spill] sm:$0xff] }
 0x325   : > { %v3977_v35 = vsel %vm1107_vm3, %v1794_v23, -inf  ;;  %v1623_v23 = vmul.f32 0.6931472, %v2980_v25  ;;  %v4917_v41 = vld [vmem:[#allocation3_spill] sm:$0xff] }
 0x326   : > { %v2982_v3 = vpop.eup %2981  ;;  %v3979_v40 = vpop.xlane.xlu1 %1202  ;;  %1872 = vmax.xlane.f32.xlu0 %v3977_v35  ;;  %v4919_v25 = vld [vmem:[#allocation23_spill] sm:$0xff] }
 0x327   : > { %v2984_v32 = vpop.eup %2983  ;;  %v1427_v53 = vmul.f32 0.6931472, %v2982_v3  ;;  %v1333_v6 = vpop.xlane.xlu0 %1332  ;;  %v1669_v14 = vsub.f32 0.0, %v1623_v23 }
 0x328   : > { %v2986_v52 = vpop.eup %2985  ;;  %2989 = vlog2.f32 %v1333_v6  ;;  %v1717_v33 = vmul.f32 0.6931472, %v2984_v32  ;;  %v4918_v6 = vclamps-f32 %v4917_v41, 3.4028235e+38 }
 0x329   : > { %v2988_v45 = vpop.eup %2987  ;;  %v3986_v27 = vsub.f32 %v1379_v22, %v1427_v53  ;;  %2991 = vlog2.f32 %v1575_v50  ;;  %v1625_v57 = vmul.f32 0.6931472, %v2986_v52  ;;  %v1235_v53 = vsub.f32 %v4919_v25, %v3979_v40 }
 0x32a   : > { %1360 = vadd.xlane.f32.xlu2 %v2988_v45  ;;  %v1380_v22 = vsub.f32 %v4918_v6, %v4916_v15  ;;  %v1576_v50 = vmin.f32 %v1544_v63, 0.9999999  ;;  %2993 = vlog2.f32 %v1669_v14  ;;  %v1545_v63 = vmax.f32 %v1513_v26, 1e-07 }
 0x32b   : > { %4915 = vst [vmem:[#allocation17_spill] sm:$0xff] %v3986_v27  ;;  %v1795_v43 = vadd.f32 %v1763_v20, %v3986_v27  ;;  %v1764_v20 = vsub.f32 0.0, %v1717_v33  ;;  %v1670_v52 = vsub.f32 0.0, %v1625_v57  ;;  %v1298_v6 = vmul.f32 1.442695, %v1235_v53 }
 0x32c   : > { %2995 = vlog2.f32 %v1576_v50  ;;  %v1577_v25 = vmin.f32 %v1545_v63, 0.9999999 }
 0x32d   : > { %v3991_v3 = vsel %vm1107_vm3, %v1795_v43, -inf  ;;  %2997 = vlog2.f32 %v1670_v52 }
 0x32e   : > { %v2990_v49 = vpop.eup %2989  ;;  %v1845_v45 = vpop.xlane.xlu1 %1844  ;;  %1874 = vmax.xlane.f32.xlu1 %v3991_v3  ;;  %2999 = vpow2.f32 %v1298_v6 }
 0x32f   : > { %v1429_v32 = vmul.f32 0.6931472, %v2990_v49  ;;  %vm1908_vm5 = vcmp.ge.f32.partialorder %v3767_v31, %v1845_v45  ;;  %v2992_v23 = vpop.eup %2991 }
 0x330   : > { %v4001_v43 = vsel %vm1908_vm5, %v3287_v17, 128  ;;  %v1627_v33 = vmul.f32 0.6931472, %v2992_v23 }
 0x331   : > { %v4004_v27 = vsub.f32 %v1380_v22, %v1429_v32  ;;  %v1847_v15 = vpop.xlane.xlu2 %1846  ;;  %v1973_v41 = vshra.s32 %v4001_v43, 16  ;;  %v2994_v22 = vpop.eup %2993  ;;  %v1514_v32 = vld [vmem:[%s3652_s9 + $0xb0] sm:$0xff] }
 0x332   : > { %vm1909_vm6 = vcmp.ge.f32.partialorder %v3773_v59, %v1847_v15  ;;  %v1671_v45 = vsub.f32 0.0, %v1627_v33  ;;  %v1719_v23 = vmul.f32 0.6931472, %v2994_v22 }
 0x333   : > { %4920 = vst [vmem:[#allocation2_spill] sm:$0xff] %v4004_v27  ;;  %v4008_v49 = vcvt.s32.f32 %v1973_v41  ;;  %v1796_v31 = vadd.f32 %v1764_v20, %v4004_v27  ;;  %v4012_v57 = vsel %vm1909_vm6, %v3287_v17, 128  ;;  %v2996_v20 = vpop.eup %2995  ;;  %v1546_v41 = vmax.f32 %v1514_v32, 1e-07 }
 0x334   : > { %v1987_v53 = vshra.s32 %v4012_v57, 16  ;;  %v2998_v26 = vpop.eup %2997  ;;  %v1629_v33 = vmul.f32 0.6931472, %v2996_v20  ;;  %v1765_v32 = vsub.f32 0.0, %v1719_v23  ;;  %v1515_v20 = vld [vmem:[%s3652_s9 + $0xb8] sm:$0xff] }
 0x335   : > { %1976 = vmin.xlane.f32.xlu0 %v4008_v49  ;;  %v4017_v14 = vsel %vm1107_vm3, %v1796_v31, -inf  ;;  %v3000_v6 = vpop.eup %2999  ;;  %v1721_v27 = vmul.f32 0.6931472, %v2998_v26  ;;  %v4924_v26 = vld [vmem:[#allocation5_spill] sm:$0xff] }
 0x336   : > { %v1335_v59 = vpop.xlane.xlu1 %1334  ;;  %1876 = vmax.xlane.f32.xlu2 %v4017_v14  ;;  %v4026_v31 = vcvt.s32.f32 %v1987_v53  ;;  %v1578_v53 = vmin.f32 %v1546_v41, 0.9999999  ;;  %v4925_v28 = vclamps-f32 %v4924_v26, 3.4028235e+38 }
 0x337   : > { %3001 = vlog2.f32 %v1335_v59  ;;  %v1766_v11 = vsub.f32 0.0, %v1721_v27 }
 0x339   : > { %v1337_v50 = vpop.xlane.xlu2 %1336  ;;  %v1849_v52 = vpop.xlane.xlu0 %1848 }
 0x33a   : > { %3003 = vlog2.f32 %v1337_v50  ;;  %vm1910_vm7 = vcmp.ge.f32.partialorder %v3789_v2, %v1849_v52  ;;  %v4921_v50 = vld [vmem:[#allocation4_spill] sm:$0xff] }
 0x33b   : > { %v4024_v15 = vsel %vm1910_vm7, %v3287_v17, 128  ;;  %3005 = vlog2.f32 %v1577_v25  ;;  %v4922_v2 = vclamps-f32 %v4921_v50, 3.4028235e+38  ;;  %v1382_v50 = vsub.f32 %v4925_v28, %v3759_v39 }
 0x33c   : > { %v2001_v63 = vshra.s32 %v4024_v15, 16  ;;  %3007 = vlog2.f32 %v1671_v45  ;;  %v1672_v45 = vsub.f32 0.0, %v1629_v33  ;;  %v1547_v33 = vmax.f32 %v1515_v20, 1e-07 }
 0x33d   : > { %v3002_v59 = vpop.eup %3001  ;;  %1362 = vadd.xlane.f32.xlu0 %v3000_v6  ;;  %v1381_v22 = vsub.f32 %v4922_v2, %v3741_v7 }
 0x33e   : > { %v1431_v52 = vmul.f32 0.6931472, %v3002_v59  ;;  %1990 = vmin.xlane.f32.xlu2 %v4026_v31  ;;  %v4033_v25 = vcvt.s32.f32 %v2001_v63 }
 0x340   : > { %v3004_v0 = vpop.eup %3003  ;;  %v4035_v44 = vsub.f32 %v1381_v22, %v1431_v52  ;;  %2004 = vmin.xlane.f32.xlu1 %v4033_v25 }
 0x341   : > { %v3006_v6 = vpop.eup %3005  ;;  %v1433_v7 = vmul.f32 0.6931472, %v3004_v0  ;;  %v1851_v59 = vpop.xlane.xlu1 %1850 }
 0x342   : > { %4923 = vst [vmem:[#allocation19_spill] sm:$0xff] %v4035_v44  ;;  %v1339_v2 = vpop.xlane.xlu0 %1338  ;;  %v3008_v63 = vpop.eup %3007  ;;  %vm1911_vm8 = vcmp.ge.f32.partialorder %v3805_v19, %v1851_v59  ;;  %v1797_v23 = vadd.f32 %v1765_v32, %v4035_v44  ;;  %v1631_v28 = vmul.f32 0.6931472, %v3006_v6  ;;  %v1579_v32 = vmin.f32 %v1547_v33, 0.9999999 }
 0x343   : > { %3009 = vlog2.f32 %v1339_v2  ;;  %v4044_v41 = vsub.f32 %v1382_v50, %v1433_v7  ;;  %v4047_v22 = vsel %vm1911_vm8, %v3287_v17, 128  ;;  %v1723_v0 = vmul.f32 0.6931472, %v3008_v63 }
 0x344   : > { %3011 = vlog2.f32 %v1578_v53  ;;  %v4051_v39 = vsel %vm1107_vm3, %v1797_v23, -inf  ;;  %v2015_v52 = vshra.s32 %v4047_v22, 16  ;;  %v1673_v20 = vsub.f32 0.0, %v1631_v28  ;;  %v1516_v28 = vld [vmem:[%s3652_s9 + $0xc0] sm:$0xff] }
 0x345   : > { %4926 = vst [vmem:[#allocation3_spill] sm:$0xff] %v4044_v41  ;;  %3013 = vlog2.f32 %v1672_v45  ;;  %1878 = vmax.xlane.f32.xlu0 %v4051_v39  ;;  %v1798_v19 = vadd.f32 %v1766_v11, %v4044_v41  ;;  %v4927_v45 = vld [vmem:[#allocation6_spill] sm:$0xff]  ;;  %v1767_v2 = vsub.f32 0.0, %v1723_v0 }
 0x346   : > { %v4928_v6 = vclamps-f32 %v4927_v45, 3.4028235e+38 }
 0x347   : > { %v4057_v27 = vsel %vm1107_vm3, %v1798_v19, -inf  ;;  %v4066_v19 = vcvt.s32.f32 %v2015_v52  ;;  %v1548_v52 = vmax.f32 %v1516_v28, 1e-07 }
 0x348   : > { %1880 = vmax.xlane.f32.xlu1 %v4057_v27  ;;  %v1383_v50 = vsub.f32 %v4928_v6, %v3780_v16 }
 0x349   : > { %v3010_v53 = vpop.eup %3009  ;;  %v1341_v11 = vpop.xlane.xlu1 %1340 }
 0x34a   : > { %v3012_v26 = vpop.eup %3011  ;;  %v1435_v7 = vmul.f32 0.6931472, %v3010_v53  ;;  %v1853_v59 = vpop.xlane.xlu2 %1852  ;;  %3015 = vlog2.f32 %v1341_v11 }
 0x34b   : > { %v3014_v63 = vpop.eup %3013  ;;  %3017 = vlog2.f32 %v1579_v32  ;;  %vm1912_vm9 = vcmp.ge.f32.partialorder %v3821_v10, %v1853_v59  ;;  %v1633_v33 = vmul.f32 0.6931472, %v3012_v26 }
 0x34c   : > { %v4064_v23 = vsub.f32 %v1383_v50, %v1435_v7  ;;  %3019 = vlog2.f32 %v1673_v20  ;;  %v1725_v53 = vmul.f32 0.6931472, %v3014_v63  ;;  %v4073_v45 = vsel %vm1912_vm9, %v3287_v17, 128  ;;  %v4930_v20 = vld [vmem:[#allocation7_spill] sm:$0xff] }
 0x34d   : > { %2018 = vmin.xlane.f32.xlu0 %v4066_v19  ;;  %v1674_v10 = vsub.f32 0.0, %v1633_v33  ;;  %v4931_v26 = vclamps-f32 %v4930_v20, 3.4028235e+38  ;;  %v2029_v28 = vshra.s32 %v4073_v45, 16 }
 0x34e   : > { %4929 = vst [vmem:[#allocation23_spill] sm:$0xff] %v4064_v23  ;;  %v1799_v16 = vadd.f32 %v1767_v2, %v4064_v23  ;;  %v1768_v2 = vsub.f32 0.0, %v1725_v53  ;;  %v1580_v23 = vmin.f32 %v1548_v52, 0.9999999 }
 0x34f   : > { %v1384_v50 = vsub.f32 %v4931_v26, %v3796_v34  ;;  %v4092_v53 = vcvt.s32.f32 %v2029_v28 }
 0x350   : > { %v4077_v0 = vsel %vm1107_vm3, %v1799_v16, -inf  ;;  %v3016_v6 = vpop.eup %3015 }
 0x351   : > { %1882 = vmax.xlane.f32.xlu2 %v4077_v0  ;;  %v3018_v32 = vpop.eup %3017  ;;  %v1437_v7 = vmul.f32 0.6931472, %v3016_v6  ;;  %v1855_v59 = vpop.xlane.xlu0 %1854 }
 0x352   : > { %v1343_v11 = vpop.xlane.xlu2 %1342  ;;  %v3020_v63 = vpop.eup %3019  ;;  %vm1913_vm10 = vcmp.ge.f32.partialorder %v3837_v48, %v1855_v59  ;;  %v1635_v34 = vmul.f32 0.6931472, %v3018_v32  ;;  %v1517_v48 = vld [vmem:[%s3652_s9 + $0xc8] sm:$0xff] }
 0x353   : > { %3021 = vlog2.f32 %v1343_v11  ;;  %v4085_v16 = vsub.f32 %v1384_v50, %v1437_v7  ;;  %v4088_v33 = vsel %vm1913_vm10, %v3287_v17, 128  ;;  %v1727_v26 = vmul.f32 0.6931472, %v3020_v63 }
 0x354   : > { %v2043_v20 = vshra.s32 %v4088_v33, 16  ;;  %3023 = vlog2.f32 %v1674_v10  ;;  %v1675_v52 = vsub.f32 0.0, %v1635_v34  ;;  %v4933_v10 = vld [vmem:[#allocation8_spill] sm:$0xff] }
 0x355   : > { %4932 = vst [vmem:[#allocation4_spill] sm:$0xff] %v4085_v16  ;;  %v1800_v6 = vadd.f32 %v1768_v2, %v4085_v16  ;;  %3025 = vlog2.f32 %v1580_v23  ;;  %v4934_v32 = vclamps-f32 %v4933_v10, 3.4028235e+38 }
 0x356   : > { %v4094_v11 = vcvt.s32.f32 %v2043_v20  ;;  %v1769_v20 = vsub.f32 0.0, %v1727_v26 }
 0x357   : > { %v4099_v50 = vsel %vm1107_vm3, %v1800_v6, -inf  ;;  %v1385_v59 = vsub.f32 %v4934_v32, %v3812_v13  ;;  %v1549_v6 = vmax.f32 %v1517_v48, 1e-07  ;;  %v1518_v13 = vld [vmem:[%s3652_s9 + $0xd0] sm:$0xff] }
 0x358   : > { %1884 = vmax.xlane.f32.xlu0 %v4099_v50  ;;  %2046 = vmin.xlane.f32.xlu1 %v4094_v11  ;;  %v1550_v48 = vmax.f32 %v1518_v13, 1e-07 }
 0x359   : > { %v3022_v7 = vpop.eup %3021  ;;  %2032 = vmin.xlane.f32.xlu2 %v4092_v53  ;;  %v1857_v63 = vpop.xlane.xlu1 %1856  ;;  %v1581_v44 = vmin.f32 %v1549_v6, 0.9999999 }
 0x35a   : > { %v1439_v2 = vmul.f32 0.6931472, %v3022_v7  ;;  %v1345_v28 = vpop.xlane.xlu0 %1344  ;;  %v3024_v16 = vpop.eup %3023  ;;  %vm1914_vm11 = vcmp.ge.f32.partialorder %v3853_v54, %v1857_v63  ;;  %v1582_v13 = vmin.f32 %v1550_v48, 0.9999999 }
 0x35b   : > { %3027 = vlog2.f32 %v1345_v28  ;;  %v4111_v41 = vsel %vm1914_vm11, %v3287_v17, 128  ;;  %v3026_v7 = vpop.eup %3025  ;;  %v1729_v32 = vmul.f32 0.6931472, %v3024_v16 }
 0x35c   : > { %v4108_v23 = vsub.f32 %v1385_v59, %v1439_v2  ;;  %v2057_v34 = vshra.s32 %v4111_v41, 16  ;;  %3029 = vlog2.f32 %v1675_v52  ;;  %v1637_v2 = vmul.f32 0.6931472, %v3026_v7  ;;  %v4936_v52 = vld [vmem:[#allocation9_spill] sm:$0xff] }
 0x35d   : > { %v4937_v63 = vclamps-f32 %v4936_v52, 3.4028235e+38  ;;  %v1770_v6 = vsub.f32 0.0, %v1729_v32  ;;  %3031 = vlog2.f32 %v1581_v44  ;;  %v1519_v7 = vld [vmem:[%s3652_s9 + $0xd8] sm:$0xff] }
 0x35e   : > { %4935 = vst [vmem:[#allocation5_spill] sm:$0xff] %v4108_v23  ;;  %v1801_v10 = vadd.f32 %v1769_v20, %v4108_v23  ;;  %v4116_v26 = vcvt.s32.f32 %v2057_v34  ;;  %v1676_v23 = vsub.f32 0.0, %v1637_v2  ;;  %v1551_v44 = vmax.f32 %v1519_v7, 1e-07 }
 0x35f   : > { %v1386_v28 = vsub.f32 %v4937_v63, %v3828_v4 }
 0x360   : > { %v4120_v54 = vsel %vm1107_vm3, %v1801_v10, -inf  ;;  %2060 = vmin.xlane.f32.xlu0 %v4116_v26 }
 0x361   : > { %v3028_v59 = vpop.eup %3027  ;;  %1886 = vmax.xlane.f32.xlu1 %v4120_v54  ;;  %v1347_v16 = vpop.xlane.xlu1 %1346 }
 0x362   : > { %v1441_v62 = vmul.f32 0.6931472, %v3028_v59  ;;  %v1859_v20 = vpop.xlane.xlu2 %1858  ;;  %v3030_v34 = vpop.eup %3029  ;;  %3033 = vlog2.f32 %v1347_v16 }
 0x363   : > { %vm1915_vm12 = vcmp.ge.f32.partialorder %v3865_v12, %v1859_v20  ;;  %v1731_v52 = vmul.f32 0.6931472, %v3030_v34  ;;  %v3032_v4 = vpop.eup %3031  ;;  %3035 = vlog2.f32 %v1582_v13  ;;  %v4939_v12 = vld [vmem:[#allocation10_spill] sm:$0xff]  ;;  %v1583_v13 = vmin.f32 %v1551_v44, 0.9999999 }
 0x364   : > { %v4127_v10 = vsub.f32 %v1386_v28, %v1441_v62  ;;  %v4133_v59 = vsel %vm1915_vm12, %v3287_v17, 128  ;;  %3037 = vlog2.f32 %v1676_v23  ;;  %v4940_v48 = vclamps-f32 %v4939_v12, 3.4028235e+38 }
 0x365   : > { %v1771_v16 = vsub.f32 0.0, %v1731_v52  ;;  %v2071_v20 = vshra.s32 %v4133_v59, 16 }
 0x366   : > { %4938 = vst [vmem:[#allocation6_spill] sm:$0xff] %v4127_v10  ;;  %v1802_v36 = vadd.f32 %v1770_v6, %v4127_v10  ;;  %v1387_v2 = vsub.f32 %v4940_v48, %v3844_v47  ;;  %v4942_v10 = vld [vmem:[#allocation11_spill] sm:$0xff] }
 0x367   : > { %v4152_v52 = vcvt.s32.f32 %v2071_v20 }
 0x368   : > { %v4137_v32 = vsel %vm1107_vm3, %v1802_v36, -inf  ;;  %v3034_v62 = vpop.eup %3033  ;;  %v1639_v36 = vmul.f32 0.6931472, %v3032_v4  ;;  %v1520_v4 = vld [vmem:[%s3652_s9 + $0xe0] sm:$0xff] }
 0x369   : > { %1888 = vmax.xlane.f32.xlu2 %v4137_v32  ;;  %v1443_v63 = vmul.f32 0.6931472, %v3034_v62  ;;  %v1861_v28 = vpop.xlane.xlu0 %1860  ;;  %v3036_v7 = vpop.eup %3035 }
 0x36a   : > { %vm1916_vm13 = vcmp.ge.f32.partialorder %v3881_v42, %v1861_v28  ;;  %v3038_v62 = vpop.eup %3037  ;;  %v1677_v48 = vsub.f32 0.0, %v1639_v36  ;;  %v1641_v44 = vmul.f32 0.6931472, %v3036_v7  ;;  %v4943_v7 = vclamps-f32 %v4942_v10, 3.4028235e+38 }
 0x36b   : > { %v4145_v6 = vsub.f32 %v1387_v2, %v1443_v63  ;;  %v4148_v34 = vsel %vm1916_vm13, %v3287_v17, 128  ;;  %v1733_v28 = vmul.f32 0.6931472, %v3038_v62 }
 0x36c   : > { %v2085_v23 = vshra.s32 %v4148_v34, 16 }
 0x36d   : > { %4941 = vst [vmem:[#allocation7_spill] sm:$0xff] %v4145_v6  ;;  %v1349_v12 = vpop.xlane.xlu2 %1348  ;;  %v1803_v47 = vadd.f32 %v1771_v16, %v4145_v6  ;;  %v1552_v16 = vmax.f32 %v1520_v4, 1e-07  ;;  %v1388_v6 = vsub.f32 %v4943_v7, %v3868_v1  ;;  %v1772_v62 = vsub.f32 0.0, %v1733_v28 }
 0x36e   : > { %3039 = vlog2.f32 %v1349_v12  ;;  %v4154_v42 = vcvt.s32.f32 %v2085_v23  ;;  %v1521_v12 = vld [vmem:[%s3652_s9 + $0xe8] sm:$0xff] }
 0x36f   : > { %v4159_v2 = vsel %vm1107_vm3, %v1803_v47, -inf  ;;  %3041 = vlog2.f32 %v1583_v13  ;;  %v1678_v13 = vsub.f32 0.0, %v1641_v44  ;;  %v1584_v4 = vmin.f32 %v1552_v16, 0.9999999 }
 0x370   : > { %1890 = vmax.xlane.f32.xlu0 %v4159_v2  ;;  %2088 = vmin.xlane.f32.xlu1 %v4154_v42  ;;  %3043 = vlog2.f32 %v1677_v48 }
 0x371   : > { %2074 = vmin.xlane.f32.xlu2 %v4152_v52  ;;  %v1863_v63 = vpop.xlane.xlu1 %1862 }
 0x372   : > { %vm1917_vm14 = vcmp.ge.f32.partialorder %v3897_v56, %v1863_v63  ;;  %v1553_v63 = vmax.f32 %v1521_v12, 1e-07 }
 0x373   : > { %v4166_v20 = vsel %vm1917_vm14, %v3287_v17, 128 }
 0x374   : > { %v3040_v36 = vpop.eup %3039  ;;  %v2099_v23 = vshra.s32 %v4166_v20, 16  ;;  %v1585_v10 = vmin.f32 %v1553_v63, 0.9999999 }
 0x375   : > { %v3042_v47 = vpop.eup %3041  ;;  %v1445_v55 = vmul.f32 0.6931472, %v3040_v36  ;;  %v1351_v18 = vpop.xlane.xlu0 %1350  ;;  %v4945_v36 = vld [vmem:[#allocation12_spill] sm:$0xff] }
 0x376   : > { %3045 = vlog2.f32 %v1351_v18  ;;  %v4173_v56 = vcvt.s32.f32 %v2099_v23  ;;  %v3044_v51 = vpop.eup %3043  ;;  %v1643_v44 = vmul.f32 0.6931472, %v3042_v47  ;;  %v4946_v23 = vclamps-f32 %v4945_v36, 3.4028235e+38 }
 0x377   : > { %v4175_v48 = vsub.f32 %v1388_v6, %v1445_v55  ;;  %3047 = vlog2.f32 %v1678_v13  ;;  %v1735_v55 = vmul.f32 0.6931472, %v3044_v51 }
 0x378   : > { %2102 = vmin.xlane.f32.xlu0 %v4173_v56  ;;  %3049 = vlog2.f32 %v1584_v4  ;;  %v1679_v16 = vsub.f32 0.0, %v1643_v44 }
 0x379   : > { %4944 = vst [vmem:[#allocation8_spill] sm:$0xff] %v4175_v48  ;;  %v1865_v46 = vpop.xlane.xlu2 %1864  ;;  %v1804_v24 = vadd.f32 %v1772_v62, %v4175_v48  ;;  %v1773_v7 = vsub.f32 0.0, %v1735_v55  ;;  %v1522_v62 = vld [vmem:[%s3652_s9 + $0xf0] sm:$0xff] }
 0x37a   : > { %vm1918_vm15 = vcmp.ge.f32.partialorder %v3914_v58, %v1865_v46  ;;  %v1389_v46 = vsub.f32 %v4946_v23, %v3883_v38 }
 0x37b   : > { %v4181_v1 = vsel %vm1918_vm15, %v3287_v17, 128  ;;  %v4185_v18 = vsel %vm1107_vm3, %v1804_v24, -inf }
 0x37c   : > { %v3046_v6 = vpop.eup %3045  ;;  %1892 = vmax.xlane.f32.xlu1 %v4185_v18  ;;  %v2113_v28 = vshra.s32 %v4181_v1, 16 }
 0x37d   : > { %v1447_v58 = vmul.f32 0.6931472, %v3046_v6  ;;  %v1353_v13 = vpop.xlane.xlu1 %1352  ;;  %v3048_v12 = vpop.eup %3047 }
 0x37e   : > { %3051 = vlog2.f32 %v1353_v13  ;;  %v4192_v47 = vcvt.s32.f32 %v2113_v28  ;;  %v3050_v24 = vpop.eup %3049  ;;  %v1737_v63 = vmul.f32 0.6931472, %v3048_v12  ;;  %v1554_v28 = vmax.f32 %v1522_v62, 1e-07 }
 0x37f   : > { %v4194_v51 = vsub.f32 %v1389_v46, %v1447_v58  ;;  %3053 = vlog2.f32 %v1585_v10  ;;  %v1645_v38 = vmul.f32 0.6931472, %v3050_v24  ;;  %v4948_v10 = vld [vmem:[#allocation13_spill] sm:$0xff] }
 0x380   : > { %2116 = vmin.xlane.f32.xlu2 %v4192_v47  ;;  %3055 = vlog2.f32 %v1679_v16  ;;  %v4949_v46 = vclamps-f32 %v4948_v10, 3.4028235e+38  ;;  %v1774_v12 = vsub.f32 0.0, %v1737_v63  ;;  %v1586_v62 = vmin.f32 %v1554_v28, 0.9999999 }
 0x381   : > { %4947 = vst [vmem:[#allocation9_spill] sm:$0xff] %v4194_v51  ;;  %v1867_v4 = vpop.xlane.xlu0 %1866  ;;  %v1805_v6 = vadd.f32 %v1773_v7, %v4194_v51  ;;  %v1680_v24 = vsub.f32 0.0, %v1645_v38 }
 0x382   : > { %vm1919_vm0 = vcmp.ge.f32.partialorder %v3929_v21, %v1867_v4  ;;  %v1390_v16 = vsub.f32 %v4949_v46, %v3900_v37 }
 0x383   : > { %v4200_v44 = vsel %vm1919_vm0, %v3287_v17, 128  ;;  %v4213_v7 = vsel %vm1107_vm3, %v1805_v6, -inf }
 0x384   : > { %v3052_v36 = vpop.eup %3051  ;;  %v2127_v23 = vshra.s32 %v4200_v44, 16 }
 0x385   : > { %v3054_v55 = vpop.eup %3053  ;;  %v1449_v58 = vmul.f32 0.6931472, %v3052_v36  ;;  %v1355_v13 = vpop.xlane.xlu2 %1354 }
 0x386   : > { %v3056_v48 = vpop.eup %3055  ;;  %3057 = vlog2.f32 %v1355_v13  ;;  %v4207_v21 = vcvt.s32.f32 %v2127_v23  ;;  %v1647_v37 = vmul.f32 0.6931472, %v3054_v55  ;;  %v4951_v55 = vld [vmem:[#allocation14_spill] sm:$0xff] }
 0x387   : > { %v4209_v4 = vsub.f32 %v1390_v16, %v1449_v58  ;;  %v1739_v10 = vmul.f32 0.6931472, %v3056_v48  ;;  %3059 = vlog2.f32 %v1680_v24  ;;  %v4952_v46 = vclamps-f32 %v4951_v55, 3.4028235e+38  ;;  %v1523_v24 = vld [vmem:[%s3652_s9 + $0xf8] sm:$0xff] }
 0x388   : > { %1894 = vmax.xlane.f32.xlu2 %v4213_v7  ;;  %2130 = vmin.xlane.f32.xlu1 %v4207_v21  ;;  %3061 = vlog2.f32 %v1586_v62  ;;  %v1681_v23 = vsub.f32 0.0, %v1647_v37 }
 0x389   : > { %4950 = vst [vmem:[#allocation10_spill] sm:$0xff] %v4209_v4  ;;  %v1869_v36 = vpop.xlane.xlu1 %1868  ;;  %v1806_v63 = vadd.f32 %v1774_v12, %v4209_v4  ;;  %v1391_v48 = vsub.f32 %v4952_v46, %v3920_v29  ;;  %v1555_v29 = vmax.f32 %v1523_v24, 1e-07 }
 0x38a   : > { %vm1920_vm2 = vcmp.ge.f32.partialorder %v3945_v8, %v1869_v36  ;;  %v1775_v8 = vsub.f32 0.0, %v1739_v10 }
 0x38b   : > { %v4220_v38 = vsel %vm1920_vm2, %v3287_v17, 128  ;;  %v4224_v6 = vsel %vm1107_vm3, %v1806_v63, -inf }
 0x38c   : > { %v3058_v28 = vpop.eup %3057  ;;  %1896 = vmax.xlane.f32.xlu0 %v4224_v6  ;;  %v2141_v13 = vshra.s32 %v4220_v38, 16 }
 0x38d   : > { %v1451_v16 = vmul.f32 0.6931472, %v3058_v28  ;;  %v1357_v58 = vpop.xlane.xlu0 %1356  ;;  %v3060_v36 = vpop.eup %3059 }
 0x38e   : > { %3063 = vlog2.f32 %v1357_v58  ;;  %v3062_v62 = vpop.eup %3061  ;;  %v4236_v37 = vcvt.s32.f32 %v2141_v13  ;;  %v1741_v55 = vmul.f32 0.6931472, %v3060_v36 }
 0x38f   : > { %v4231_v12 = vsub.f32 %v1391_v48, %v1451_v16  ;;  %3065 = vlog2.f32 %v1681_v23  ;;  %v1649_v48 = vmul.f32 0.6931472, %v3062_v62 }
 0x390   : > { %4954 = vst [vmem:[#allocation12_spill] sm:$0xff] %v4236_v37 }
 0x391   : > { %4953 = vst [vmem:[#allocation11_spill] sm:$0xff] %v4231_v12  ;;  %v1871_v63 = vpop.xlane.xlu2 %1870  ;;  %v1807_v4 = vadd.f32 %v1775_v8, %v4231_v12  ;;  %v1776_v12 = vsub.f32 0.0, %v1741_v55  ;;  %v1682_v51 = vsub.f32 0.0, %v1649_v48 }
 0x392   : > { %vm1921_vm4 = vcmp.ge.f32.partialorder %v3961_v60, %v1871_v63  ;;  %v4955_v60 = vld [vmem:[#allocation15_spill] sm:$0xff] }
 0x393   : > { %v4239_v28 = vsel %vm1921_vm4, %v3287_v17, 128  ;;  %v4243_v10 = vsel %vm1107_vm3, %v1807_v4, -inf  ;;  %v4956_v16 = vclamps-f32 %v4955_v60, 3.4028235e+38  ;;  %v1587_v4 = vmin.f32 %v1555_v29, 0.9999999 }
 0x394   : > { %v3064_v46 = vpop.eup %3063  ;;  %2144 = vmin.xlane.f32.xlu0 %v4236_v37  ;;  %1898 = vmax.xlane.f32.xlu1 %v4243_v10  ;;  %v2155_v23 = vshra.s32 %v4239_v28, 16  ;;  %v4957_v29 = vld [vmem:[#allocation16_spill] sm:$0xff] }
 0x395   : > { %v1392_v58 = vsub.f32 %v4956_v16, %v3934_v5  ;;  %v1453_v8 = vmul.f32 0.6931472, %v3064_v46  ;;  %v1359_v13 = vpop.xlane.xlu1 %1358  ;;  %v3066_v24 = vpop.eup %3065  ;;  %v4958_v55 = vclamps-f32 %v4957_v29, 3.4028235e+38 }
 0x396   : > { %3067 = vlog2.f32 %v1359_v13  ;;  %v4251_v63 = vcvt.s32.f32 %v2155_v23  ;;  %v1743_v37 = vmul.f32 0.6931472, %v3066_v24 }
 0x397   : > { %v4253_v36 = vsub.f32 %v1392_v58, %v1453_v8  ;;  %3069 = vlog2.f32 %v1587_v4  ;;  %v1393_v60 = vsub.f32 %v4958_v55, %v3951_v9 }
 0x398   : > { %2158 = vmin.xlane.f32.xlu2 %v4251_v63  ;;  %3071 = vlog2.f32 %v1682_v51  ;;  %v1777_v58 = vsub.f32 0.0, %v1743_v37 }
 0x399   : > { %v1873_v30 = vpop.xlane.xlu0 %1872  ;;  %v1808_v62 = vadd.f32 %v1776_v12, %v4253_v36 }
 0x39a   : > { %vm1922_vm1 = vcmp.ge.f32.partialorder %v3977_v35, %v1873_v30 }
 0x39b   : > { %v4258_v5 = vsel %vm1922_vm1, %v3287_v17, 128  ;;  %v4271_v35 = vsel %vm1107_vm3, %v1808_v62, -inf }
 0x39c   : > { %v3068_v46 = vpop.eup %3067  ;;  %v2169_v23 = vshra.s32 %v4258_v5, 16 }
 0x39d   : > { %v1455_v16 = vmul.f32 0.6931472, %v3068_v46  ;;  %v1361_v48 = vpop.xlane.xlu2 %1360  ;;  %v3070_v12 = vpop.eup %3069  ;;  %v1972_v46 = vand.u32 65535, %v4001_v43 }
 0x39e   : > { %3073 = vlog2.f32 %v1361_v48  ;;  %v4265_v8 = vcvt.s32.f32 %v2169_v23  ;;  %v3072_v13 = vpop.eup %3071  ;;  %v1651_v4 = vmul.f32 0.6931472, %v3070_v12 }
 0x39f   : > { %v4267_v30 = vsub.f32 %v1393_v60, %v1455_v16  ;;  %v1745_v23 = vmul.f32 0.6931472, %v3072_v13 }
 0x3a0   : > { %1900 = vmax.xlane.f32.xlu2 %v4271_v35  ;;  %2172 = vmin.xlane.f32.xlu1 %v4265_v8  ;;  %v1683_v60 = vsub.f32 0.0, %v1651_v4 }
 0x3a1   : > { %v1875_v51 = vpop.xlane.xlu1 %1874  ;;  %v1809_v9 = vadd.f32 %v1777_v58, %v4267_v30  ;;  %v1778_v12 = vsub.f32 0.0, %v1745_v23 }
 0x3a2   : > { %vm1923_vm5 = vcmp.ge.f32.partialorder %v3991_v3, %v1875_v51  ;;  %v4959_v3 = vld [vmem:[#allocation18_spill] sm:$0xff]  ;;  %v1974_v51 = vcvt.s32.f32 %v1972_v46  ;;  %3075 = vlog2.f32 %v1683_v60  ;;  %v1986_v46 = vand.u32 65535, %v4012_v57 }
 0x3a3   : > { %v4278_v37 = vsel %vm1923_vm5, %v3287_v17, 128  ;;  %v4282_v24 = vsel %vm1107_vm3, %v1809_v9, -inf  ;;  %v4960_v16 = vclamps-f32 %v4959_v3, 3.4028235e+38 }
 0x3a4   : > { %v3074_v62 = vpop.eup %3073  ;;  %1902 = vmax.xlane.f32.xlu0 %v4282_v24  ;;  %v2183_v55 = vshra.s32 %v4278_v37, 16  ;;  %v1988_v3 = vcvt.s32.f32 %v1986_v46 }
 0x3a5   : > { %v1457_v29 = vmul.f32 0.6931472, %v3074_v62  ;;  %v1394_v48 = vsub.f32 %v4960_v16, %v3967_v61 }
 0x3a6   : > { %v4297_v62 = vcvt.s32.f32 %v2183_v55 }
 0x3a7   : > { %v4294_v43 = vsub.f32 %v1394_v48, %v1457_v29 }
 0x3a8   : > { %v4290_v58 = vpop.xlane.xlu0 %1976  ;;  %v3076_v29 = vpop.eup %3075 }
 0x3a9   : > { %v1877_v9 = vpop.xlane.xlu2 %1876  ;;  %vm1978_vm6 = vcmp.eq.f32.partialorder %v4008_v49, %v4290_v58  ;;  %v1810_v23 = vadd.f32 %v1778_v12, %v4294_v43  ;;  %v1747_v16 = vmul.f32 0.6931472, %v3076_v29 }
 0x3aa   : > { %vm1924_vm7 = vcmp.ge.f32.partialorder %v4017_v14, %v1877_v9  ;;  %v1979_v13 = vsel %vm1978_vm6, %v1974_v51, inf  ;;  %v4961_v9 = vld [vmem:[#allocation21_spill] sm:$0xff] }
 0x3ab   : > { %v4300_v4 = vsel %vm1924_vm7, %v3287_v17, 128  ;;  %1980 = vmin.xlane.f32.xlu1 %v1979_v13  ;;  %v4313_v60 = vsel %vm1107_vm3, %v1810_v23, -inf  ;;  %v4962_v12 = vclamps-f32 %v4961_v9, 3.4028235e+38 }
 0x3ac   : > { %2186 = vmin.xlane.f32.xlu0 %v4297_v62  ;;  %v2197_v61 = vshra.s32 %v4300_v4, 16 }
 0x3ad   : > { %v1395_v13 = vsub.f32 %v4962_v12, %v3979_v40  ;;  %v2000_v40 = vand.u32 65535, %v4024_v15 }
 0x3ae   : > { %v4305_v49 = vcvt.s32.f32 %v2197_v61 }
 0x3b0   : > { %2200 = vmin.xlane.f32.xlu2 %v4305_v49  ;;  %v1363_v14 = vpop.xlane.xlu0 %1362 }
 0x3b1   : > { %3077 = vlog2.f32 %v1363_v14  ;;  %v4309_v55 = vpop.xlane.xlu2 %1990  ;;  %v1779_v14 = vsub.f32 0.0, %v1747_v16 }
 0x3b2   : > { %vm1992_vm8 = vcmp.eq.f32.partialorder %v4026_v31, %v4309_v55 }
 0x3b3   : > { %1904 = vmax.xlane.f32.xlu1 %v4313_v60  ;;  %v1993_v57 = vsel %vm1992_vm8, %v1988_v3, inf  ;;  %v4318_v48 = vpop.xlane.xlu1 %2004 }
 0x3b4   : > { %1994 = vmin.xlane.f32.xlu0 %v1993_v57  ;;  %vm2006_vm11 = vcmp.eq.f32.partialorder %v4033_v25, %v4318_v48 }
 0x3b7   : > { %v3078_v51 = vpop.eup %3077 }
 0x3b8   : > { %v1459_v61 = vmul.f32 0.6931472, %v3078_v51  ;;  %v1879_v46 = vpop.xlane.xlu0 %1878 }
 0x3b9   : > { %vm1925_vm9 = vcmp.ge.f32.partialorder %v4051_v39, %v1879_v46  ;;  %v2014_v39 = vand.u32 65535, %v4047_v22  ;;  %v2028_v22 = vand.u32 65535, %v4073_v45 }
 0x3ba   : > { %v4324_v23 = vsub.f32 %v1395_v13, %v1459_v61  ;;  %v4327_v31 = vsel %vm1925_vm9, %v3287_v17, 128  ;;  %v2002_v13 = vcvt.s32.f32 %v2000_v40 }
 0x3bb   : > { %v2211_v3 = vshra.s32 %v4327_v31, 16  ;;  %v1881_v16 = vpop.xlane.xlu1 %1880  ;;  %v2016_v61 = vcvt.s32.f32 %v2014_v39 }
 0x3bc   : > { %4963 = vst [vmem:[#allocation13_spill] sm:$0xff] %v4324_v23  ;;  %v1811_v29 = vadd.f32 %v1779_v14, %v4324_v23  ;;  %vm1926_vm10 = vcmp.ge.f32.partialorder %v4057_v27, %v1881_v16  ;;  %v2007_v15 = vsel %vm2006_vm11, %v2002_v13, inf  ;;  %v2056_v13 = vand.u32 65535, %v4111_v41  ;;  %v4968_v23 = vld [vmem:[#allocation26_spill] sm:$0xff] }
 0x3bd   : > { %v4331_v57 = vcvt.s32.f32 %v2211_v3  ;;  %v4349_v46 = vsel %vm1926_vm10, %v3287_v17, 128 }
 0x3be   : > { %v4335_v9 = vsel %vm1107_vm3, %v1811_v29, -inf  ;;  %v2225_v27 = vshra.s32 %v4349_v46, 16  ;;  %v2030_v29 = vcvt.s32.f32 %v2028_v22  ;;  %v2058_v41 = vcvt.s32.f32 %v2056_v13 }
 0x3bf   : > { %1906 = vmax.xlane.f32.xlu2 %v4335_v9  ;;  %2214 = vmin.xlane.f32.xlu1 %v4331_v57 }
 0x3c0   : > { %v4341_v51 = vpop.xlane.xlu0 %2018  ;;  %v4367_v16 = vcvt.s32.f32 %v2225_v27 }
 0x3c1   : > { %vm2020_vm3 = vcmp.eq.f32.partialorder %v4066_v19, %v4341_v51 }
 0x3c2   : > { %v2021_v14 = vsel %vm2020_vm3, %v2016_v61, inf }
 0x3c4   : > { %v1883_v12 = vpop.xlane.xlu2 %1882 }
 0x3c5   : > { %vm1927_vm12 = vcmp.ge.f32.partialorder %v4077_v0, %v1883_v12  ;;  %v2042_v12 = vand.u32 65535, %v4088_v33 }
 0x3c6   : > { %v4362_v40 = vsel %vm1927_vm12, %v3287_v17, 128 }
 0x3c7   : > { %2008 = vmin.xlane.f32.xlu2 %v2007_v15  ;;  %2022 = vmin.xlane.f32.xlu1 %v2021_v14  ;;  %v2044_v22 = vcvt.s32.f32 %v2042_v12 }
 0x3cb   : > { %v1885_v25 = vpop.xlane.xlu0 %1884  ;;  %v4356_v19 = vpop.xlane.xlu1 %2046 }
 0x3cc   : > { %v4354_v3 = vpop.xlane.xlu2 %2032  ;;  %vm1928_vm13 = vcmp.ge.f32.partialorder %v4099_v50, %v1885_v25  ;;  %vm2048_vm15 = vcmp.eq.f32.partialorder %v4094_v11, %v4356_v19 }
 0x3cd   : > { %vm2034_vm14 = vcmp.eq.f32.partialorder %v4092_v53, %v4354_v3  ;;  %v4365_v45 = vsel %vm1928_vm13, %v3287_v17, 128  ;;  %v2239_v53 = vshra.s32 %v4362_v40, 16  ;;  %v2049_v27 = vsel %vm2048_vm15, %v2044_v22, inf }
 0x3ce   : > { %v2035_v39 = vsel %vm2034_vm14, %v2030_v29, inf  ;;  %v2253_v0 = vshra.s32 %v4365_v45, 16 }
 0x3cf   : > { %2036 = vmin.xlane.f32.xlu0 %v2035_v39  ;;  %2228 = vmin.xlane.f32.xlu2 %v4367_v16  ;;  %v4381_v14 = vcvt.s32.f32 %v2239_v53 }
 0x3d0   : > { %v4372_v50 = vcvt.s32.f32 %v2253_v0  ;;  %v2084_v0 = vand.u32 65535, %v4148_v34 }
 0x3d2   : > { %2256 = vmin.xlane.f32.xlu1 %v4372_v50 }
 0x3d3   : > { %v4377_v61 = vpop.xlane.xlu0 %2060 }
 0x3d4   : > { %v1887_v15 = vpop.xlane.xlu1 %1886  ;;  %vm2062_vm2 = vcmp.eq.f32.partialorder %v4116_v26, %v4377_v61 }
 0x3d5   : > { %vm1929_vm0 = vcmp.ge.f32.partialorder %v4120_v54, %v1887_v15  ;;  %v2063_v25 = vsel %vm2062_vm2, %v2058_v41, inf  ;;  %v2070_v54 = vand.u32 65535, %v4133_v59  ;;  %v2086_v15 = vcvt.s32.f32 %v2084_v0 }
 0x3d6   : > { %v4385_v33 = vsel %vm1929_vm0, %v3287_v17, 128  ;;  %v2098_v41 = vand.u32 65535, %v4166_v20 }
 0x3d7   : > { %2242 = vmin.xlane.f32.xlu0 %v4381_v14  ;;  %2050 = vmin.xlane.f32.xlu2 %v2049_v27  ;;  %v2267_v11 = vshra.s32 %v4385_v33, 16  ;;  %v2072_v53 = vcvt.s32.f32 %v2070_v54 }
 0x3d8   : > { %v2100_v54 = vcvt.s32.f32 %v2098_v41 }
 0x3d9   : > { %v4391_v39 = vcvt.s32.f32 %v2267_v11 }
 0x3da   : > { %2064 = vmin.xlane.f32.xlu1 %v2063_v25 }
 0x3dc   : > { %v1889_v29 = vpop.xlane.xlu2 %1888 }
 0x3dd   : > { %vm1930_vm4 = vcmp.ge.f32.partialorder %v4137_v32, %v1889_v29 }
 0x3de   : > { %v4405_v59 = vsel %vm1930_vm4, %v3287_v17, 128 }
 0x3df   : > { %2270 = vmin.xlane.f32.xlu2 %v4391_v39 }
 0x3e3   : > { %v1891_v26 = vpop.xlane.xlu0 %1890  ;;  %v4399_v13 = vpop.xlane.xlu1 %2088 }
 0x3e4   : > { %v4397_v12 = vpop.xlane.xlu2 %2074  ;;  %vm1931_vm1 = vcmp.ge.f32.partialorder %v4159_v2, %v1891_v26  ;;  %vm2090_vm6 = vcmp.eq.f32.partialorder %v4154_v42, %v4399_v13  ;;  %v2112_v42 = vand.u32 65535, %v4181_v1 }
 0x3e5   : > { %vm2076_vm5 = vcmp.eq.f32.partialorder %v4152_v52, %v4397_v12  ;;  %v4408_v22 = vsel %vm1931_vm1, %v3287_v17, 128  ;;  %v2091_v32 = vsel %vm2090_vm6, %v2086_v15, inf  ;;  %v2281_v52 = vshra.s32 %v4405_v59, 16 }
 0x3e6   : > { %v2077_v34 = vsel %vm2076_vm5, %v2072_v53, inf  ;;  %v2295_v27 = vshra.s32 %v4408_v22, 16  ;;  %v2114_v15 = vcvt.s32.f32 %v2112_v42  ;;  %vm2452_vm1 = vcmp.eq.s32.totalorder %v3287_v17, 6 }
 0x3e7   : > { %2078 = vmin.xlane.f32.xlu0 %v2077_v34  ;;  %2092 = vmin.xlane.f32.xlu2 %v2091_v32  ;;  %v4420_v11 = vcvt.s32.f32 %v2281_v52 }
 0x3e8   : > { %v4413_v2 = vcvt.s32.f32 %v2295_v27 }
 0x3ea   : > { %2298 = vmin.xlane.f32.xlu1 %v4413_v2 }
 0x3eb   : > { %v4418_v25 = vpop.xlane.xlu0 %2102 }
 0x3ec   : > { %vm2104_vm7 = vcmp.eq.f32.partialorder %v4173_v56, %v4418_v25 }
 0x3ed   : > { %v2105_v26 = vsel %vm2104_vm7, %v2100_v54, inf }
 0x3ef   : > { %2284 = vmin.xlane.f32.xlu0 %v4420_v11  ;;  %v1893_v29 = vpop.xlane.xlu1 %1892 }
 0x3f0   : > { %vm1932_vm8 = vcmp.ge.f32.partialorder %v4185_v18, %v1893_v29  ;;  %v2126_v18 = vand.u32 65535, %v4200_v44  ;;  %v2140_v44 = vand.u32 65535, %v4220_v38 }
 0x3f1   : > { %v4428_v0 = vsel %vm1932_vm8, %v3287_v17, 128 }
 0x3f2   : > { %2106 = vmin.xlane.f32.xlu1 %v2105_v26  ;;  %v2309_v20 = vshra.s32 %v4428_v0, 16  ;;  %v2128_v27 = vcvt.s32.f32 %v2126_v18  ;;  %v2142_v26 = vcvt.s32.f32 %v2140_v44 }
 0x3f3   : > { %v4431_v53 = vpop.xlane.xlu2 %2116 }
 0x3f4   : > { %vm2118_vm9 = vcmp.eq.f32.partialorder %v4192_v47, %v4431_v53  ;;  %v4435_v56 = vcvt.s32.f32 %v2309_v20  ;;  %v4964_v20 = vld [vmem:[#allocation12_spill] sm:$0xff] }
 0x3f5   : > { %v2119_v1 = vsel %vm2118_vm9, %v2114_v15, inf }
 0x3f6   : > { %2312 = vmin.xlane.f32.xlu2 %v4435_v56 }
 0x3f7   : > { %2120 = vmin.xlane.f32.xlu0 %v2119_v1 }
 0x3fb   : > { %v1895_v34 = vpop.xlane.xlu2 %1894  ;;  %v4439_v32 = vpop.xlane.xlu1 %2130 }
 0x3fc   : > { %vm1933_vm10 = vcmp.ge.f32.partialorder %v4213_v7, %v1895_v34  ;;  %vm2132_vm11 = vcmp.eq.f32.partialorder %v4207_v21, %v4439_v32  ;;  %v2154_v7 = vand.u32 65535, %v4239_v28 }
 0x3fd   : > { %v4445_v52 = vsel %vm1933_vm10, %v3287_v17, 128  ;;  %v2133_v47 = vsel %vm2132_vm11, %v2128_v27, inf }
 0x3fe   : > { %2134 = vmin.xlane.f32.xlu2 %v2133_v47  ;;  %v2323_v41 = vshra.s32 %v4445_v52, 16  ;;  %v2156_v18 = vcvt.s32.f32 %v2154_v7  ;;  %v2168_v47 = vand.u32 65535, %v4258_v5 }
 0x3ff   : > { %v1897_v42 = vpop.xlane.xlu0 %1896 }
 0x400   : > { %v4448_v29 = vcvt.s32.f32 %v2323_v41  ;;  %vm1934_vm3 = vcmp.ge.f32.partialorder %v4224_v6, %v1897_v42  ;;  %v2170_v7 = vcvt.s32.f32 %v2168_v47 }
 0x401   : > { %v4460_v15 = vsel %vm1934_vm3, %v3287_v17, 128 }
 0x402   : > { %2326 = vmin.xlane.f32.xlu0 %v4448_v29  ;;  %v2337_v34 = vshra.s32 %v4460_v15, 16 }
 0x404   : > { %v4475_v41 = vcvt.s32.f32 %v2337_v34 }
 0x407   : > { %v1899_v54 = vpop.xlane.xlu1 %1898  ;;  %v4454_v21 = vpop.xlane.xlu0 %2144 }
 0x408   : > { %vm1935_vm12 = vcmp.ge.f32.partialorder %v4243_v10, %v1899_v54  ;;  %vm2146_vm13 = vcmp.eq.f32.partialorder %v4964_v20, %v4454_v21 }
 0x409   : > { %v4463_v1 = vsel %vm1935_vm12, %v3287_v17, 128  ;;  %v2147_v38 = vsel %vm2146_vm13, %v2142_v26, inf }
 0x40a   : > { %2148 = vmin.xlane.f32.xlu1 %v2147_v38  ;;  %v2351_v6 = vshra.s32 %v4463_v1, 16  ;;  %v2182_v38 = vand.u32 65535, %v4278_v37 }
 0x40b   : > { %v4466_v28 = vpop.xlane.xlu2 %2158 }
 0x40c   : > { %vm2160_vm14 = vcmp.eq.f32.partialorder %v4251_v63, %v4466_v28  ;;  %v4470_v10 = vcvt.s32.f32 %v2351_v6  ;;  %v2184_v47 = vcvt.s32.f32 %v2182_v38 }
 0x40d   : > { %v2161_v27 = vsel %vm2160_vm14, %v2156_v18, inf  ;;  %v2196_v18 = vand.u32 65535, %v4300_v4 }
 0x40e   : > { %2162 = vmin.xlane.f32.xlu0 %v2161_v27  ;;  %2354 = vmin.xlane.f32.xlu2 %v4470_v10 }
 0x40f   : > { %v2198_v4 = vcvt.s32.f32 %v2196_v18 }
 0x412   : > { %2340 = vmin.xlane.f32.xlu1 %v4475_v41 }
 0x413   : > { %v1901_v42 = vpop.xlane.xlu2 %1900  ;;  %v4478_v44 = vpop.xlane.xlu1 %2172 }
 0x414   : > { %vm1936_vm15 = vcmp.ge.f32.partialorder %v4271_v35, %v1901_v42  ;;  %vm2174_vm0 = vcmp.eq.f32.partialorder %v4265_v8, %v4478_v44  ;;  %v1983_v35 = vcvt.f32.s32 %v4290_v58 }
 0x415   : > { %v4484_v63 = vsel %vm1936_vm15, %v3287_v17, 128  ;;  %v2175_v54 = vsel %vm2174_vm0, %v2170_v7, inf }
 0x416   : > { %2176 = vmin.xlane.f32.xlu2 %v2175_v54  ;;  %v2365_v5 = vshra.s32 %v4484_v63, 16  ;;  %v1984_v6 = vshll.u32 %v1983_v35, 16 }
 0x417   : > { %v1903_v26 = vpop.xlane.xlu0 %1902 }
 0x418   : > { %v4487_v20 = vcvt.s32.f32 %v2365_v5  ;;  %vm1937_vm2 = vcmp.ge.f32.partialorder %v4282_v24, %v1903_v26  ;;  %v4965_v5 = vld [vmem:[#allocation22_spill] sm:$0xff] }
 0x419   : > { %v4499_v42 = vsel %vm1937_vm2, %v3287_v17, 128 }
 0x41a   : > { %2368 = vmin.xlane.f32.xlu0 %v4487_v20  ;;  %v2379_v54 = vshra.s32 %v4499_v42, 16 }
 0x41e   : > { %v1981_v8 = vpop.xlane.xlu1 %1980 }
 0x41f   : > { %v1982_v34 = vcvt.f32.s32 %v1981_v8  ;;  %v4494_v27 = vpop.xlane.xlu0 %2186 }
 0x420   : > { %vm2188_vm4 = vcmp.eq.f32.partialorder %v4297_v62, %v4494_v27  ;;  %v1997_v62 = vcvt.f32.s32 %v4309_v55 }
 0x421   : > { %v1985_v7 = vadd.s32 %v1984_v6, %v1982_v34  ;;  %v2189_v37 = vsel %vm2188_vm4, %v2184_v47, inf }
 0x422   : > { %2190 = vmin.xlane.f32.xlu1 %v2189_v37  ;;  %v1998_v6 = vshll.u32 %v1997_v62, 16 }
 0x423   : > { %v2420_v24 = vcvt.s32.f32 %v1985_v7  ;;  %v4509_v58 = vpop.xlane.xlu2 %2200 }
 0x424   : > { %vm2202_vm5 = vcmp.eq.f32.partialorder %v4305_v49, %v4509_v58  ;;  %v4523_v49 = vcvt.s32.f32 %v2379_v54 }
 0x425   : > { %v2453_v26 = vsel %vm2452_vm1, %v2420_v24, %v4965_v5  ;;  %v2203_v38 = vsel %vm2202_vm5, %v2198_v4, inf  ;;  %v4966_v24 = vld [vmem:[#allocation24_spill] sm:$0xff] }
 0x426   : > { %2485 = vst [vmem:[%s4507_s12] sm:$0xff] %v2453_v26  ;;  %2204 = vmin.xlane.f32.xlu0 %v2203_v38  ;;  %v1905_v35 = vpop.xlane.xlu1 %1904 }
 0x427   : > { %vm1938_vm6 = vcmp.ge.f32.partialorder %v4313_v60, %v1905_v35  ;;  %v1995_v8 = vpop.xlane.xlu0 %1994  ;;  %v2210_v60 = vand.u32 65535, %v4327_v31  ;;  %v2011_v35 = vcvt.f32.s32 %v4318_v48  ;;  %v2039_v48 = vcvt.f32.s32 %v4354_v3 }
 0x428   : > { %v4521_v55 = vsel %vm1938_vm6, %v3287_v17, 128  ;;  %v1996_v18 = vcvt.f32.s32 %v1995_v8  ;;  %v2025_v8 = vcvt.f32.s32 %v4341_v51 }
 0x429   : > { %v2393_v34 = vshra.s32 %v4521_v55, 16  ;;  %v2212_v5 = vcvt.s32.f32 %v2210_v60 }
 0x42a   : > { %v1999_v47 = vadd.s32 %v1998_v6, %v1996_v18  ;;  %2382 = vmin.xlane.f32.xlu1 %v4523_v49 }
 0x42b   : > { %v4527_v7 = vcvt.s32.f32 %v2393_v34  ;;  %v2012_v34 = vshll.u32 %v2011_v35, 16 }
 0x42c   : > { %v2421_v37 = vcvt.s32.f32 %v1999_v47 }
 0x42d   : > { %2396 = vmin.xlane.f32.xlu2 %v4527_v7 }
 0x42e   : > { %v2454_v4 = vsel %vm2452_vm1, %v2421_v37, %v4966_v24 }
 0x42f   : > { %2486 = vst [vmem:[%s4507_s12 + $0x8] sm:$0xff] %v2454_v4  ;;  %v2224_v4 = vand.u32 65535, %v4349_v46 }
 0x431   : > { %v2226_v46 = vcvt.s32.f32 %v2224_v4  ;;  %v4969_v4 = vld [vmem:[#allocation27_spill] sm:$0xff] }
 0x432   : > { %v1907_v62 = vpop.xlane.xlu2 %1906  ;;  %v4535_v54 = vpop.xlane.xlu1 %2214 }
 0x433   : > { %vm1939_vm7 = vcmp.ge.f32.partialorder %v4335_v9, %v1907_v62  ;;  %vm2216_vm8 = vcmp.eq.f32.partialorder %v4331_v57, %v4535_v54  ;;  %v2026_v57 = vshll.u32 %v2025_v8, 16 }
 0x434   : > { %v4541_v26 = vsel %vm1939_vm7, %v3287_v17, 128  ;;  %v2217_v38 = vsel %vm2216_vm8, %v2212_v5, inf  ;;  %v2252_v5 = vand.u32 65535, %v4365_v45 }
 0x435   : > { %2218 = vmin.xlane.f32.xlu1 %v2217_v38  ;;  %v2407_v31 = vshra.s32 %v4541_v26, 16  ;;  %v4967_v38 = vld [vmem:[#allocation25_spill] sm:$0xff] }
 0x437   : > { %v4546_v6 = vcvt.s32.f32 %v2407_v31 }
 0x439   : > { %2410 = vmin.xlane.f32.xlu0 %v4546_v6 }
 0x43a   : > { %v2009_v18 = vpop.xlane.xlu2 %2008  ;;  %v2023_v9 = vpop.xlane.xlu1 %2022 }
 0x43b   : > { %v2010_v47 = vcvt.f32.s32 %v2009_v18  ;;  %v2024_v37 = vcvt.f32.s32 %v2023_v9  ;;  %v2040_v18 = vshll.u32 %v2039_v48, 16 }
 0x43d   : > { %v2013_v60 = vadd.s32 %v2012_v34, %v2010_v47  ;;  %v2027_v24 = vadd.s32 %v2026_v57, %v2024_v37  ;;  %v2238_v57 = vand.u32 65535, %v4362_v40  ;;  %v2254_v47 = vcvt.s32.f32 %v2252_v5 }
 0x43e   : > { %v2067_v40 = vcvt.f32.s32 %v4377_v61 }
 0x43f   : > { %v2422_v62 = vcvt.s32.f32 %v2013_v60  ;;  %v2423_v51 = vcvt.s32.f32 %v2027_v24  ;;  %v2053_v60 = vcvt.f32.s32 %v4356_v19 }
 0x441   : > { %v2455_v31 = vsel %vm2452_vm1, %v2422_v62, %v4967_v38  ;;  %v2456_v35 = vsel %vm2452_vm1, %v2423_v51, %v4968_v23 }
 0x442   : > { %v2037_v8 = vpop.xlane.xlu0 %2036  ;;  %2487 = vst [vmem:[%s4507_s12 + $0x10] sm:$0xff] %v2455_v31  ;;  %v4559_v34 = vpop.xlane.xlu2 %2228 }
 0x443   : > { %v2038_v9 = vcvt.f32.s32 %v2037_v8  ;;  %2488 = vst [vmem:[%s4507_s12 + $0x18] sm:$0xff] %v2456_v35  ;;  %vm2230_vm9 = vcmp.eq.f32.partialorder %v4367_v16, %v4559_v34  ;;  %v2240_v16 = vcvt.s32.f32 %v2238_v57  ;;  %v2266_v35 = vand.u32 65535, %v4385_v33 }
 0x444   : > { %v2231_v45 = vsel %vm2230_vm9, %v2226_v46, inf  ;;  %v2068_v8 = vshll.u32 %v2067_v40, 16 }
 0x445   : > { %v2041_v3 = vadd.s32 %v2040_v18, %v2038_v9  ;;  %2232 = vmin.xlane.f32.xlu2 %v2231_v45  ;;  %v4565_v37 = vpop.xlane.xlu1 %2256  ;;  %v2268_v45 = vcvt.s32.f32 %v2266_v35 }
 0x446   : > { %vm2258_vm10 = vcmp.eq.f32.partialorder %v4372_v50, %v4565_v37  ;;  %v2054_v50 = vshll.u32 %v2053_v60, 16  ;;  %v2081_v60 = vcvt.f32.s32 %v4397_v12 }
 0x447   : > { %v2424_v23 = vcvt.s32.f32 %v2041_v3  ;;  %v2259_v24 = vsel %vm2258_vm10, %v2254_v47, inf  ;;  %v4970_v3 = vld [vmem:[#allocation28_spill] sm:$0xff]  ;;  %v4971_v47 = vld [vmem:[#allocation29_spill] sm:$0xff] }
 0x448   : > { %2260 = vmin.xlane.f32.xlu1 %v2259_v24  ;;  %v2095_v24 = vcvt.f32.s32 %v4399_v13 }
 0x449   : > { %v2457_v48 = vsel %vm2452_vm1, %v2424_v23, %v4969_v4  ;;  %v2294_v4 = vand.u32 65535, %v4408_v22 }
 0x44a   : > { %2489 = vst [vmem:[%s4507_s12 + $0x20] sm:$0xff] %v2457_v48  ;;  %v4574_v62 = vpop.xlane.xlu0 %2242  ;;  %v2051_v51 = vpop.xlane.xlu2 %2050 }
 0x44b   : > { %vm2244_vm11 = vcmp.eq.f32.partialorder %v4381_v14, %v4574_v62  ;;  %v2052_v5 = vcvt.f32.s32 %v2051_v51 }
 0x44c   : > { %v2245_v19 = vsel %vm2244_vm11, %v2240_v16, inf  ;;  %v2082_v16 = vshll.u32 %v2081_v60, 16 }
 0x44d   : > { %2246 = vmin.xlane.f32.xlu0 %v2245_v19  ;;  %v2055_v38 = vadd.s32 %v2054_v50, %v2052_v5  ;;  %v2065_v31 = vpop.xlane.xlu1 %2064  ;;  %v2096_v50 = vshll.u32 %v2095_v24, 16  ;;  %v2280_v19 = vand.u32 65535, %v4405_v59 }
 0x44e   : > { %v2066_v18 = vcvt.f32.s32 %v2065_v31 }
 0x44f   : > { %v2425_v9 = vcvt.s32.f32 %v2055_v38  ;;  %v2296_v38 = vcvt.s32.f32 %v2294_v4 }
 0x450   : > { %v2069_v46 = vadd.s32 %v2068_v8, %v2066_v18  ;;  %v4972_v8 = vld [vmem:[#allocation30_spill] sm:$0xff] }
 0x451   : > { %v2458_v61 = vsel %vm2452_vm1, %v2425_v9, %v4970_v3  ;;  %v2282_v9 = vcvt.s32.f32 %v2280_v19 }
 0x452   : > { %2490 = vst [vmem:[%s4507_s12 + $0x28] sm:$0xff] %v2458_v61  ;;  %v2426_v14 = vcvt.s32.f32 %v2069_v46  ;;  %v4584_v57 = vpop.xlane.xlu2 %2270  ;;  %v4973_v46 = vld [vmem:[#allocation31_spill] sm:$0xff]  ;;  %v2109_v61 = vcvt.f32.s32 %v4418_v25 }
 0x453   : > { %vm2272_vm3 = vcmp.eq.f32.partialorder %v4391_v39, %v4584_v57 }
 0x454   : > { %v2459_v33 = vsel %vm2452_vm1, %v2426_v14, %v4971_v47  ;;  %v2273_v23 = vsel %vm2272_vm3, %v2268_v45, inf  ;;  %v2308_v45 = vand.u32 65535, %v4428_v0  ;;  %v2110_v47 = vshll.u32 %v2109_v61, 16  ;;  %v4974_v0 = vld [vmem:[#allocation32_spill] sm:$0xff] }
 0x455   : > { %2491 = vst [vmem:[%s4507_s12 + $0x30] sm:$0xff] %v2459_v33  ;;  %2274 = vmin.xlane.f32.xlu2 %v2273_v23  ;;  %v2123_v33 = vcvt.f32.s32 %v4431_v53  ;;  %v2137_v53 = vcvt.f32.s32 %v4439_v32 }
 0x456   : > { %v2310_v24 = vcvt.s32.f32 %v2308_v45  ;;  %v2165_v45 = vcvt.f32.s32 %v4466_v28 }
 0x45a   : > { %v2079_v48 = vpop.xlane.xlu0 %2078  ;;  %v2093_v51 = vpop.xlane.xlu2 %2092 }
 0x45b   : > { %v2080_v40 = vcvt.f32.s32 %v2079_v48  ;;  %v2094_v39 = vcvt.f32.s32 %v2093_v51  ;;  %v2124_v48 = vshll.u32 %v2123_v33, 16 }
 0x45d   : > { %v2083_v5 = vadd.s32 %v2082_v16, %v2080_v40  ;;  %v2097_v31 = vadd.s32 %v2096_v50, %v2094_v39  ;;  %v4596_v35 = vpop.xlane.xlu1 %2298 }
 0x45e   : > { %vm2300_vm12 = vcmp.eq.f32.partialorder %v4413_v2, %v4596_v35 }
 0x45f   : > { %v2427_v12 = vcvt.s32.f32 %v2083_v5  ;;  %v2428_v13 = vcvt.s32.f32 %v2097_v31  ;;  %v2301_v22 = vsel %vm2300_vm12, %v2296_v38, inf  ;;  %v4975_v5 = vld [vmem:[#allocation33_spill] sm:$0xff]  ;;  %v2322_v38 = vand.u32 65535, %v4445_v52 }
 0x460   : > { %2302 = vmin.xlane.f32.xlu1 %v2301_v22  ;;  %v2138_v31 = vshll.u32 %v2137_v53, 16  ;;  %v2151_v52 = vcvt.f32.s32 %v4454_v21  ;;  %v2364_v53 = vand.u32 65535, %v4484_v63  ;;  %v2193_v63 = vcvt.f32.s32 %v4494_v27 }
 0x461   : > { %v2460_v18 = vsel %vm2452_vm1, %v2427_v12, %v4972_v8  ;;  %v2461_v59 = vsel %vm2452_vm1, %v2428_v13, %v4973_v46  ;;  %v2324_v22 = vcvt.s32.f32 %v2322_v38 }
 0x462   : > { %2492 = vst [vmem:[%s4507_s12 + $0x38] sm:$0xff] %v2460_v18  ;;  %v4607_v3 = vpop.xlane.xlu0 %2284 }
 0x463   : > { %2493 = vst [vmem:[%s4507_s12 + $0x40] sm:$0xff] %v2461_v59  ;;  %vm2286_vm13 = vcmp.eq.f32.partialorder %v4420_v11, %v4607_v3  ;;  %v2350_v59 = vand.u32 65535, %v4463_v1 }
 0x464   : > { %v2287_v2 = vsel %vm2286_vm13, %v2282_v9, inf  ;;  %v4976_v9 = vld [vmem:[#allocation34_spill] sm:$0xff] }
 0x465   : > { %2288 = vmin.xlane.f32.xlu0 %v2287_v2  ;;  %v2107_v14 = vpop.xlane.xlu1 %2106  ;;  %v2152_v2 = vshll.u32 %v2151_v52, 16  ;;  %v2352_v33 = vcvt.s32.f32 %v2350_v59  ;;  %v2378_v52 = vand.u32 65535, %v4499_v42 }
 0x466   : > { %v2108_v23 = vcvt.f32.s32 %v2107_v14 }
 0x468   : > { %v2111_v60 = vadd.s32 %v2110_v47, %v2108_v23 }
 0x469   : > { %v4615_v4 = vpop.xlane.xlu2 %2312 }
 0x46a   : > { %v2121_v25 = vpop.xlane.xlu0 %2120  ;;  %v2429_v16 = vcvt.s32.f32 %v2111_v60  ;;  %vm2314_vm14 = vcmp.eq.f32.partialorder %v4435_v56, %v4615_v4 }
 0x46b   : > { %v2122_v11 = vcvt.f32.s32 %v2121_v25  ;;  %v2315_v40 = vsel %vm2314_vm14, %v2310_v24, inf  ;;  %v2166_v24 = vshll.u32 %v2165_v45, 16  ;;  %v2392_v45 = vand.u32 65535, %v4521_v55 }
 0x46c   : > { %v2462_v51 = vsel %vm2452_vm1, %v2429_v16, %v4974_v0  ;;  %2316 = vmin.xlane.f32.xlu2 %v2315_v40  ;;  %v2179_v40 = vcvt.f32.s32 %v4478_v44 }
 0x46d   : > { %v2125_v50 = vadd.s32 %v2124_v48, %v2122_v11  ;;  %2494 = vst [vmem:[%s4507_s12 + $0x48] sm:$0xff] %v2462_v51  ;;  %v4977_v48 = vld [vmem:[#allocation35_spill] sm:$0xff]  ;;  %v4978_v51 = vld [vmem:[#allocation36_spill] sm:$0xff] }
 0x46f   : > { %v2430_v39 = vcvt.s32.f32 %v2125_v50 }
 0x471   : > { %v2463_v19 = vsel %vm2452_vm1, %v2430_v39, %v4975_v5  ;;  %v2135_v56 = vpop.xlane.xlu2 %2134  ;;  %v2180_v5 = vshll.u32 %v2179_v40, 16 }
 0x472   : > { %2495 = vst [vmem:[%s4507_s12 + $0x50] sm:$0xff] %v2463_v19  ;;  %v2136_v12 = vcvt.f32.s32 %v2135_v56  ;;  %v2366_v56 = vcvt.s32.f32 %v2364_v53 }
 0x474   : > { %v2139_v13 = vadd.s32 %v2138_v31, %v2136_v12  ;;  %v4979_v12 = vld [vmem:[#allocation20_spill] sm:$0xff] }
 0x475   : > { %v4629_v8 = vpop.xlane.xlu0 %2326 }
 0x476   : > { %v2431_v18 = vcvt.s32.f32 %v2139_v13  ;;  %vm2328_vm15 = vcmp.eq.f32.partialorder %v4448_v29, %v4629_v8  ;;  %v2336_v29 = vand.u32 65535, %v4460_v15 }
 0x477   : > { %v2329_v32 = vsel %vm2328_vm15, %v2324_v22, inf }
 0x478   : > { %v2464_v46 = vsel %vm2452_vm1, %v2431_v18, %v4976_v9  ;;  %2330 = vmin.xlane.f32.xlu0 %v2329_v32  ;;  %v2338_v11 = vcvt.s32.f32 %v2336_v29  ;;  %v2194_v18 = vshll.u32 %v2193_v63, 16  ;;  %v2207_v32 = vcvt.f32.s32 %v4509_v58 }
 0x479   : > { %2496 = vst [vmem:[%s4507_s12 + $0x58] sm:$0xff] %v2464_v46  ;;  %v2380_v29 = vcvt.s32.f32 %v2378_v52  ;;  %v2277_v52 = vcvt.f32.s32 %v4584_v57 }
 0x47d   : > { %v2149_v61 = vpop.xlane.xlu1 %2148 }
 0x47e   : > { %v2150_v14 = vcvt.f32.s32 %v2149_v61 }
 0x480   : > { %v2153_v47 = vadd.s32 %v2152_v2, %v2150_v14  ;;  %v4980_v14 = vld [vmem:[#allocation17_spill] sm:$0xff] }
 0x481   : > { %v4641_v23 = vpop.xlane.xlu2 %2354  ;;  %v2163_v60 = vpop.xlane.xlu0 %2162 }
 0x482   : > { %v2432_v25 = vcvt.s32.f32 %v2153_v47  ;;  %vm2356_vm0 = vcmp.eq.f32.partialorder %v4470_v10, %v4641_v23  ;;  %v2164_v21 = vcvt.f32.s32 %v2163_v60  ;;  %v2394_v60 = vcvt.s32.f32 %v2392_v45 }
 0x483   : > { %v2357_v1 = vsel %vm2356_vm0, %v2352_v33, inf }
 0x484   : > { %v2465_v28 = vsel %vm2452_vm1, %v2432_v25, %v4977_v48  ;;  %v2167_v16 = vadd.s32 %v2166_v24, %v2164_v21  ;;  %2358 = vmin.xlane.f32.xlu2 %v2357_v1  ;;  %v4981_v24 = vld [vmem:[#allocation2_spill] sm:$0xff]  ;;  %v2221_v1 = vcvt.f32.s32 %v4535_v54  ;;  %v2235_v54 = vcvt.f32.s32 %v4559_v34 }
 0x485   : > { %2497 = vst [vmem:[%s4507_s12 + $0x60] sm:$0xff] %v2465_v28  ;;  %v4649_v15 = vpop.xlane.xlu1 %2340 }
 0x486   : > { %v2433_v0 = vcvt.s32.f32 %v2167_v16  ;;  %vm2342_vm2 = vcmp.eq.f32.partialorder %v4475_v41, %v4649_v15  ;;  %v2222_v28 = vshll.u32 %v2221_v1, 16 }
 0x487   : > { %v2343_v10 = vsel %vm2342_vm2, %v2338_v11, inf }
 0x488   : > { %v2466_v50 = vsel %vm2452_vm1, %v2433_v0, %v4978_v51  ;;  %2344 = vmin.xlane.f32.xlu1 %v2343_v10 }
 0x489   : > { %2498 = vst [vmem:[%s4507_s12 + $0x68] sm:$0xff] %v2466_v50  ;;  %v2177_v39 = vpop.xlane.xlu2 %2176 }
 0x48a   : > { %v2178_v19 = vcvt.f32.s32 %v2177_v39  ;;  %v2236_v39 = vshll.u32 %v2235_v54, 16 }
 0x48c   : > { %v2181_v38 = vadd.s32 %v2180_v5, %v2178_v19 }
 0x48d   : > { %v4659_v44 = vpop.xlane.xlu0 %2368 }
 0x48e   : > { %v2434_v31 = vcvt.s32.f32 %v2181_v38  ;;  %vm2370_vm4 = vcmp.eq.f32.partialorder %v4487_v20, %v4659_v44  ;;  %v2208_v20 = vshll.u32 %v2207_v32, 16  ;;  %v4984_v32 = vld [vmem:[#allocation4_spill] sm:$0xff] }
 0x48f   : > { %v2371_v41 = vsel %vm2370_vm4, %v2366_v56, inf }
 0x490   : > { %v2467_v13 = vsel %vm2452_vm1, %v2434_v31, %v4979_v12  ;;  %2372 = vmin.xlane.f32.xlu0 %v2371_v41 }
 0x491   : > { %2499 = vst [vmem:[%s4507_s12 + $0x70] sm:$0xff] %v2467_v13  ;;  %v4983_v13 = vld [vmem:[#allocation3_spill] sm:$0xff] }
 0x495   : > { %v2191_v22 = vpop.xlane.xlu1 %2190 }
 0x496   : > { %v2192_v9 = vcvt.f32.s32 %v2191_v22 }
 0x498   : > { %v2195_v46 = vadd.s32 %v2194_v18, %v2192_v9 }
 0x499   : > { %v2205_v59 = vpop.xlane.xlu0 %2204 }
 0x49a   : > { %v2435_v61 = vcvt.s32.f32 %v2195_v46  ;;  %v2206_v2 = vcvt.f32.s32 %v2205_v59  ;;  %v4985_v59 = vld [vmem:[#allocation23_spill] sm:$0xff] }
 0x49c   : > { %v2468_v47 = vsel %vm2452_vm1, %v2435_v61, %v4980_v14  ;;  %v2209_v27 = vadd.s32 %v2208_v20, %v2206_v2  ;;  %v2278_v2 = vshll.u32 %v2277_v52, 16 }
 0x49d   : > { %2500 = vst [vmem:[%s4507_s12 + $0x78] sm:$0xff] %v2468_v47  ;;  %v4675_v33 = vpop.xlane.xlu1 %2382 }
 0x49e   : > { %v2436_v58 = vcvt.s32.f32 %v2209_v27  ;;  %vm2384_vm5 = vcmp.eq.f32.partialorder %v4523_v49, %v4675_v33  ;;  %v2406_v49 = vand.u32 65535, %v4541_v26  ;;  %v2263_v26 = vcvt.f32.s32 %v4565_v37  ;;  %v4986_v27 = vld [vmem:[#allocation5_spill] sm:$0xff] }
 0x49f   : > { %v2385_v42 = vsel %vm2384_vm5, %v2380_v29, inf }
 0x4a0   : > { %v2469_v25 = vsel %vm2452_vm1, %v2436_v58, %v4981_v24  ;;  %v4682_v55 = vpop.xlane.xlu2 %2396  ;;  %2386 = vmin.xlane.f32.xlu1 %v2385_v42  ;;  %v2408_v40 = vcvt.s32.f32 %v2406_v49  ;;  %v2264_v56 = vshll.u32 %v2263_v26, 16  ;;  %v2305_v58 = vcvt.f32.s32 %v4596_v35 }
 0x4a1   : > { %2501 = vst [vmem:[%s4507_s12 + $0x80] sm:$0xff] %v2469_v25  ;;  %vm2398_vm6 = vcmp.eq.f32.partialorder %v4527_v7, %v4682_v55  ;;  %v4982_v7 = vld [vmem:[#allocation19_spill] sm:$0xff]  ;;  %v2319_v35 = vcvt.f32.s32 %v4615_v4 }
 0x4a2   : > { %v2399_v21 = vsel %vm2398_vm6, %v2394_v60, inf  ;;  %v2306_v42 = vshll.u32 %v2305_v58, 16  ;;  %v2291_v60 = vcvt.f32.s32 %v4607_v3 }
 0x4a3   : > { %2400 = vmin.xlane.f32.xlu2 %v2399_v21 }
 0x4a4   : > { %v2292_v1 = vshll.u32 %v2291_v60, 16 }
 0x4a8   : > { %v2219_v48 = vpop.xlane.xlu1 %2218 }
 0x4a9   : > { %v2220_v16 = vcvt.f32.s32 %v2219_v48 }
 0x4ab   : > { %v2223_v11 = vadd.s32 %v2222_v28, %v2220_v16  ;;  %v4987_v28 = vld [vmem:[#allocation7_spill] sm:$0xff] }
 0x4ac   : > { %v4689_v0 = vpop.xlane.xlu0 %2410 }
 0x4ad   : > { %v2437_v10 = vcvt.s32.f32 %v2223_v11  ;;  %vm2412_vm7 = vcmp.eq.f32.partialorder %v4546_v6, %v4689_v0  ;;  %v2249_v6 = vcvt.f32.s32 %v4574_v62 }
 0x4ae   : > { %v2413_v51 = vsel %vm2412_vm7, %v2408_v40, inf }
 0x4af   : > { %v2470_v50 = vsel %vm2452_vm1, %v2437_v10, %v4982_v7  ;;  %2414 = vmin.xlane.f32.xlu0 %v2413_v51  ;;  %v2250_v22 = vshll.u32 %v2249_v6, 16  ;;  %v4988_v10 = vld [vmem:[#allocation6_spill] sm:$0xff]  ;;  %v2320_v7 = vshll.u32 %v2319_v35, 16 }
 0x4b0   : > { %2502 = vst [vmem:[%s4507_s12 + $0x88] sm:$0xff] %v2470_v50 }
 0x4b8   : > { %v2233_v53 = vpop.xlane.xlu2 %2232 }
 0x4b9   : > { %v2234_v5 = vcvt.f32.s32 %v2233_v53  ;;  %v4989_v53 = vld [vmem:[#allocation8_spill] sm:$0xff] }
 0x4bb   : > { %v2237_v19 = vadd.s32 %v2236_v39, %v2234_v5  ;;  %v2261_v38 = vpop.xlane.xlu1 %2260  ;;  %v2333_v5 = vcvt.f32.s32 %v4629_v8 }
 0x4bc   : > { %v2262_v31 = vcvt.f32.s32 %v2261_v38 }
 0x4bd   : > { %v2438_v41 = vcvt.s32.f32 %v2237_v19  ;;  %v2334_v19 = vshll.u32 %v2333_v5, 16 }
 0x4be   : > { %v2265_v12 = vadd.s32 %v2264_v56, %v2262_v31  ;;  %v4990_v31 = vld [vmem:[#allocation9_spill] sm:$0xff] }
 0x4bf   : > { %v2471_v63 = vsel %vm2452_vm1, %v2438_v41, %v4983_v13 }
 0x4c0   : > { %v2247_v34 = vpop.xlane.xlu0 %2246  ;;  %2503 = vst [vmem:[%s4507_s12 + $0x90] sm:$0xff] %v2471_v63  ;;  %v2440_v37 = vcvt.s32.f32 %v2265_v12  ;;  %v2361_v12 = vcvt.f32.s32 %v4641_v23  ;;  %v2375_v23 = vcvt.f32.s32 %v4659_v44  ;;  %v2389_v44 = vcvt.f32.s32 %v4675_v33 }
 0x4c1   : > { %v2248_v18 = vcvt.f32.s32 %v2247_v34  ;;  %v2347_v34 = vcvt.f32.s32 %v4649_v15 }
 0x4c2   : > { %v2473_v9 = vsel %vm2452_vm1, %v2440_v37, %v4984_v32  ;;  %v2362_v63 = vshll.u32 %v2361_v12, 16 }
 0x4c3   : > { %v2251_v46 = vadd.s32 %v2250_v22, %v2248_v18  ;;  %2505 = vst [vmem:[%s4507_s12 + $0xa0] sm:$0xff] %v2473_v9  ;;  %v2348_v18 = vshll.u32 %v2347_v34, 16 }
 0x4c5   : > { %v2439_v62 = vcvt.s32.f32 %v2251_v46  ;;  %v4991_v46 = vld [vmem:[#allocation11_spill] sm:$0xff] }
 0x4c7   : > { %v2472_v20 = vsel %vm2452_vm1, %v2439_v62, %v4985_v59 }
 0x4c8   : > { %2504 = vst [vmem:[%s4507_s12 + $0x98] sm:$0xff] %v2472_v20  ;;  %v2275_v61 = vpop.xlane.xlu2 %2274  ;;  %v4992_v20 = vld [vmem:[#allocation10_spill] sm:$0xff] }
 0x4c9   : > { %v2276_v45 = vcvt.f32.s32 %v2275_v61 }
 0x4cb   : > { %v2279_v14 = vadd.s32 %v2278_v2, %v2276_v45  ;;  %v2376_v2 = vshll.u32 %v2375_v23, 16 }
 0x4cd   : > { %v2441_v47 = vcvt.s32.f32 %v2279_v14 }
 0x4cf   : > { %v2474_v29 = vsel %vm2452_vm1, %v2441_v47, %v4986_v27 }
 0x4d0   : > { %2506 = vst [vmem:[%s4507_s12 + $0xa8] sm:$0xff] %v2474_v29  ;;  %v2403_v29 = vcvt.f32.s32 %v4682_v55  ;;  %v2417_v55 = vcvt.f32.s32 %v4689_v0 }
 0x4d3   : > { %v2303_v57 = vpop.xlane.xlu1 %2302 }
 0x4d4   : > { %v2304_v24 = vcvt.f32.s32 %v2303_v57  ;;  %v2390_v57 = vshll.u32 %v2389_v44, 16 }
 0x4d6   : > { %v2307_v25 = vadd.s32 %v2306_v42, %v2304_v24 }
 0x4d8   : > { %v2289_v21 = vpop.xlane.xlu0 %2288  ;;  %v2443_v49 = vcvt.s32.f32 %v2307_v25  ;;  %v2404_v25 = vshll.u32 %v2403_v29, 16 }
 0x4d9   : > { %v2290_v48 = vcvt.f32.s32 %v2289_v21 }
 0x4da   : > { %v2476_v16 = vsel %vm2452_vm1, %v2443_v49, %v4987_v28 }
 0x4db   : > { %v2293_v11 = vadd.s32 %v2292_v1, %v2290_v48  ;;  %2508 = vst [vmem:[%s4507_s12 + $0xb8] sm:$0xff] %v2476_v16  ;;  %v2418_v16 = vshll.u32 %v2417_v55, 16 }
 0x4dd   : > { %v2442_v40 = vcvt.s32.f32 %v2293_v11 }
 0x4df   : > { %v2475_v3 = vsel %vm2452_vm1, %v2442_v40, %v4988_v10  ;;  %v2317_v51 = vpop.xlane.xlu2 %2316  ;;  %v4993_v10 = vld [vmem:[#allocation13_spill] sm:$0xff] }
 0x4e0   : > { %2507 = vst [vmem:[%s4507_s12 + $0xb0] sm:$0xff] %v2475_v3  ;;  %v2318_v50 = vcvt.f32.s32 %v2317_v51 }
 0x4e2   : > { %v2321_v54 = vadd.s32 %v2320_v7, %v2318_v50 }
 0x4e4   : > { %v2444_v26 = vcvt.s32.f32 %v2321_v54 }
 0x4e6   : > { %v2477_v39 = vsel %vm2452_vm1, %v2444_v26, %v4989_v53 }
 0x4e7   : > { %2509 = vst [vmem:[%s4507_s12 + $0xc0] sm:$0xff] %v2477_v39 }
 0x4eb   : > { %v2331_v4 = vpop.xlane.xlu0 %2330 }
 0x4ec   : > { %v2332_v38 = vcvt.f32.s32 %v2331_v4 }
 0x4ee   : > { %v2335_v56 = vadd.s32 %v2334_v19, %v2332_v38 }
 0x4f0   : > { %v2445_v6 = vcvt.s32.f32 %v2335_v56 }
 0x4f2   : > { %v2478_v41 = vsel %vm2452_vm1, %v2445_v6, %v4990_v31 }
 0x4f3   : > { %2510 = vst [vmem:[%s4507_s12 + $0xc8] sm:$0xff] %v2478_v41 }
 0x4f7   : > { %v2359_v13 = vpop.xlane.xlu2 %2358 }
 0x4f8   : > { %v2360_v22 = vcvt.f32.s32 %v2359_v13 }
 0x4fa   : > { %v2363_v8 = vadd.s32 %v2362_v63, %v2360_v22 }
 0x4fb   : > { %v2345_v37 = vpop.xlane.xlu1 %2344 }
 0x4fc   : > { %v2447_v32 = vcvt.s32.f32 %v2363_v8  ;;  %v2346_v9 = vcvt.f32.s32 %v2345_v37 }
 0x4fe   : > { %v2480_v62 = vsel %vm2452_vm1, %v2447_v32, %v4991_v46  ;;  %v2349_v52 = vadd.s32 %v2348_v18, %v2346_v9 }
 0x4ff   : > { %2512 = vst [vmem:[%s4507_s12 + $0xd8] sm:$0xff] %v2480_v62 }
 0x500   : > { %v2446_v59 = vcvt.s32.f32 %v2349_v52 }
 0x502   : > { %v2479_v15 = vsel %vm2452_vm1, %v2446_v59, %v4992_v20 }
 0x503   : > { %2511 = vst [vmem:[%s4507_s12 + $0xd0] sm:$0xff] %v2479_v15  ;;  %v2373_v61 = vpop.xlane.xlu0 %2372 }
 0x504   : > { %v2374_v45 = vcvt.f32.s32 %v2373_v61 }
 0x506   : > { %v2377_v14 = vadd.s32 %v2376_v2, %v2374_v45 }
 0x508   : > { %v2448_v47 = vcvt.s32.f32 %v2377_v14 }
 0x50a   : > { %v2481_v27 = vsel %vm2452_vm1, %v2448_v47, %v4253_v36 }
 0x50b   : > { %2513 = vst [vmem:[%s4507_s12 + $0xe0] sm:$0xff] %v2481_v27 }
 0x513   : > { %v2387_v58 = vpop.xlane.xlu1 %2386 }
 0x514   : > { %v2388_v42 = vcvt.f32.s32 %v2387_v58 }
 0x516   : > { %v2391_v60 = vadd.s32 %v2390_v57, %v2388_v42  ;;  %v2401_v24 = vpop.xlane.xlu2 %2400 }
 0x517   : > { %v2402_v21 = vcvt.f32.s32 %v2401_v24 }
 0x518   : > { %v2449_v1 = vcvt.s32.f32 %v2391_v60 }
 0x519   : > { %v2405_v49 = vadd.s32 %v2404_v25, %v2402_v21 }
 0x51a   : > { %v2482_v36 = vsel %vm2452_vm1, %v2449_v1, %v4267_v30 }
 0x51b   : > { %2514 = vst [vmem:[%s4507_s12 + $0xe8] sm:$0xff] %v2482_v36  ;;  %v2450_v48 = vcvt.s32.f32 %v2405_v49 }
 0x51d   : > { %v2483_v33 = vsel %vm2452_vm1, %v2450_v48, %v4294_v43 }
 0x51e   : > { %2515 = vst [vmem:[%s4507_s12 + $0xf0] sm:$0xff] %v2483_v33 }
 0x522   : > { %v2415_v28 = vpop.xlane.xlu0 %2414 }
 0x523   : > { %v2416_v11 = vcvt.f32.s32 %v2415_v28 }
 0x525   : > { %v2419_v35 = vadd.s32 %v2418_v16, %v2416_v11 }
 0x527   : > { %v2451_v40 = vcvt.s32.f32 %v2419_v35 }
 0x529   : > { %v2484_v3 = vsel %vm2452_vm1, %v2451_v40, %v4993_v10 }
 0x52a   : > { %2516 = vst [vmem:[%s4507_s12 + $0xf8] sm:$0xff] %v2484_v3 }
 0x52b PF: > { %s16_s21 = sadd.s32 1, %s3085_s21  }
 0x52c   : > { %p13_p4 = scmp.ge.s32.totalorder %s16_s21, 6  }
 0x52e   :  { %15 = sbr.rel (!%p13_p4) target bundleno = 1 (0x1), region = 77 }

</bundles_post_ra>
